<compile_context>
chip_gen: v7x
topology: tpu7x:2x2x1
jax: 0.10.0
libtpu: 0.0.40
codegen_flags: <defaults>
</compile_context>

<pallas_src>
import functools
import math

import numpy as np
import jax
import jax.numpy as jnp
from jax.experimental import pallas as pl
from jax.experimental.pallas import tpu as pltpu


def _tap_masks(H, W, dilation, KH, KW):
    """0/1 mask per kernel tap marking output pixels whose source pixel
    (h + di, w + dj) lies inside the image.  Shape [KH*KW, 1, H*W]."""
    hh, ww = np.meshgrid(np.arange(H), np.arange(W), indexing="ij")
    masks = []
    for kh in range(KH):
        for kw in range(KW):
            di = (kh - 1) * dilation
            dj = (kw - 1) * dilation
            valid = ((hh + di >= 0) & (hh + di < H) &
                     (ww + dj >= 0) & (ww + dj < W))
            masks.append(valid.reshape(1, H * W))
    return np.stack(masks).astype(np.float32)


def my_basic_res_block_forward(x, conv1_w, conv2_w, *, dilation=1,
                               bn_gamma=None, bn_beta=None,
                               bn_mean=None, bn_var=None, bn_eps=1e-5):
    """Eval-mode MyBasicResBlock forward.

    x:        [B, C, H, W] float32 (NCHW, PyTorch layout), C == 64
    conv1_w:  [C, C, 3, 3] float32 (OIHW), bias=False
    conv2_w:  [C, C, 3, 3] float32 (OIHW), bias=False
    bn_*:     optional BatchNorm2d params/stats (default = fresh module).
    Returns   [B, C, H, W] float32.
    """
    B, C, H, W = x.shape
    KH, KW = conv1_w.shape[2], conv1_w.shape[3]
    HW = H * W
    assert conv1_w.shape == (C, C, KH, KW)
    assert conv2_w.shape == (C, C, KH, KW)
    assert KH == 3 and KW == 3

    # ---- BatchNorm2d (eval): y = (x - mean) * gamma / sqrt(var + eps) + beta
    gamma = jnp.ones((C,), jnp.float32) if bn_gamma is None else jnp.asarray(bn_gamma, jnp.float32)
    beta  = jnp.zeros((C,), jnp.float32) if bn_beta  is None else jnp.asarray(bn_beta,  jnp.float32)
    mean  = jnp.zeros((C,), jnp.float32) if bn_mean  is None else jnp.asarray(bn_mean,  jnp.float32)
    var   = jnp.ones((C,), jnp.float32) if bn_var   is None else jnp.asarray(bn_var,   jnp.float32)
    scale_vec = gamma * jax.lax.rsqrt(var + jnp.float32(bn_eps))
    bn_scale = scale_vec.reshape(C, 1)
    bn_shift = (beta - mean * scale_vec).reshape(C, 1)

    # ---- per-tap weight matrices [9, C_out, C_in]; bf16 operands for the MXU
    w1_taps = jnp.transpose(conv1_w, (2, 3, 0, 1)).reshape(KH * KW, C, C).astype(jnp.bfloat16)
    w2_taps = jnp.transpose(conv2_w, (2, 3, 0, 1)).reshape(KH * KW, C, C).astype(jnp.bfloat16)

    # ---- precomputed border masks (tiny, exact 0/1 in bf16, VMEM-resident)
    masks1 = jnp.asarray(_tap_masks(H, W, 1, KH, KW), jnp.bfloat16)
    masks2 = jnp.asarray(_tap_masks(H, W, dilation, KH, KW), jnp.bfloat16)

    # Lane-dense activation layout: [B, C, H*W] (free reshape of NCHW).
    x_flat = x.reshape(B, C, HW).astype(jnp.float32)

    def conv3x3(act_f32, w_ref, m_ref, dil):
        # out[co, p] = sum_{tap, ci} w[tap, co, ci] * act[ci, p + off(tap)]
        # pltpu.roll(x, s)[p] == x[(p - s) % HW]  =>  s = (-off) % HW.
        acc = None
        for kh in range(KH):
            for kw in range(KW):
                t = kh * KW + kw
                off = (kh - 1) * dil * W + (kw - 1) * dil
                src = act_f32 if off == 0 else pltpu.roll(act_f32, (-off) % HW, axis=1)
                src = src.astype(jnp.bfloat16)
                if not (kh == 1 and kw == 1):          # center tap: all valid
                    src = src * m_ref[t]               # zero out-of-image lanes
                contrib = jnp.dot(w_ref[t], src,
                                  preferred_element_type=jnp.float32)
                acc = contrib if acc is None else acc + contrib
        return acc                                     # [C, HW] f32

    def kernel(x_ref, s_ref, b_ref, w1_ref, w2_ref, m1_ref, m2_ref, o_ref):
        xv = x_ref[0]                                            # [C, HW] f32
        # bn1 + relu1   (dropout p=0.3 is identity in eval mode)
        a = jnp.maximum(xv * s_ref[...] + b_ref[...], 0.0)
        h = conv3x3(a, w1_ref, m1_ref, 1)                        # conv1 (pad=1)
        h = jnp.maximum(h, 0.0)                                  # relu2
        out = conv3x3(h, w2_ref, m2_ref, dilation)               # conv2 (pad=dil)
        o_ref[0] = (out + xv).astype(o_ref.dtype)                # fused residual

    out_flat = pl.pallas_call(
        kernel,
        out_shape=jax.ShapeDtypeStruct((B, C, HW), jnp.float32),
        grid=(B,),
        in_specs=[
            pl.BlockSpec((1, C, HW), lambda b: (b, 0, 0)),        # activation
            pl.BlockSpec((C, 1), lambda b: (0, 0)),               # bn scale
            pl.BlockSpec((C, 1), lambda b: (0, 0)),               # bn shift
            pl.BlockSpec((KH * KW, C, C), lambda b: (0, 0, 0)),   # conv1 taps
            pl.BlockSpec((KH * KW, C, C), lambda b: (0, 0, 0)),   # conv2 taps
            pl.BlockSpec((KH * KW, 1, HW), lambda b: (0, 0, 0)),  # conv1 masks
            pl.BlockSpec((KH * KW, 1, HW), lambda b: (0, 0, 0)),  # conv2 masks
        ],
        out_specs=pl.BlockSpec((1, C, HW), lambda b: (b, 0, 0)),
        compiler_params=pltpu.CompilerParams(
            dimension_semantics=("parallel",)),                   # megacore: batch
    )(x_flat, bn_scale, bn_shift, w1_taps, w2_taps, masks1, masks2)

    return out_flat.reshape(B, C, H, W)


# ----------------------------------------------------------------------------
# Plain-JAX (XLA) reference for numerical validation
# ----------------------------------------------------------------------------
def _reference_forward(x, conv1_w, conv2_w, *, dilation=1,
                       bn_gamma=None, bn_beta=None, bn_mean=None, bn_var=None,
                       bn_eps=1e-5):
    B, C, H, W = x.shape
    gamma = jnp.ones((C,), jnp.float32) if bn_gamma is None else bn_gamma
    beta  = jnp.zeros((C,), jnp.float32) if bn_beta  is None else bn_beta
    mean  = jnp.zeros((C,), jnp.float32) if bn_mean  is None else bn_mean
    var   = jnp.ones((C,), jnp.float32) if bn_var   is None else bn_var
    scale = gamma / jnp.sqrt(var + bn_eps)
    shift = beta - mean * scale
    a = jnp.maximum(x * scale[None, :, None, None] + shift[None, :, None, None], 0.0)
    h = jax.lax.conv_general_dilated(
        a, conv1_w, window_strides=(1, 1), padding=((1, 1), (1, 1)),
        dimension_numbers=("NCHW", "OIHW", "NCHW"),
        precision=jax.lax.Precision.HIGHEST)
    h = jnp.maximum(h, 0.0)
    h2 = jax.lax.conv_general_dilated(
        h, conv2_w, window_strides=(1, 1),
        padding=((dilation, dilation), (dilation, dilation)),
        rhs_dilation=(dilation, dilation),
        dimension_numbers=("NCHW", "OIHW", "NCHW"),
        precision=jax.lax.Precision.HIGHEST)
    return h2 + x


# ----------------------------------------------------------------------------
if __name__ == "__main__":
    B, C, H, W = 2, 64, 16, 16      # conv1 is hard-coded 64->64 in the module

    key = jax.random.PRNGKey(0)
    kx, k1, k2, kg, kb, km, kv = jax.random.split(key, 7)
    x = jax.random.normal(kx, (B, C, H, W), jnp.float32)
    fan_in = 3 * 3 * C              # kaiming_normal-style init
    conv1_w = jax.random.normal(k1, (C, C, 3, 3), jnp.float32) * math.sqrt(2.0 / fan_in)
    conv2_w = jax.random.normal(k2, (C, C, 3, 3), jnp.float32) * math.sqrt(2.0 / fan_in)
    # non-trivial ("trained-like") BatchNorm affine params / running stats
    bn_gamma = 1.0 + 0.1 * jax.random.normal(kg, (C,), jnp.float32)
    bn_beta = 0.1 * jax.random.normal(kb, (C,), jnp.float32)
    bn_mean = 0.1 * jax.random.normal(km, (C,), jnp.float32)
    bn_var = 1.0 + 0.1 * jax.random.uniform(kv, (C,), jnp.float32)

    for dil in (1, 2):              # module default is dilation=1; also check 2
        fwd = jax.jit(functools.partial(my_basic_res_block_forward, dilation=dil))
        out = jax.block_until_ready(
            fwd(x, conv1_w, conv2_w, bn_gamma=bn_gamma, bn_beta=bn_beta,
                bn_mean=bn_mean, bn_var=bn_var))
        assert out.shape == (B, C, H, W), out.shape
        assert out.dtype == jnp.float32

        ref = _reference_forward(x, conv1_w, conv2_w, dilation=dil,
                                 bn_gamma=bn_gamma, bn_beta=bn_beta,
                                 bn_mean=bn_mean, bn_var=bn_var)
        err = float(jnp.max(jnp.abs(out - ref)))
        assert err < 5e-2, f"dilation={dil}: max abs err {err}"

    print("KERNEL_OK")
</pallas_src>

<mosaic_0001>
module attributes {stable_mosaic.version = 11 : i64} {
  func.func @kernel(%arg0: i32, %arg1: memref<1x64x256xf32, #tpu.memory_space<vmem>>, %arg2: memref<64x1xf32, #tpu.memory_space<vmem>>, %arg3: memref<64x1xf32, #tpu.memory_space<vmem>>, %arg4: memref<9x64x64xbf16, #tpu.memory_space<vmem>>, %arg5: memref<9x64x64xbf16, #tpu.memory_space<vmem>>, %arg6: memref<9x1x256xbf16, #tpu.memory_space<vmem>>, %arg7: memref<9x1x256xbf16, #tpu.memory_space<vmem>>, %arg8: memref<1x64x256xf32, #tpu.memory_space<vmem>>) attributes {dimension_semantics = [#tpu.dimension_semantics<parallel>], iteration_bounds = array<i64: 2>, scalar_prefetch = 0 : i64, scratch_operands = 0 : i64, tpu.core_type = #tpu.core_type<tc>, window_params = [{transform_indices = @transform_0, window_bounds = array<i64: 1, 64, 256>}, {pipeline_mode = #tpu.pipeline_mode<synchronous>, transform_indices = @transform_1, window_bounds = array<i64: 64, 1>}, {pipeline_mode = #tpu.pipeline_mode<synchronous>, transform_indices = @transform_2, window_bounds = array<i64: 64, 1>}, {pipeline_mode = #tpu.pipeline_mode<synchronous>, transform_indices = @transform_3, window_bounds = array<i64: 9, 64, 64>}, {pipeline_mode = #tpu.pipeline_mode<synchronous>, transform_indices = @transform_4, window_bounds = array<i64: 9, 64, 64>}, {pipeline_mode = #tpu.pipeline_mode<synchronous>, transform_indices = @transform_5, window_bounds = array<i64: 9, 1, 256>}, {pipeline_mode = #tpu.pipeline_mode<synchronous>, transform_indices = @transform_6, window_bounds = array<i64: 9, 1, 256>}, {transform_indices = @transform_7, window_bounds = array<i64: 1, 64, 256>}]} {
    %c0 = arith.constant 0 : index
    %c0_0 = arith.constant 0 : index
    %c0_1 = arith.constant 0 : index
    %0 = vector.load %arg1[%c0, %c0_0, %c0_1] : memref<1x64x256xf32, #tpu.memory_space<vmem>>, vector<1x64x256xf32>
    %1 = vector.shape_cast %0 : vector<1x64x256xf32> to vector<64x256xf32>
    %c0_2 = arith.constant 0 : index
    %c0_3 = arith.constant 0 : index
    %2 = vector.load %arg2[%c0_2, %c0_3] : memref<64x1xf32, #tpu.memory_space<vmem>>, vector<64x1xf32>
    %3 = vector.broadcast %2 : vector<64x1xf32> to vector<64x256xf32>
    %4 = arith.mulf %1, %3 : vector<64x256xf32>
    %c0_4 = arith.constant 0 : index
    %c0_5 = arith.constant 0 : index
    %5 = vector.load %arg3[%c0_4, %c0_5] : memref<64x1xf32, #tpu.memory_space<vmem>>, vector<64x1xf32>
    %6 = vector.broadcast %5 : vector<64x1xf32> to vector<64x256xf32>
    %7 = arith.addf %4, %6 : vector<64x256xf32>
    %cst = arith.constant 0.000000e+00 : f32
    %8 = vector.broadcast %cst : f32 to vector<64x256xf32>
    %9 = arith.maximumf %7, %8 : vector<64x256xf32>
    %c17_i32 = arith.constant 17 : i32
    %10 = tpu.dynamic_rotate %9 by %c17_i32 dim 1 : vector<64x256xf32>, i32 -> vector<64x256xf32>
    %11 = arith.truncf %10 : vector<64x256xf32> to vector<64x256xbf16>
    %c0_6 = arith.constant 0 : index
    %c0_7 = arith.constant 0 : index
    %c0_8 = arith.constant 0 : index
    %12 = vector.load %arg6[%c0_6, %c0_7, %c0_8] : memref<9x1x256xbf16, #tpu.memory_space<vmem>>, vector<1x1x256xbf16>
    %13 = vector.shape_cast %12 : vector<1x1x256xbf16> to vector<1x256xbf16>
    %14 = vector.broadcast %13 : vector<1x256xbf16> to vector<64x256xbf16>
    %15 = arith.mulf %11, %14 : vector<64x256xbf16>
    %c0_9 = arith.constant 0 : index
    %c0_10 = arith.constant 0 : index
    %c0_11 = arith.constant 0 : index
    %16 = vector.load %arg4[%c0_9, %c0_10, %c0_11] : memref<9x64x64xbf16, #tpu.memory_space<vmem>>, vector<1x64x64xbf16>
    %17 = vector.shape_cast %16 : vector<1x64x64xbf16> to vector<64x64xbf16>
    %cst_12 = arith.constant dense<0.000000e+00> : vector<64x256xf32>
    %18 = tpu.matmul %17, %15, %cst_12 {dimension_numbers = #tpu.dot_dimension_numbers<[1], [0], [0], [1], [0, 0, 1, 1], [], []>} : vector<64x64xbf16>, vector<64x256xbf16>, vector<64x256xf32> -> vector<64x256xf32>
    %c16_i32 = arith.constant 16 : i32
    %19 = tpu.dynamic_rotate %9 by %c16_i32 dim 1 : vector<64x256xf32>, i32 -> vector<64x256xf32>
    %20 = arith.truncf %19 : vector<64x256xf32> to vector<64x256xbf16>
    %c1 = arith.constant 1 : index
    %c0_13 = arith.constant 0 : index
    %c0_14 = arith.constant 0 : index
    %21 = vector.load %arg6[%c1, %c0_13, %c0_14] : memref<9x1x256xbf16, #tpu.memory_space<vmem>>, vector<1x1x256xbf16>
    %22 = vector.shape_cast %21 : vector<1x1x256xbf16> to vector<1x256xbf16>
    %23 = vector.broadcast %22 : vector<1x256xbf16> to vector<64x256xbf16>
    %24 = arith.mulf %20, %23 : vector<64x256xbf16>
    %c1_15 = arith.constant 1 : index
    %c0_16 = arith.constant 0 : index
    %c0_17 = arith.constant 0 : index
    %25 = vector.load %arg4[%c1_15, %c0_16, %c0_17] : memref<9x64x64xbf16, #tpu.memory_space<vmem>>, vector<1x64x64xbf16>
    %26 = vector.shape_cast %25 : vector<1x64x64xbf16> to vector<64x64xbf16>
    %cst_18 = arith.constant dense<0.000000e+00> : vector<64x256xf32>
    %27 = tpu.matmul %26, %24, %cst_18 {dimension_numbers = #tpu.dot_dimension_numbers<[1], [0], [0], [1], [0, 0, 1, 1], [], []>} : vector<64x64xbf16>, vector<64x256xbf16>, vector<64x256xf32> -> vector<64x256xf32>
    %28 = arith.addf %18, %27 : vector<64x256xf32>
    %c15_i32 = arith.constant 15 : i32
    %29 = tpu.dynamic_rotate %9 by %c15_i32 dim 1 : vector<64x256xf32>, i32 -> vector<64x256xf32>
    %30 = arith.truncf %29 : vector<64x256xf32> to vector<64x256xbf16>
    %c2 = arith.constant 2 : index
    %c0_19 = arith.constant 0 : index
    %c0_20 = arith.constant 0 : index
    %31 = vector.load %arg6[%c2, %c0_19, %c0_20] : memref<9x1x256xbf16, #tpu.memory_space<vmem>>, vector<1x1x256xbf16>
    %32 = vector.shape_cast %31 : vector<1x1x256xbf16> to vector<1x256xbf16>
    %33 = vector.broadcast %32 : vector<1x256xbf16> to vector<64x256xbf16>
    %34 = arith.mulf %30, %33 : vector<64x256xbf16>
    %c2_21 = arith.constant 2 : index
    %c0_22 = arith.constant 0 : index
    %c0_23 = arith.constant 0 : index
    %35 = vector.load %arg4[%c2_21, %c0_22, %c0_23] : memref<9x64x64xbf16, #tpu.memory_space<vmem>>, vector<1x64x64xbf16>
    %36 = vector.shape_cast %35 : vector<1x64x64xbf16> to vector<64x64xbf16>
    %cst_24 = arith.constant dense<0.000000e+00> : vector<64x256xf32>
    %37 = tpu.matmul %36, %34, %cst_24 {dimension_numbers = #tpu.dot_dimension_numbers<[1], [0], [0], [1], [0, 0, 1, 1], [], []>} : vector<64x64xbf16>, vector<64x256xbf16>, vector<64x256xf32> -> vector<64x256xf32>
    %38 = arith.addf %28, %37 : vector<64x256xf32>
    %c1_i32 = arith.constant 1 : i32
    %39 = tpu.dynamic_rotate %9 by %c1_i32 dim 1 : vector<64x256xf32>, i32 -> vector<64x256xf32>
    %40 = arith.truncf %39 : vector<64x256xf32> to vector<64x256xbf16>
    %c3 = arith.constant 3 : index
    %c0_25 = arith.constant 0 : index
    %c0_26 = arith.constant 0 : index
    %41 = vector.load %arg6[%c3, %c0_25, %c0_26] : memref<9x1x256xbf16, #tpu.memory_space<vmem>>, vector<1x1x256xbf16>
    %42 = vector.shape_cast %41 : vector<1x1x256xbf16> to vector<1x256xbf16>
    %43 = vector.broadcast %42 : vector<1x256xbf16> to vector<64x256xbf16>
    %44 = arith.mulf %40, %43 : vector<64x256xbf16>
    %c3_27 = arith.constant 3 : index
    %c0_28 = arith.constant 0 : index
    %c0_29 = arith.constant 0 : index
    %45 = vector.load %arg4[%c3_27, %c0_28, %c0_29] : memref<9x64x64xbf16, #tpu.memory_space<vmem>>, vector<1x64x64xbf16>
    %46 = vector.shape_cast %45 : vector<1x64x64xbf16> to vector<64x64xbf16>
    %cst_30 = arith.constant dense<0.000000e+00> : vector<64x256xf32>
    %47 = tpu.matmul %46, %44, %cst_30 {dimension_numbers = #tpu.dot_dimension_numbers<[1], [0], [0], [1], [0, 0, 1, 1], [], []>} : vector<64x64xbf16>, vector<64x256xbf16>, vector<64x256xf32> -> vector<64x256xf32>
    %48 = arith.addf %38, %47 : vector<64x256xf32>
    %49 = arith.truncf %9 : vector<64x256xf32> to vector<64x256xbf16>
    %c4 = arith.constant 4 : index
    %c0_31 = arith.constant 0 : index
    %c0_32 = arith.constant 0 : index
    %50 = vector.load %arg4[%c4, %c0_31, %c0_32] : memref<9x64x64xbf16, #tpu.memory_space<vmem>>, vector<1x64x64xbf16>
    %51 = vector.shape_cast %50 : vector<1x64x64xbf16> to vector<64x64xbf16>
    %cst_33 = arith.constant dense<0.000000e+00> : vector<64x256xf32>
    %52 = tpu.matmul %51, %49, %cst_33 {dimension_numbers = #tpu.dot_dimension_numbers<[1], [0], [0], [1], [0, 0, 1, 1], [], []>} : vector<64x64xbf16>, vector<64x256xbf16>, vector<64x256xf32> -> vector<64x256xf32>
    %53 = arith.addf %48, %52 : vector<64x256xf32>
    %c255_i32 = arith.constant 255 : i32
    %54 = tpu.dynamic_rotate %9 by %c255_i32 dim 1 : vector<64x256xf32>, i32 -> vector<64x256xf32>
    %55 = arith.truncf %54 : vector<64x256xf32> to vector<64x256xbf16>
    %c5 = arith.constant 5 : index
    %c0_34 = arith.constant 0 : index
    %c0_35 = arith.constant 0 : index
    %56 = vector.load %arg6[%c5, %c0_34, %c0_35] : memref<9x1x256xbf16, #tpu.memory_space<vmem>>, vector<1x1x256xbf16>
    %57 = vector.shape_cast %56 : vector<1x1x256xbf16> to vector<1x256xbf16>
    %58 = vector.broadcast %57 : vector<1x256xbf16> to vector<64x256xbf16>
    %59 = arith.mulf %55, %58 : vector<64x256xbf16>
    %c5_36 = arith.constant 5 : index
    %c0_37 = arith.constant 0 : index
    %c0_38 = arith.constant 0 : index
    %60 = vector.load %arg4[%c5_36, %c0_37, %c0_38] : memref<9x64x64xbf16, #tpu.memory_space<vmem>>, vector<1x64x64xbf16>
    %61 = vector.shape_cast %60 : vector<1x64x64xbf16> to vector<64x64xbf16>
    %cst_39 = arith.constant dense<0.000000e+00> : vector<64x256xf32>
    %62 = tpu.matmul %61, %59, %cst_39 {dimension_numbers = #tpu.dot_dimension_numbers<[1], [0], [0], [1], [0, 0, 1, 1], [], []>} : vector<64x64xbf16>, vector<64x256xbf16>, vector<64x256xf32> -> vector<64x256xf32>
    %63 = arith.addf %53, %62 : vector<64x256xf32>
    %c241_i32 = arith.constant 241 : i32
    %64 = tpu.dynamic_rotate %9 by %c241_i32 dim 1 : vector<64x256xf32>, i32 -> vector<64x256xf32>
    %65 = arith.truncf %64 : vector<64x256xf32> to vector<64x256xbf16>
    %c6 = arith.constant 6 : index
    %c0_40 = arith.constant 0 : index
    %c0_41 = arith.constant 0 : index
    %66 = vector.load %arg6[%c6, %c0_40, %c0_41] : memref<9x1x256xbf16, #tpu.memory_space<vmem>>, vector<1x1x256xbf16>
    %67 = vector.shape_cast %66 : vector<1x1x256xbf16> to vector<1x256xbf16>
    %68 = vector.broadcast %67 : vector<1x256xbf16> to vector<64x256xbf16>
    %69 = arith.mulf %65, %68 : vector<64x256xbf16>
    %c6_42 = arith.constant 6 : index
    %c0_43 = arith.constant 0 : index
    %c0_44 = arith.constant 0 : index
    %70 = vector.load %arg4[%c6_42, %c0_43, %c0_44] : memref<9x64x64xbf16, #tpu.memory_space<vmem>>, vector<1x64x64xbf16>
    %71 = vector.shape_cast %70 : vector<1x64x64xbf16> to vector<64x64xbf16>
    %cst_45 = arith.constant dense<0.000000e+00> : vector<64x256xf32>
    %72 = tpu.matmul %71, %69, %cst_45 {dimension_numbers = #tpu.dot_dimension_numbers<[1], [0], [0], [1], [0, 0, 1, 1], [], []>} : vector<64x64xbf16>, vector<64x256xbf16>, vector<64x256xf32> -> vector<64x256xf32>
    %73 = arith.addf %63, %72 : vector<64x256xf32>
    %c240_i32 = arith.constant 240 : i32
    %74 = tpu.dynamic_rotate %9 by %c240_i32 dim 1 : vector<64x256xf32>, i32 -> vector<64x256xf32>
    %75 = arith.truncf %74 : vector<64x256xf32> to vector<64x256xbf16>
    %c7 = arith.constant 7 : index
    %c0_46 = arith.constant 0 : index
    %c0_47 = arith.constant 0 : index
    %76 = vector.load %arg6[%c7, %c0_46, %c0_47] : memref<9x1x256xbf16, #tpu.memory_space<vmem>>, vector<1x1x256xbf16>
    %77 = vector.shape_cast %76 : vector<1x1x256xbf16> to vector<1x256xbf16>
    %78 = vector.broadcast %77 : vector<1x256xbf16> to vector<64x256xbf16>
    %79 = arith.mulf %75, %78 : vector<64x256xbf16>
    %c7_48 = arith.constant 7 : index
    %c0_49 = arith.constant 0 : index
    %c0_50 = arith.constant 0 : index
    %80 = vector.load %arg4[%c7_48, %c0_49, %c0_50] : memref<9x64x64xbf16, #tpu.memory_space<vmem>>, vector<1x64x64xbf16>
    %81 = vector.shape_cast %80 : vector<1x64x64xbf16> to vector<64x64xbf16>
    %cst_51 = arith.constant dense<0.000000e+00> : vector<64x256xf32>
    %82 = tpu.matmul %81, %79, %cst_51 {dimension_numbers = #tpu.dot_dimension_numbers<[1], [0], [0], [1], [0, 0, 1, 1], [], []>} : vector<64x64xbf16>, vector<64x256xbf16>, vector<64x256xf32> -> vector<64x256xf32>
    %83 = arith.addf %73, %82 : vector<64x256xf32>
    %c239_i32 = arith.constant 239 : i32
    %84 = tpu.dynamic_rotate %9 by %c239_i32 dim 1 : vector<64x256xf32>, i32 -> vector<64x256xf32>
    %85 = arith.truncf %84 : vector<64x256xf32> to vector<64x256xbf16>
    %c8 = arith.constant 8 : index
    %c0_52 = arith.constant 0 : index
    %c0_53 = arith.constant 0 : index
    %86 = vector.load %arg6[%c8, %c0_52, %c0_53] : memref<9x1x256xbf16, #tpu.memory_space<vmem>>, vector<1x1x256xbf16>
    %87 = vector.shape_cast %86 : vector<1x1x256xbf16> to vector<1x256xbf16>
    %88 = vector.broadcast %87 : vector<1x256xbf16> to vector<64x256xbf16>
    %89 = arith.mulf %85, %88 : vector<64x256xbf16>
    %c8_54 = arith.constant 8 : index
    %c0_55 = arith.constant 0 : index
    %c0_56 = arith.constant 0 : index
    %90 = vector.load %arg4[%c8_54, %c0_55, %c0_56] : memref<9x64x64xbf16, #tpu.memory_space<vmem>>, vector<1x64x64xbf16>
    %91 = vector.shape_cast %90 : vector<1x64x64xbf16> to vector<64x64xbf16>
    %cst_57 = arith.constant dense<0.000000e+00> : vector<64x256xf32>
    %92 = tpu.matmul %91, %89, %cst_57 {dimension_numbers = #tpu.dot_dimension_numbers<[1], [0], [0], [1], [0, 0, 1, 1], [], []>} : vector<64x64xbf16>, vector<64x256xbf16>, vector<64x256xf32> -> vector<64x256xf32>
    %93 = arith.addf %83, %92 : vector<64x256xf32>
    %cst_58 = arith.constant 0.000000e+00 : f32
    %94 = vector.broadcast %cst_58 : f32 to vector<64x256xf32>
    %95 = arith.maximumf %93, %94 : vector<64x256xf32>
    %c17_i32_59 = arith.constant 17 : i32
    %96 = tpu.dynamic_rotate %95 by %c17_i32_59 dim 1 : vector<64x256xf32>, i32 -> vector<64x256xf32>
    %97 = arith.truncf %96 : vector<64x256xf32> to vector<64x256xbf16>
    %c0_60 = arith.constant 0 : index
    %c0_61 = arith.constant 0 : index
    %c0_62 = arith.constant 0 : index
    %98 = vector.load %arg7[%c0_60, %c0_61, %c0_62] : memref<9x1x256xbf16, #tpu.memory_space<vmem>>, vector<1x1x256xbf16>
    %99 = vector.shape_cast %98 : vector<1x1x256xbf16> to vector<1x256xbf16>
    %100 = vector.broadcast %99 : vector<1x256xbf16> to vector<64x256xbf16>
    %101 = arith.mulf %97, %100 : vector<64x256xbf16>
    %c0_63 = arith.constant 0 : index
    %c0_64 = arith.constant 0 : index
    %c0_65 = arith.constant 0 : index
    %102 = vector.load %arg5[%c0_63, %c0_64, %c0_65] : memref<9x64x64xbf16, #tpu.memory_space<vmem>>, vector<1x64x64xbf16>
    %103 = vector.shape_cast %102 : vector<1x64x64xbf16> to vector<64x64xbf16>
    %cst_66 = arith.constant dense<0.000000e+00> : vector<64x256xf32>
    %104 = tpu.matmul %103, %101, %cst_66 {dimension_numbers = #tpu.dot_dimension_numbers<[1], [0], [0], [1], [0, 0, 1, 1], [], []>} : vector<64x64xbf16>, vector<64x256xbf16>, vector<64x256xf32> -> vector<64x256xf32>
    %c16_i32_67 = arith.constant 16 : i32
    %105 = tpu.dynamic_rotate %95 by %c16_i32_67 dim 1 : vector<64x256xf32>, i32 -> vector<64x256xf32>
    %106 = arith.truncf %105 : vector<64x256xf32> to vector<64x256xbf16>
    %c1_68 = arith.constant 1 : index
    %c0_69 = arith.constant 0 : index
    %c0_70 = arith.constant 0 : index
    %107 = vector.load %arg7[%c1_68, %c0_69, %c0_70] : memref<9x1x256xbf16, #tpu.memory_space<vmem>>, vector<1x1x256xbf16>
    %108 = vector.shape_cast %107 : vector<1x1x256xbf16> to vector<1x256xbf16>
    %109 = vector.broadcast %108 : vector<1x256xbf16> to vector<64x256xbf16>
    %110 = arith.mulf %106, %109 : vector<64x256xbf16>
    %c1_71 = arith.constant 1 : index
    %c0_72 = arith.constant 0 : index
    %c0_73 = arith.constant 0 : index
    %111 = vector.load %arg5[%c1_71, %c0_72, %c0_73] : memref<9x64x64xbf16, #tpu.memory_space<vmem>>, vector<1x64x64xbf16>
    %112 = vector.shape_cast %111 : vector<1x64x64xbf16> to vector<64x64xbf16>
    %cst_74 = arith.constant dense<0.000000e+00> : vector<64x256xf32>
    %113 = tpu.matmul %112, %110, %cst_74 {dimension_numbers = #tpu.dot_dimension_numbers<[1], [0], [0], [1], [0, 0, 1, 1], [], []>} : vector<64x64xbf16>, vector<64x256xbf16>, vector<64x256xf32> -> vector<64x256xf32>
    %114 = arith.addf %104, %113 : vector<64x256xf32>
    %c15_i32_75 = arith.constant 15 : i32
    %115 = tpu.dynamic_rotate %95 by %c15_i32_75 dim 1 : vector<64x256xf32>, i32 -> vector<64x256xf32>
    %116 = arith.truncf %115 : vector<64x256xf32> to vector<64x256xbf16>
    %c2_76 = arith.constant 2 : index
    %c0_77 = arith.constant 0 : index
    %c0_78 = arith.constant 0 : index
    %117 = vector.load %arg7[%c2_76, %c0_77, %c0_78] : memref<9x1x256xbf16, #tpu.memory_space<vmem>>, vector<1x1x256xbf16>
    %118 = vector.shape_cast %117 : vector<1x1x256xbf16> to vector<1x256xbf16>
    %119 = vector.broadcast %118 : vector<1x256xbf16> to vector<64x256xbf16>
    %120 = arith.mulf %116, %119 : vector<64x256xbf16>
    %c2_79 = arith.constant 2 : index
    %c0_80 = arith.constant 0 : index
    %c0_81 = arith.constant 0 : index
    %121 = vector.load %arg5[%c2_79, %c0_80, %c0_81] : memref<9x64x64xbf16, #tpu.memory_space<vmem>>, vector<1x64x64xbf16>
    %122 = vector.shape_cast %121 : vector<1x64x64xbf16> to vector<64x64xbf16>
    %cst_82 = arith.constant dense<0.000000e+00> : vector<64x256xf32>
    %123 = tpu.matmul %122, %120, %cst_82 {dimension_numbers = #tpu.dot_dimension_numbers<[1], [0], [0], [1], [0, 0, 1, 1], [], []>} : vector<64x64xbf16>, vector<64x256xbf16>, vector<64x256xf32> -> vector<64x256xf32>
    %124 = arith.addf %114, %123 : vector<64x256xf32>
    %c1_i32_83 = arith.constant 1 : i32
    %125 = tpu.dynamic_rotate %95 by %c1_i32_83 dim 1 : vector<64x256xf32>, i32 -> vector<64x256xf32>
    %126 = arith.truncf %125 : vector<64x256xf32> to vector<64x256xbf16>
    %c3_84 = arith.constant 3 : index
    %c0_85 = arith.constant 0 : index
    %c0_86 = arith.constant 0 : index
    %127 = vector.load %arg7[%c3_84, %c0_85, %c0_86] : memref<9x1x256xbf16, #tpu.memory_space<vmem>>, vector<1x1x256xbf16>
    %128 = vector.shape_cast %127 : vector<1x1x256xbf16> to vector<1x256xbf16>
    %129 = vector.broadcast %128 : vector<1x256xbf16> to vector<64x256xbf16>
    %130 = arith.mulf %126, %129 : vector<64x256xbf16>
    %c3_87 = arith.constant 3 : index
    %c0_88 = arith.constant 0 : index
    %c0_89 = arith.constant 0 : index
    %131 = vector.load %arg5[%c3_87, %c0_88, %c0_89] : memref<9x64x64xbf16, #tpu.memory_space<vmem>>, vector<1x64x64xbf16>
    %132 = vector.shape_cast %131 : vector<1x64x64xbf16> to vector<64x64xbf16>
    %cst_90 = arith.constant dense<0.000000e+00> : vector<64x256xf32>
    %133 = tpu.matmul %132, %130, %cst_90 {dimension_numbers = #tpu.dot_dimension_numbers<[1], [0], [0], [1], [0, 0, 1, 1], [], []>} : vector<64x64xbf16>, vector<64x256xbf16>, vector<64x256xf32> -> vector<64x256xf32>
    %134 = arith.addf %124, %133 : vector<64x256xf32>
    %135 = arith.truncf %95 : vector<64x256xf32> to vector<64x256xbf16>
    %c4_91 = arith.constant 4 : index
    %c0_92 = arith.constant 0 : index
    %c0_93 = arith.constant 0 : index
    %136 = vector.load %arg5[%c4_91, %c0_92, %c0_93] : memref<9x64x64xbf16, #tpu.memory_space<vmem>>, vector<1x64x64xbf16>
    %137 = vector.shape_cast %136 : vector<1x64x64xbf16> to vector<64x64xbf16>
    %cst_94 = arith.constant dense<0.000000e+00> : vector<64x256xf32>
    %138 = tpu.matmul %137, %135, %cst_94 {dimension_numbers = #tpu.dot_dimension_numbers<[1], [0], [0], [1], [0, 0, 1, 1], [], []>} : vector<64x64xbf16>, vector<64x256xbf16>, vector<64x256xf32> -> vector<64x256xf32>
    %139 = arith.addf %134, %138 : vector<64x256xf32>
    %c255_i32_95 = arith.constant 255 : i32
    %140 = tpu.dynamic_rotate %95 by %c255_i32_95 dim 1 : vector<64x256xf32>, i32 -> vector<64x256xf32>
    %141 = arith.truncf %140 : vector<64x256xf32> to vector<64x256xbf16>
    %c5_96 = arith.constant 5 : index
    %c0_97 = arith.constant 0 : index
    %c0_98 = arith.constant 0 : index
    %142 = vector.load %arg7[%c5_96, %c0_97, %c0_98] : memref<9x1x256xbf16, #tpu.memory_space<vmem>>, vector<1x1x256xbf16>
    %143 = vector.shape_cast %142 : vector<1x1x256xbf16> to vector<1x256xbf16>
    %144 = vector.broadcast %143 : vector<1x256xbf16> to vector<64x256xbf16>
    %145 = arith.mulf %141, %144 : vector<64x256xbf16>
    %c5_99 = arith.constant 5 : index
    %c0_100 = arith.constant 0 : index
    %c0_101 = arith.constant 0 : index
    %146 = vector.load %arg5[%c5_99, %c0_100, %c0_101] : memref<9x64x64xbf16, #tpu.memory_space<vmem>>, vector<1x64x64xbf16>
    %147 = vector.shape_cast %146 : vector<1x64x64xbf16> to vector<64x64xbf16>
    %cst_102 = arith.constant dense<0.000000e+00> : vector<64x256xf32>
    %148 = tpu.matmul %147, %145, %cst_102 {dimension_numbers = #tpu.dot_dimension_numbers<[1], [0], [0], [1], [0, 0, 1, 1], [], []>} : vector<64x64xbf16>, vector<64x256xbf16>, vector<64x256xf32> -> vector<64x256xf32>
    %149 = arith.addf %139, %148 : vector<64x256xf32>
    %c241_i32_103 = arith.constant 241 : i32
    %150 = tpu.dynamic_rotate %95 by %c241_i32_103 dim 1 : vector<64x256xf32>, i32 -> vector<64x256xf32>
    %151 = arith.truncf %150 : vector<64x256xf32> to vector<64x256xbf16>
    %c6_104 = arith.constant 6 : index
    %c0_105 = arith.constant 0 : index
    %c0_106 = arith.constant 0 : index
    %152 = vector.load %arg7[%c6_104, %c0_105, %c0_106] : memref<9x1x256xbf16, #tpu.memory_space<vmem>>, vector<1x1x256xbf16>
    %153 = vector.shape_cast %152 : vector<1x1x256xbf16> to vector<1x256xbf16>
    %154 = vector.broadcast %153 : vector<1x256xbf16> to vector<64x256xbf16>
    %155 = arith.mulf %151, %154 : vector<64x256xbf16>
    %c6_107 = arith.constant 6 : index
    %c0_108 = arith.constant 0 : index
    %c0_109 = arith.constant 0 : index
    %156 = vector.load %arg5[%c6_107, %c0_108, %c0_109] : memref<9x64x64xbf16, #tpu.memory_space<vmem>>, vector<1x64x64xbf16>
    %157 = vector.shape_cast %156 : vector<1x64x64xbf16> to vector<64x64xbf16>
    %cst_110 = arith.constant dense<0.000000e+00> : vector<64x256xf32>
    %158 = tpu.matmul %157, %155, %cst_110 {dimension_numbers = #tpu.dot_dimension_numbers<[1], [0], [0], [1], [0, 0, 1, 1], [], []>} : vector<64x64xbf16>, vector<64x256xbf16>, vector<64x256xf32> -> vector<64x256xf32>
    %159 = arith.addf %149, %158 : vector<64x256xf32>
    %c240_i32_111 = arith.constant 240 : i32
    %160 = tpu.dynamic_rotate %95 by %c240_i32_111 dim 1 : vector<64x256xf32>, i32 -> vector<64x256xf32>
    %161 = arith.truncf %160 : vector<64x256xf32> to vector<64x256xbf16>
    %c7_112 = arith.constant 7 : index
    %c0_113 = arith.constant 0 : index
    %c0_114 = arith.constant 0 : index
    %162 = vector.load %arg7[%c7_112, %c0_113, %c0_114] : memref<9x1x256xbf16, #tpu.memory_space<vmem>>, vector<1x1x256xbf16>
    %163 = vector.shape_cast %162 : vector<1x1x256xbf16> to vector<1x256xbf16>
    %164 = vector.broadcast %163 : vector<1x256xbf16> to vector<64x256xbf16>
    %165 = arith.mulf %161, %164 : vector<64x256xbf16>
    %c7_115 = arith.constant 7 : index
    %c0_116 = arith.constant 0 : index
    %c0_117 = arith.constant 0 : index
    %166 = vector.load %arg5[%c7_115, %c0_116, %c0_117] : memref<9x64x64xbf16, #tpu.memory_space<vmem>>, vector<1x64x64xbf16>
    %167 = vector.shape_cast %166 : vector<1x64x64xbf16> to vector<64x64xbf16>
    %cst_118 = arith.constant dense<0.000000e+00> : vector<64x256xf32>
    %168 = tpu.matmul %167, %165, %cst_118 {dimension_numbers = #tpu.dot_dimension_numbers<[1], [0], [0], [1], [0, 0, 1, 1], [], []>} : vector<64x64xbf16>, vector<64x256xbf16>, vector<64x256xf32> -> vector<64x256xf32>
    %169 = arith.addf %159, %168 : vector<64x256xf32>
    %c239_i32_119 = arith.constant 239 : i32
    %170 = tpu.dynamic_rotate %95 by %c239_i32_119 dim 1 : vector<64x256xf32>, i32 -> vector<64x256xf32>
    %171 = arith.truncf %170 : vector<64x256xf32> to vector<64x256xbf16>
    %c8_120 = arith.constant 8 : index
    %c0_121 = arith.constant 0 : index
    %c0_122 = arith.constant 0 : index
    %172 = vector.load %arg7[%c8_120, %c0_121, %c0_122] : memref<9x1x256xbf16, #tpu.memory_space<vmem>>, vector<1x1x256xbf16>
    %173 = vector.shape_cast %172 : vector<1x1x256xbf16> to vector<1x256xbf16>
    %174 = vector.broadcast %173 : vector<1x256xbf16> to vector<64x256xbf16>
    %175 = arith.mulf %171, %174 : vector<64x256xbf16>
    %c8_123 = arith.constant 8 : index
    %c0_124 = arith.constant 0 : index
    %c0_125 = arith.constant 0 : index
    %176 = vector.load %arg5[%c8_123, %c0_124, %c0_125] : memref<9x64x64xbf16, #tpu.memory_space<vmem>>, vector<1x64x64xbf16>
    %177 = vector.shape_cast %176 : vector<1x64x64xbf16> to vector<64x64xbf16>
    %cst_126 = arith.constant dense<0.000000e+00> : vector<64x256xf32>
    %178 = tpu.matmul %177, %175, %cst_126 {dimension_numbers = #tpu.dot_dimension_numbers<[1], [0], [0], [1], [0, 0, 1, 1], [], []>} : vector<64x64xbf16>, vector<64x256xbf16>, vector<64x256xf32> -> vector<64x256xf32>
    %179 = arith.addf %169, %178 : vector<64x256xf32>
    %180 = arith.addf %179, %1 : vector<64x256xf32>
    %c0_127 = arith.constant 0 : index
    %c0_128 = arith.constant 0 : index
    %c0_129 = arith.constant 0 : index
    %181 = vector.load %arg8[%c0_127, %c0_128, %c0_129] : memref<1x64x256xf32, #tpu.memory_space<vmem>>, vector<1x64x256xf32>
    %182 = vector.shape_cast %181 : vector<1x64x256xf32> to vector<64x256xf32>
    %183 = vector.shape_cast %180 : vector<64x256xf32> to vector<1x64x256xf32>
    tpu.vector_store %arg8[%c0_127, %c0_128, %c0_129], %183 {strides = array<i32>} : memref<1x64x256xf32, #tpu.memory_space<vmem>>, vector<1x64x256xf32>,
    return
  }
  func.func @transform_0(%arg0: i32) -> (i32, i32, i32) {
    %c0_i32 = arith.constant 0 : i32
    %c0_i32_0 = arith.constant 0 : i32
    %c0_i32_1 = arith.constant 0 : i32
    return %arg0, %c0_i32, %c0_i32_0 : i32, i32, i32
  }
  func.func @transform_1(%arg0: i32) -> (i32, i32) {
    %c0_i32 = arith.constant 0 : i32
    %c0_i32_0 = arith.constant 0 : i32
    %c0_i32_1 = arith.constant 0 : i32
    return %c0_i32, %c0_i32_0 : i32, i32
  }
  func.func @transform_2(%arg0: i32) -> (i32, i32) {
    %c0_i32 = arith.constant 0 : i32
    %c0_i32_0 = arith.constant 0 : i32
    %c0_i32_1 = arith.constant 0 : i32
    return %c0_i32, %c0_i32_0 : i32, i32
  }
  func.func @transform_3(%arg0: i32) -> (i32, i32, i32) {
    %c0_i32 = arith.constant 0 : i32
    %c0_i32_0 = arith.constant 0 : i32
    %c0_i32_1 = arith.constant 0 : i32
    %c0_i32_2 = arith.constant 0 : i32
    return %c0_i32, %c0_i32_0, %c0_i32_1 : i32, i32, i32
  }
  func.func @transform_4(%arg0: i32) -> (i32, i32, i32) {
    %c0_i32 = arith.constant 0 : i32
    %c0_i32_0 = arith.constant 0 : i32
    %c0_i32_1 = arith.constant 0 : i32
    %c0_i32_2 = arith.constant 0 : i32
    return %c0_i32, %c0_i32_0, %c0_i32_1 : i32, i32, i32
  }
  func.func @transform_5(%arg0: i32) -> (i32, i32, i32) {
    %c0_i32 = arith.constant 0 : i32
    %c0_i32_0 = arith.constant 0 : i32
    %c0_i32_1 = arith.constant 0 : i32
    %c0_i32_2 = arith.constant 0 : i32
    return %c0_i32, %c0_i32_0, %c0_i32_1 : i32, i32, i32
  }
  func.func @transform_6(%arg0: i32) -> (i32, i32, i32) {
    %c0_i32 = arith.constant 0 : i32
    %c0_i32_0 = arith.constant 0 : i32
    %c0_i32_1 = arith.constant 0 : i32
    %c0_i32_2 = arith.constant 0 : i32
    return %c0_i32, %c0_i32_0, %c0_i32_1 : i32, i32, i32
  }
  func.func @transform_7(%arg0: i32) -> (i32, i32, i32) {
    %c0_i32 = arith.constant 0 : i32
    %c0_i32_0 = arith.constant 0 : i32
    %c0_i32_1 = arith.constant 0 : i32
    return %arg0, %c0_i32, %c0_i32_0 : i32, i32, i32
  }
}

</mosaic_0001>

<bundles_post_ra>
// kernel: my_basic_res_block_forward.1
= control target key start
LH: loop header
LB: loop body
LE: loop exit
PB: predicated region body
PF: predicated region fallthrough
CT: control target
= control target key end

     0   :  { %s5867_s24 = smov 0   ;;  %s7521_s0 = inlined_call_operand.vmem [shape: f32[2,64,256], index: 0, kind: input, shape index: {}]   ;;  %s7522_s1 = inlined_call_operand.vmem [shape: f32[64,1], index: 1, kind: input, shape index: {}]   ;;  %s7523_s2 = inlined_call_operand.vmem [shape: f32[64,1], index: 2, kind: input, shape index: {}]   ;;  %s7524_s3 = inlined_call_operand.vmem [shape: bf16[9,64,64], index: 3, kind: input, shape index: {}]   ;;  %s7525_s4 = inlined_call_operand.vmem [shape: bf16[9,64,64], index: 4, kind: input, shape index: {}]   ;;  %s7526_s5 = inlined_call_operand.vmem [shape: bf16[9,1,256], index: 5, kind: input, shape index: {}, may-alias: {5,6}]   ;;  %s7527_s6 = inlined_call_operand.vmem [shape: bf16[9,1,256], index: 6, kind: input, shape index: {}, may-alias: {5,6}]   ;;  %s7528_s7 = inlined_call_operand.vmem [shape: f32[2,64,256], index: 7, kind: output, shape index: {}]  }
   0x1 LB: > { %s4490_s25 = sadd.s32 4294967295, %s5815_s24   ;;  %p4494_p0 = scmp.ge.s32.totalorder %s5815_s24, 1  ;;  %s5815_s24 = sphi %s5867_s24, %s17_s24  }
   0x2   : > { %p237_p1 = scmp.lt.s32.totalorder %s5815_s24, 3 }
   0x4   : > { %p238_p2 = pnand %p4494_p0, %p237_p1 }
   0x5   : > { %v360_v0 = vld [vmem:[%s7523_s2] sm:$0xff] (!%p238_p2)  ;;  %v5817_v2 = vmov (!%p238_p2), 0   ;;  %v361_v3 = vld [vmem:[%s7523_s2 + $0x8] sm:$0xff] (!%p238_p2)  ;;  %v299_v5 = vld [vmem:[%s7522_s1 + $0x18] sm:$0xff] (!%p238_p2)  ;;  %p269_p3 = scmp.lt.s32.totalorder (!%p238_p2), %s4490_s25, 1  ;;  %s5818_s18 = smov (!%p238_p2), 16  }
   0x6   : > { %241 = sbr.rel (%p238_p2) target bundleno = 1418 (0x58a), region = 48  ;;  %v296_v1 = vld [vmem:[%s7522_s1] sm:$0xff] (!%p238_p2)  ;;  %5080 = vset.pattern.permute.xlu1 (!%p238_p2), %v5817_v2  ;;  %5079 = vset.pattern.permute.xlu0 (!%p238_p2), %v5817_v2  ;;  %v297_v4 = vld [vmem:[%s7522_s1 + $0x8] sm:$0xff] (!%p238_p2)  ;;  %v298_v6 = vld [vmem:[%s7522_s1 + $0x10] sm:$0xff] (!%p238_p2)  ;;  %s5819_s19 = smov (!%p238_p2), 17   ;;  %vm686_vm2 = vcmask (!%p238_p2), 523264  }
   0x7   : > { %370 = vperm.xlu1 (!%p238_p2), %5080, %v360_v0   ;;  %306 = vperm.xlu0 (!%p238_p2), %5079, %v296_v1   ;;  %v363_v7 = vld [vmem:[%s7523_s2 + $0x18] sm:$0xff] (!%p238_p2)  ;;  %v362_v8 = vld [vmem:[%s7523_s2 + $0x10] sm:$0xff] (!%p238_p2)  ;;  %v301_v9 = vld [vmem:[%s7522_s1 + $0x28] sm:$0xff] (!%p238_p2)  ;;  %s5820_s20 = smov (!%p238_p2), 15   ;;  %s5821_s21 = smov (!%p238_p2), 1  }
   0x8   : > { %731 = vmatprep.mubr.bf16.mxu0 (!%p238_p2), %v5817_v2  ;;  %2721 = vmatprep.mubr.bf16.mxu1 (!%p238_p2), %v5817_v2  ;;  %v300_v10 = vld [vmem:[%s7522_s1 + $0x20] sm:$0xff] (!%p238_p2)  ;;  %v365_v11 = vld [vmem:[%s7523_s2 + $0x28] sm:$0xff] (!%p238_p2)  ;;  %v303_v13 = vld [vmem:[%s7522_s1 + $0x38] sm:$0xff] (!%p238_p2)  ;;  %s5822_s22 = smov (!%p238_p2), 127   ;;  %s5823_s23 = smov (!%p238_p2), 113  }
   0x9   : > { %v364_v12 = vld [vmem:[%s7523_s2 + $0x20] sm:$0xff] (!%p238_p2)  ;;  %v302_v14 = vld [vmem:[%s7522_s1 + $0x30] sm:$0xff] (!%p238_p2)  ;;  %v367_v15 = vld [vmem:[%s7523_s2 + $0x38] sm:$0xff] (!%p238_p2)  ;;  %s5825_s28 = smov (!%p238_p2), 112   ;;  %s5826_s29 = smov (!%p238_p2), 111  }
   0xa   : > { %v366_v16 = vld [vmem:[%s7523_s2 + $0x30] sm:$0xff] (!%p238_p2) }
   0xb   : > { %375 = vperm.xlu1 (!%p238_p2), %5080, %v361_v3   ;;  %311 = vperm.xlu0 (!%p238_p2), %5079, %v297_v4  }
   0xd   : > { %s7530_s25 = smov (!%p269_p3, %s4490_s25), 1 }
   0xe   : > { %s4803_s14 = sshll.u32 %s7530_s25, 7 }
   0xf   : > { %321 = vperm.xlu1 %5080, %v299_v5   ;;  %316 = vperm.xlu0 %5079, %v298_v6   ;;  %s5939_s17 = scalar_lea.vmem %s7521_s0, %s4803_s14  ;;  %s7484_s11 = scalar_lea.vmem %s7528_s7, %s4803_s14 }
  0x10   : > { %v280_v17 = vld [vmem:[%s5939_s17] sm:$0xff]  ;;  %v281_v18 = vld [vmem:[%s5939_s17 + $0x8] sm:$0xff]  ;;  %v282_v23 = vld [vmem:[%s5939_s17 + $0x10] sm:$0xff] }
  0x11   : > { %v283_v24 = vld [vmem:[%s5939_s17 + $0x18] sm:$0xff]  ;;  %v286_v33 = vld [vmem:[%s5939_s17 + $0x30] sm:$0xff]  ;;  %v284_v37 = vld [vmem:[%s5939_s17 + $0x20] sm:$0xff] }
  0x12   : > { %v287_v34 = vld [vmem:[%s5939_s17 + $0x38] sm:$0xff]  ;;  %v285_v38 = vld [vmem:[%s5939_s17 + $0x28] sm:$0xff]  ;;  %v290_v59 = vld [vmem:[%s5939_s17 + $0x50] sm:$0xff] }
  0x13   : > { %385 = vperm.xlu1 %5080, %v363_v7   ;;  %380 = vperm.xlu0 %5079, %v362_v8   ;;  %v291_v61 = vld [vmem:[%s5939_s17 + $0x58] sm:$0xff]  ;;  %v288_v63 = vld [vmem:[%s5939_s17 + $0x40] sm:$0xff]  ;;  %v289_v0 = vld [vmem:[%s5939_s17 + $0x48] sm:$0xff] }
  0x17   : > { %331 = vperm.xlu1 %5080, %v301_v9   ;;  %326 = vperm.xlu0 %5079, %v300_v10  }
  0x1b   : > { %395 = vperm.xlu1 %5080, %v365_v11   ;;  %390 = vperm.xlu0 %5079, %v364_v12  }
  0x1f   : > { %341 = vperm.xlu1 %5080, %v303_v13   ;;  %336 = vperm.xlu0 %5079, %v302_v14  }
  0x23   : > { %405 = vperm.xlu1 %5080, %v367_v15   ;;  %400 = vperm.xlu0 %5079, %v366_v16  }
  0x86   : > { %v371_v19 = vpop.permute.xlu1 %370  ;;  %v307_v20 = vpop.permute.xlu0 %306 }
  0x87   : > { %v344_v21 = vmul.f32 %v307_v20, %v280_v17  ;;  %v345_v22 = vmul.f32 %v307_v20, %v281_v18  ;;  %v294_v18 = vld [vmem:[%s5939_s17 + $0x70] sm:$0xff]  ;;  %v295_v20 = vld [vmem:[%s5939_s17 + $0x78] sm:$0xff] }
  0x89   : > { %v5945_v27 = vadd.f32 %v371_v19, %v344_v21  ;;  %v5947_v28 = vadd.f32 %v371_v19, %v345_v22  ;;  %v292_v22 = vld [vmem:[%s5939_s17 + $0x60] sm:$0xff] }
  0x8a   : > { %v376_v25 = vpop.permute.xlu1 %375  ;;  %v312_v26 = vpop.permute.xlu0 %311 }
  0x8b   : > { %v346_v29 = vmul.f32 %v312_v26, %v282_v23  ;;  %v347_v30 = vmul.f32 %v312_v26, %v283_v24  ;;  %v424_v39 = vmax.f32 %v5945_v27, 0.0  ;;  %v425_v40 = vmax.f32 %v5947_v28, 0.0  ;;  %v293_v23 = vld [vmem:[%s5939_s17 + $0x68] sm:$0xff] }
  0x8d   : > { %v5949_v31 = vadd.f32 %v376_v25, %v346_v29  ;;  %v411_v32 = vadd.f32 %v376_v25, %v347_v30 }
  0x8e   : > { %v322_v35 = vpop.permute.xlu1 %321  ;;  %v317_v36 = vpop.permute.xlu0 %316 }
  0x8f   : > { %v426_v41 = vmax.f32 %v5949_v31, 0.0  ;;  %v427_v42 = vmax.f32 %v411_v32, 0.0  ;;  %v350_v43 = vmul.f32 %v322_v35, %v286_v33  ;;  %v351_v44 = vmul.f32 %v322_v35, %v287_v34 }
  0x90   : > { %v348_v45 = vmul.f32 %v317_v36, %v284_v37  ;;  %v349_v46 = vmul.f32 %v317_v36, %v285_v38 }
  0x91   : > { %v5958_v47 = vpack.i.bf16 %v427_v42, %v425_v40  ;;  %v5960_v48 = vpack.i.bf16 %v426_v41, %v424_v39  ;;  %v5985_v24 = vpack.c.bf16 %v427_v42, %v425_v40  ;;  %v5987_v25 = vpack.c.bf16 %v426_v41, %v424_v39 }
  0x92   : > { %v386_v49 = vpop.permute.xlu1 %385  ;;  %v381_v50 = vpop.permute.xlu0 %380 }
  0x93   : > { %v5962_v51 = vadd.f32 %v386_v49, %v350_v43  ;;  %v415_v52 = vadd.f32 %v386_v49, %v351_v44  ;;  %v412_v53 = vadd.f32 %v381_v50, %v348_v45  ;;  %v413_v54 = vadd.f32 %v381_v50, %v349_v46  ;;  %5087 = vrot.lane.b32.xlu1 %v5958_v47, %s5818_s18 }
  0x94   : > { %5082 = vrot.lane.b32.xlu0 %v5960_v48, %s5818_s18 }
  0x95   : > { %v430_v55 = vmax.f32 %v5962_v51, 0.0  ;;  %v431_v56 = vmax.f32 %v415_v52, 0.0  ;;  %v428_v57 = vmax.f32 %v412_v53, 0.0  ;;  %v429_v58 = vmax.f32 %v413_v54, 0.0 }
  0x96   : > { %v332_v60 = vpop.permute.xlu1 %331  ;;  %v327_v62 = vpop.permute.xlu0 %326  ;;  %v472_v52 = vlaneseq  ;;  %v5824_v53 = vmov 1966171168  }
  0x97   : > { %v5973_v1 = vpack.i.bf16 %v431_v56, %v429_v58  ;;  %v5975_v3 = vpack.i.bf16 %v430_v55, %v428_v57  ;;  %v354_v4 = vmul.f32 %v332_v60, %v290_v59  ;;  %v355_v5 = vmul.f32 %v332_v60, %v291_v61 }
  0x98   : > { %v352_v6 = vmul.f32 %v327_v62, %v288_v63  ;;  %v353_v7 = vmul.f32 %v327_v62, %v289_v0  ;;  %v5989_v26 = vpack.c.bf16 %v431_v56, %v429_v58  ;;  %v5999_v43 = vpack.c.bf16 %v430_v55, %v428_v57  ;;  %v4501_v57 = vld.sshfl [vmem:[%s7526_s5 + $0x2] sm:$0x11 pattern:$0x75316420] }
  0x99   : > { %5097 = vrot.lane.b32.xlu1 %v5973_v1, %s5818_s18  ;;  %5092 = vrot.lane.b32.xlu0 %v5975_v3, %s5818_s18  ;;  %v510_v54 = vunpack.c.l.s4 %v5824_v53  ;;  %v513_v56 = vshrl.u32 %v472_v52, 7  ;;  %v620_v59 = vcombine.high %v4501_v57, %v4501_v57  ;;  %v6111_v61 = vand.u32 127, %v472_v52 }
  0x9a   : > { %v396_v8 = vpop.permute.xlu1 %395  ;;  %v391_v9 = vpop.permute.xlu0 %390 }
  0x9b   : > { %v418_v10 = vadd.f32 %v396_v8, %v354_v4  ;;  %v419_v11 = vadd.f32 %v396_v8, %v355_v5  ;;  %v416_v12 = vadd.f32 %v391_v9, %v352_v6  ;;  %v417_v13 = vadd.f32 %v391_v9, %v353_v7 }
  0x9c   : > { %v511_v55 = vunpack.c.0.s8 %v510_v54  ;;  %v6114_v63 = vsub.s32 0, %v513_v56  ;;  %vm585_vm0 = vcmp.lt.s32.totalorder %v6111_v61, 16  ;;  %vm474_vm1 = vcmp.lt.s32.totalorder %v6111_v61, 17 }
  0x9d   : > { %v434_v14 = vmax.f32 %v418_v10, 0.0  ;;  %v435_v15 = vmax.f32 %v419_v11, 0.0  ;;  %v432_v16 = vmax.f32 %v416_v12, 0.0  ;;  %v433_v17 = vmax.f32 %v417_v13, 0.0 }
  0x9e   : > { %v342_v19 = vpop.permute.xlu1 %341  ;;  %v337_v21 = vpop.permute.xlu0 %336  ;;  %v6100_v58 = vsub.s32 %v511_v55, %v513_v56  ;;  %vm909_vm3 = vcmp.lt.s32.totalorder %v6111_v61, 15  ;;  %vm1143_vm4 = vcmp.lt.s32.totalorder %v6111_v61, 1  ;;  %vm1515_vm5 = vcmp.lt.s32.totalorder %v6111_v61, 127 }
  0x9f   : > { %v5991_v27 = vpack.i.bf16 %v435_v15, %v433_v17  ;;  %v5993_v28 = vpack.i.bf16 %v434_v14, %v432_v16  ;;  %v358_v29 = vmul.f32 %v342_v19, %v294_v18  ;;  %v359_v30 = vmul.f32 %v342_v19, %v295_v20 }
  0xa0   : > { %v356_v31 = vmul.f32 %v337_v21, %v292_v22  ;;  %v357_v32 = vmul.f32 %v337_v21, %v293_v23  ;;  %v6009_v46 = vpack.c.bf16 %v435_v15, %v433_v17  ;;  %v6011_v49 = vpack.c.bf16 %v434_v14, %v432_v16 }
  0xa1   : > { %5107 = vrot.lane.b32.xlu1 %v5991_v27, %s5818_s18  ;;  %5102 = vrot.lane.b32.xlu0 %v5993_v28, %s5818_s18  ;;  %v634_v60 = vrot.slane %v620_v59, %v6100_v58  ;;  %v627_v62 = vrot.slane %v4501_v57, %v6100_v58  ;;  %vm1749_vm6 = vcmp.lt.s32.totalorder %v6111_v61, 113  ;;  %vm1983_vm7 = vcmp.lt.s32.totalorder %v6111_v61, 112 }
  0xa2   : > { %v406_v33 = vpop.permute.xlu1 %405  ;;  %v401_v34 = vpop.permute.xlu0 %400  ;;  %vm2217_vm8 = vcmp.lt.s32.totalorder %v6111_v61, 111 }
  0xa3   : > { %v422_v35 = vadd.f32 %v406_v33, %v358_v29  ;;  %v423_v36 = vadd.f32 %v406_v33, %v359_v30  ;;  %v420_v37 = vadd.f32 %v401_v34, %v356_v31  ;;  %v421_v38 = vadd.f32 %v401_v34, %v357_v32 }
  0xa4   : > { %v643_v0 = vpack.i.b16 %v634_v60, %v634_v60  ;;  %v636_v8 = vpack.i.b16 %v627_v62, %v627_v62 }
  0xa5   : > { %v438_v39 = vmax.f32 %v422_v35, 0.0  ;;  %v439_v40 = vmax.f32 %v423_v36, 0.0  ;;  %v436_v41 = vmax.f32 %v420_v37, 0.0  ;;  %v437_v42 = vmax.f32 %v421_v38, 0.0 }
  0xa6   : > { %v6122_v11 = vrot.slane %v643_v0, %v6114_v63  ;;  %v6137_v17 = vrot.slane %v636_v8, %v6114_v63 }
  0xa7   : > { %v6001_v44 = vpack.i.bf16 %v439_v40, %v437_v42  ;;  %v6003_v45 = vpack.i.bf16 %v438_v39, %v436_v41  ;;  %v6013_v50 = vpack.c.bf16 %v439_v40, %v437_v42  ;;  %v6015_v51 = vpack.c.bf16 %v438_v39, %v436_v41 }
  0xa9   : > { %5117 = vrot.lane.b32.xlu1 %v6001_v44, %s5818_s18  ;;  %5112 = vrot.lane.b32.xlu0 %v6003_v45, %s5818_s18 }
  0xad   : > { %5127 = vrot.lane.b32.xlu1 %v5958_v47, %s5819_s19  ;;  %5122 = vrot.lane.b32.xlu0 %v5960_v48, %s5819_s19 }
  0xb1   : > { %5137 = vrot.lane.b32.xlu1 %v5973_v1, %s5819_s19  ;;  %5132 = vrot.lane.b32.xlu0 %v5975_v3, %s5819_s19 }
  0xb5   : > { %5147 = vrot.lane.b32.xlu1 %v5991_v27, %s5819_s19  ;;  %5142 = vrot.lane.b32.xlu0 %v5993_v28, %s5819_s19 }
  0xb9   : > { %5157 = vrot.lane.b32.xlu1 %v6001_v44, %s5819_s19  ;;  %5152 = vrot.lane.b32.xlu0 %v6003_v45, %s5819_s19 }
  0xbd   : > { %5167 = vrot.lane.b32.xlu1 %v5958_v47, %s5820_s20  ;;  %5162 = vrot.lane.b32.xlu0 %v5960_v48, %s5820_s20 }
  0xc1   : > { %5177 = vrot.lane.b32.xlu1 %v5973_v1, %s5820_s20  ;;  %5172 = vrot.lane.b32.xlu0 %v5975_v3, %s5820_s20 }
  0xc5   : > { %5187 = vrot.lane.b32.xlu1 %v5991_v27, %s5820_s20  ;;  %5182 = vrot.lane.b32.xlu0 %v5993_v28, %s5820_s20 }
  0xc9   : > { %5197 = vrot.lane.b32.xlu1 %v6001_v44, %s5820_s20  ;;  %5192 = vrot.lane.b32.xlu0 %v6003_v45, %s5820_s20 }
  0xcd   : > { %5207 = vrot.lane.b32.xlu1 %v5958_v47, %s5821_s21  ;;  %5202 = vrot.lane.b32.xlu0 %v5960_v48, %s5821_s21 }
  0xd1   : > { %5217 = vrot.lane.b32.xlu1 %v5973_v1, %s5821_s21  ;;  %5212 = vrot.lane.b32.xlu0 %v5975_v3, %s5821_s21 }
  0xd5   : > { %5227 = vrot.lane.b32.xlu1 %v5991_v27, %s5821_s21  ;;  %5222 = vrot.lane.b32.xlu0 %v5993_v28, %s5821_s21 }
  0xd9   : > { %5237 = vrot.lane.b32.xlu1 %v6001_v44, %s5821_s21  ;;  %5232 = vrot.lane.b32.xlu0 %v6003_v45, %s5821_s21 }
  0xdd   : > { %5247 = vrot.lane.b32.xlu1 %v5958_v47, %s5822_s22  ;;  %5242 = vrot.lane.b32.xlu0 %v5960_v48, %s5822_s22 }
  0xe1   : > { %5257 = vrot.lane.b32.xlu1 %v5973_v1, %s5822_s22  ;;  %5252 = vrot.lane.b32.xlu0 %v5975_v3, %s5822_s22 }
  0xe5   : > { %5267 = vrot.lane.b32.xlu1 %v5991_v27, %s5822_s22  ;;  %5262 = vrot.lane.b32.xlu0 %v5993_v28, %s5822_s22 }
  0xe9   : > { %5277 = vrot.lane.b32.xlu1 %v6001_v44, %s5822_s22  ;;  %5272 = vrot.lane.b32.xlu0 %v6003_v45, %s5822_s22 }
  0xed   : > { %5287 = vrot.lane.b32.xlu1 %v5958_v47, %s5823_s23  ;;  %5282 = vrot.lane.b32.xlu0 %v5960_v48, %s5823_s23 }
  0xf1   : > { %5297 = vrot.lane.b32.xlu1 %v5973_v1, %s5823_s23  ;;  %5292 = vrot.lane.b32.xlu0 %v5975_v3, %s5823_s23 }
  0xf5   : > { %5307 = vrot.lane.b32.xlu1 %v5991_v27, %s5823_s23  ;;  %5302 = vrot.lane.b32.xlu0 %v5993_v28, %s5823_s23 }
  0xf9   : > { %5317 = vrot.lane.b32.xlu1 %v6001_v44, %s5823_s23  ;;  %5312 = vrot.lane.b32.xlu0 %v6003_v45, %s5823_s23 }
  0xfd   : > { %5327 = vrot.lane.b32.xlu1 %v5958_v47, %s5825_s28  ;;  %5322 = vrot.lane.b32.xlu0 %v5960_v48, %s5825_s28 }
 0x101   : > { %5337 = vrot.lane.b32.xlu1 %v5973_v1, %s5825_s28  ;;  %5332 = vrot.lane.b32.xlu0 %v5975_v3, %s5825_s28 }
 0x105   : > { %5347 = vrot.lane.b32.xlu1 %v5991_v27, %s5825_s28  ;;  %v5088_v4 = vpop.permute.xlu1 %5087  ;;  %5342 = vrot.lane.b32.xlu0 %v5993_v28, %s5825_s28 }
 0x106   : > { %v5090_v5 = vunpack.i.h.bf16 %v5088_v4  ;;  %v5089_v6 = vunpack.i.l.bf16 %v5088_v4  ;;  %v5083_v7 = vpop.permute.xlu0 %5082 }
 0x107   : > { %v5085_v9 = vunpack.i.h.bf16 %v5083_v7  ;;  %v5084_v10 = vunpack.i.l.bf16 %v5083_v7 }
 0x109   : > { %5357 = vrot.lane.b32.xlu1 %v6001_v44, %s5825_s28  ;;  %5352 = vrot.lane.b32.xlu0 %v6003_v45, %s5825_s28  ;;  %v586_v12 = vsel %vm585_vm0, %v5084_v10, %v5089_v6  ;;  %v587_v13 = vsel %vm585_vm0, %v5085_v9, %v5090_v5  ;;  %v594_v14 = vsel %vm585_vm0, %v5089_v6, %v5084_v10 }
 0x10a   : > { %v603_v15 = vpack.c.bf16 %v587_v13, %v586_v12  ;;  %v595_v16 = vsel %vm585_vm0, %v5090_v5, %v5085_v9 }
 0x10b   : > { %v602_v18 = vpack.c.bf16 %v595_v16, %v594_v14  ;;  %v5098_v19 = vpop.permute.xlu1 %5097  ;;  %v5093_v20 = vpop.permute.xlu0 %5092 }
 0x10c   : > { %v650_v21 = vmul.bf16 %v6122_v11, %v603_v15  ;;  %v5100_v22 = vunpack.i.h.bf16 %v5098_v19  ;;  %v5099_v23 = vunpack.i.l.bf16 %v5098_v19  ;;  %v5095_v29 = vunpack.i.h.bf16 %v5093_v20 }
 0x10d   : > { %v5094_v30 = vunpack.i.l.bf16 %v5093_v20  ;;  %5367 = vrot.lane.b32.xlu1 %v5958_v47, %s5826_s29  ;;  %5362 = vrot.lane.b32.xlu0 %v5960_v48, %s5826_s29  ;;  %v649_v31 = vmul.bf16 %v6137_v17, %v602_v18  ;;  %v4499_v48 = vld.sshfl [vmem:[%s7526_s5] sm:$0x11 pattern:$0x75316420] }
 0x10e   : > { %699 = vmatprep.subr.bf16.mxu0 %v650_v21  ;;  %v589_v33 = vsel %vm585_vm0, %v5095_v29, %v5100_v22  ;;  %v597_v35 = vsel %vm585_vm0, %v5100_v22, %v5095_v29  ;;  %v508_v41 = vcombine.high %v4499_v48, %v4499_v48 }
 0x10f   : > { %v588_v32 = vsel %vm585_vm0, %v5094_v30, %v5099_v23  ;;  %v596_v34 = vsel %vm585_vm0, %v5099_v23, %v5094_v30  ;;  %700 = vmatpush1.bf16.msra.mxu0 %v649_v31 }
 0x110   : > { %v605_v47 = vpack.c.bf16 %v589_v33, %v588_v32  ;;  %v604_v36 = vpack.c.bf16 %v597_v35, %v596_v34 }
 0x111   : > { %5377 = vrot.lane.b32.xlu1 %v5973_v1, %s5826_s29  ;;  %5372 = vrot.lane.b32.xlu0 %v5975_v3, %s5826_s29 }
 0x112   : > { %v652_v37 = vmul.bf16 %v6122_v11, %v605_v47  ;;  %v651_v38 = vmul.bf16 %v6137_v17, %v604_v36 }
 0x113   : > { %v5108_v39 = vpop.permute.xlu1 %5107  ;;  %v5103_v40 = vpop.permute.xlu0 %5102 }
 0x114   : > { %701 = vmatprep.subr.bf16.mxu0 %v652_v37  ;;  %v5110_v42 = vunpack.i.h.bf16 %v5108_v39  ;;  %v5109_v52 = vunpack.i.l.bf16 %v5108_v39  ;;  %v5105_v53 = vunpack.i.h.bf16 %v5103_v40  ;;  %v5104_v54 = vunpack.i.l.bf16 %v5103_v40 }
 0x115   : > { %702 = vmatpush1.bf16.msra.mxu0 %v651_v38  ;;  %5387 = vrot.lane.b32.xlu1 %v5991_v27, %s5826_s29  ;;  %v522_v27 = vrot.slane %v508_v41, %v6100_v58 }
 0x116   : > { %5382 = vrot.lane.b32.xlu0 %v5993_v28, %s5826_s29  ;;  %v590_v1 = vsel %vm585_vm0, %v5104_v54, %v5109_v52  ;;  %v591_v3 = vsel %vm585_vm0, %v5105_v53, %v5110_v42  ;;  %v598_v55 = vsel %vm585_vm0, %v5109_v52, %v5104_v54  ;;  %v599_v56 = vsel %vm585_vm0, %v5110_v42, %v5105_v53 }
 0x117   : > { %v607_v57 = vpack.c.bf16 %v591_v3, %v590_v1  ;;  %v606_v59 = vpack.c.bf16 %v599_v56, %v598_v55  ;;  %v515_v28 = vrot.slane %v4499_v48, %v6100_v58  ;;  %v5721_v48 = vld [vmem:[%s7524_s3 + $0x20] sm:$0xff]  }
 0x119   : > { %5397 = vrot.lane.b32.xlu1 %v6001_v44, %s5826_s29  ;;  %v654_v60 = vmul.bf16 %v6122_v11, %v607_v57  ;;  %v653_v62 = vmul.bf16 %v6137_v17, %v606_v59  ;;  %v531_v44 = vpack.i.b16 %v522_v27, %v522_v27  ;;  %v524_v9 = vpack.i.b16 %v515_v28, %v515_v28 }
 0x11a   : > { %5392 = vrot.lane.b32.xlu0 %v6003_v45, %s5826_s29 }
 0x11b   : > { %v5118_v0 = vpop.permute.xlu1 %5117  ;;  %v5113_v4 = vpop.permute.xlu0 %5112  ;;  %703 = vmatprep.subr.bf16.mxu0 %v654_v60  ;;  %v6194_v30 = vrot.slane %v531_v44, %v6114_v63  ;;  %v6197_v31 = vrot.slane %v524_v9, %v6114_v63 }
 0x11c   : > { %v5120_v5 = vunpack.i.h.bf16 %v5118_v0  ;;  %v5119_v6 = vunpack.i.l.bf16 %v5118_v0  ;;  %v5115_v7 = vunpack.i.h.bf16 %v5113_v4  ;;  %v5114_v8 = vunpack.i.l.bf16 %v5113_v4  ;;  %704 = vmatpush1.bf16.msra.mxu0 %v653_v62 }
 0x11e   : > { %v592_v10 = vsel %vm585_vm0, %v5114_v8, %v5119_v6  ;;  %v593_v45 = vsel %vm585_vm0, %v5115_v7, %v5120_v5  ;;  %v600_v12 = vsel %vm585_vm0, %v5119_v6, %v5114_v8  ;;  %v601_v13 = vsel %vm585_vm0, %v5120_v5, %v5115_v7 }
 0x11f   : > { %v5128_v14 = vpop.permute.xlu1 %5127  ;;  %v5123_v15 = vpop.permute.xlu0 %5122  ;;  %v609_v16 = vpack.c.bf16 %v593_v45, %v592_v10  ;;  %v608_v18 = vpack.c.bf16 %v601_v13, %v600_v12  ;;  %v5722_v13 = vld [vmem:[%s7524_s3 + $0x28] sm:$0xff]  }
 0x120   : > { %v5130_v19 = vunpack.i.h.bf16 %v5128_v14  ;;  %v5129_v20 = vunpack.i.l.bf16 %v5128_v14  ;;  %v5125_v21 = vunpack.i.h.bf16 %v5123_v15  ;;  %v5124_v22 = vunpack.i.l.bf16 %v5123_v15 }
 0x121   : > { %v656_v23 = vmul.bf16 %v6122_v11, %v609_v16  ;;  %v655_v29 = vmul.bf16 %v6137_v17, %v608_v18  ;;  %v6210_v17 = vld.sshfl [vmem:[%s7526_s5 + $0x4] sm:$0x11 pattern:$0x75316420] }
 0x122   : > { %v484_v32 = vsel %vm474_vm1, %v5130_v19, %v5125_v21  ;;  %v483_v33 = vsel %vm474_vm1, %v5129_v20, %v5124_v22  ;;  %v475_v34 = vsel %vm474_vm1, %v5124_v22, %v5129_v20  ;;  %v476_v11 = vsel %vm474_vm1, %v5125_v21, %v5130_v19 }
 0x123   : > { %v491_v35 = vpack.c.bf16 %v484_v32, %v483_v33  ;;  %v5138_v47 = vpop.permute.xlu1 %5137  ;;  %v5133_v36 = vpop.permute.xlu0 %5132  ;;  %705 = vmatprep.subr.bf16.mxu0 %v656_v23  ;;  %v492_v37 = vpack.c.bf16 %v476_v11, %v475_v34  ;;  %v944_v53 = vcombine.high %v6210_v17, %v6210_v17 }
 0x124   : > { %v5140_v38 = vunpack.i.h.bf16 %v5138_v47  ;;  %v5139_v39 = vunpack.i.l.bf16 %v5138_v47  ;;  %v5135_v40 = vunpack.i.h.bf16 %v5133_v36  ;;  %v5134_v41 = vunpack.i.l.bf16 %v5133_v36  ;;  %706 = vmatpush1.bf16.msra.mxu0 %v655_v29 }
 0x125   : > { %v538_v42 = vmul.bf16 %v6194_v30, %v492_v37  ;;  %v537_v52 = vmul.bf16 %v6197_v31, %v491_v35  ;;  %v958_v6 = vrot.slane %v944_v53, %v6100_v58 }
 0x126   : > { %v486_v54 = vsel %vm474_vm1, %v5140_v38, %v5135_v40  ;;  %v485_v1 = vsel %vm474_vm1, %v5139_v39, %v5134_v41  ;;  %v477_v3 = vsel %vm474_vm1, %v5134_v41, %v5139_v39  ;;  %v478_v55 = vsel %vm474_vm1, %v5135_v40, %v5140_v38 }
 0x127   : > { %v493_v56 = vpack.c.bf16 %v486_v54, %v485_v1  ;;  %v5148_v57 = vpop.permute.xlu1 %5147  ;;  %v5143_v59 = vpop.permute.xlu0 %5142  ;;  %4514 = vmatmul.mubr.msk.bf16.vlgmr.msra.gmra.mrb[0].mxu0 %vm686_vm2, %v5721_v48  ;;  %804 = vmatprep.subr.bf16.mxu0 %v538_v42  ;;  %v494_v27 = vpack.c.bf16 %v478_v55, %v477_v3  ;;  %v967_v22 = vpack.i.b16 %v958_v6, %v958_v6  ;;  %v5723_v1 = vld [vmem:[%s7524_s3 + $0x30] sm:$0xff]  }
 0x128   : > { %v5150_v28 = vunpack.i.h.bf16 %v5148_v57  ;;  %v5149_v60 = vunpack.i.l.bf16 %v5148_v57  ;;  %v5145_v62 = vunpack.i.h.bf16 %v5143_v59  ;;  %v5144_v0 = vunpack.i.l.bf16 %v5143_v59  ;;  %805 = vmatpush1.bf16.msra.mxu0 %v537_v52  ;;  %741 = vmatprep.mubr.bf16.mxu0 %v5817_v2 }
 0x129   : > { %v540_v4 = vmul.bf16 %v6194_v30, %v494_v27  ;;  %v539_v5 = vmul.bf16 %v6197_v31, %v493_v56  ;;  %v6259_v41 = vrot.slane %v967_v22, %v6114_v63  ;;  %v951_v56 = vrot.slane %v6210_v17, %v6100_v58 }
 0x12a   : > { %v488_v7 = vsel %vm474_vm1, %v5150_v28, %v5145_v62  ;;  %v487_v8 = vsel %vm474_vm1, %v5149_v60, %v5144_v0  ;;  %v479_v44 = vsel %vm474_vm1, %v5144_v0, %v5149_v60  ;;  %v480_v9 = vsel %vm474_vm1, %v5145_v62, %v5150_v28  ;;  %v5724_v60 = vld [vmem:[%s7524_s3 + $0x38] sm:$0xff]   ;;  %v6279_v0 = vld.sshfl [vmem:[%s7526_s5 + $0x6] sm:$0x11 pattern:$0x75316420] }
 0x12b   : > { %v495_v10 = vpack.c.bf16 %v488_v7, %v487_v8  ;;  %v5158_v45 = vpop.permute.xlu1 %5157  ;;  %v5153_v12 = vpop.permute.xlu0 %5152  ;;  %806 = vmatprep.subr.bf16.mxu0 %v540_v4  ;;  %v496_v14 = vpack.c.bf16 %v480_v9, %v479_v44  ;;  %v960_v62 = vpack.i.b16 %v951_v56, %v951_v56 }
 0x12c   : > { %v5160_v15 = vunpack.i.h.bf16 %v5158_v45  ;;  %v5159_v16 = vunpack.i.l.bf16 %v5158_v45  ;;  %v5155_v18 = vunpack.i.h.bf16 %v5153_v12  ;;  %v5154_v19 = vunpack.i.l.bf16 %v5153_v12  ;;  %807 = vmatpush1.bf16.msra.mxu0 %v539_v5 }
 0x12d   : > { %v542_v20 = vmul.bf16 %v6194_v30, %v496_v14  ;;  %v541_v21 = vmul.bf16 %v6197_v31, %v495_v10  ;;  %v965_v12 = vrot.slane %v960_v62, %v6114_v63 }
 0x12e   : > { %v490_v23 = vsel %vm474_vm1, %v5160_v15, %v5155_v18  ;;  %v489_v29 = vsel %vm474_vm1, %v5159_v16, %v5154_v19  ;;  %v481_v32 = vsel %vm474_vm1, %v5154_v19, %v5159_v16  ;;  %v482_v33 = vsel %vm474_vm1, %v5155_v18, %v5160_v15 }
 0x12f   : > { %v497_v34 = vpack.c.bf16 %v490_v23, %v489_v29  ;;  %v5168_v11 = vpop.permute.xlu1 %5167  ;;  %v5163_v35 = vpop.permute.xlu0 %5162  ;;  %4515 = vmatmul.mubr.msk.bf16.gmra.mrb[4].mxu0 %vm686_vm2, %v5722_v13  ;;  %808 = vmatprep.subr.bf16.mxu0 %v542_v20  ;;  %v498_v47 = vpack.c.bf16 %v482_v33, %v481_v32  ;;  %v1178_v13 = vcombine.high %v6279_v0, %v6279_v0  ;;  %v5725_v23 = vld [vmem:[%s7524_s3] sm:$0xff]  }
 0x130   : > { %v5170_v36 = vunpack.i.h.bf16 %v5168_v11  ;;  %v5169_v48 = vunpack.i.l.bf16 %v5168_v11  ;;  %v5165_v37 = vunpack.i.h.bf16 %v5163_v35  ;;  %v5164_v38 = vunpack.i.l.bf16 %v5163_v35  ;;  %809 = vmatpush1.bf16.msra.mxu0 %v541_v21  ;;  %751 = vmatprep.mubr.bf16.mxu0 %v5817_v2 }
 0x131   : > { %v544_v39 = vmul.bf16 %v6194_v30, %v498_v47  ;;  %v543_v40 = vmul.bf16 %v6197_v31, %v497_v34  ;;  %v1192_v11 = vrot.slane %v1178_v13, %v6100_v58 }
 0x132   : > { %v910_v42 = vsel %vm909_vm3, %v5164_v38, %v5169_v48  ;;  %v911_v52 = vsel %vm909_vm3, %v5165_v37, %v5170_v36  ;;  %v919_v4 = vsel %vm909_vm3, %v5170_v36, %v5165_v37  ;;  %v918_v17 = vsel %vm909_vm3, %v5169_v48, %v5164_v38 }
 0x133   : > { %v5178_v53 = vpop.permute.xlu1 %5177  ;;  %v5173_v54 = vpop.permute.xlu0 %5172  ;;  %810 = vmatprep.subr.bf16.mxu0 %v544_v39  ;;  %v927_v3 = vpack.c.bf16 %v911_v52, %v910_v42  ;;  %v926_v14 = vpack.c.bf16 %v919_v4, %v918_v17 }
 0x134   : > { %811 = vmatpush1.bf16.msra.mxu0 %v543_v40  ;;  %v5180_v57 = vunpack.i.h.bf16 %v5178_v53  ;;  %v5179_v59 = vunpack.i.l.bf16 %v5178_v53  ;;  %v5175_v27 = vunpack.i.h.bf16 %v5173_v54  ;;  %v5174_v28 = vunpack.i.l.bf16 %v5173_v54 }
 0x135   : > { %v974_v30 = vmul.bf16 %v6259_v41, %v927_v3  ;;  %v973_v36 = vmul.bf16 %v965_v12, %v926_v14 }
 0x136   : > { %v912_v7 = vsel %vm909_vm3, %v5174_v28, %v5179_v59  ;;  %v913_v8 = vsel %vm909_vm3, %v5175_v27, %v5180_v57  ;;  %v921_v15 = vsel %vm909_vm3, %v5180_v57, %v5175_v27  ;;  %v920_v16 = vsel %vm909_vm3, %v5179_v59, %v5174_v28  ;;  %v5726_v57 = vld [vmem:[%s7524_s3 + $0x8] sm:$0xff]  }
 0x137   : > { %4516 = vmatmul.mubr.msk.bf16.gmra.mrb[8].mxu0 %vm686_vm2, %v5723_v1  ;;  %1022 = vmatprep.subr.bf16.mxu0 %v974_v30  ;;  %v5188_v31 = vpop.permute.xlu1 %5187  ;;  %v5183_v55 = vpop.permute.xlu0 %5182  ;;  %v929_v18 = vpack.c.bf16 %v913_v8, %v912_v7  ;;  %v928_v35 = vpack.c.bf16 %v921_v15, %v920_v16  ;;  %v1201_v30 = vpack.i.b16 %v1192_v11, %v1192_v11  ;;  %v5727_v8 = vld [vmem:[%s7524_s3 + $0x10] sm:$0xff]  }
 0x138   : > { %761 = vmatprep.mubr.bf16.mxu0 %v5817_v2  ;;  %v5190_v44 = vunpack.i.h.bf16 %v5188_v31  ;;  %v5189_v9 = vunpack.i.l.bf16 %v5188_v31  ;;  %v5185_v10 = vunpack.i.h.bf16 %v5183_v55  ;;  %v5184_v45 = vunpack.i.l.bf16 %v5183_v55 }
 0x139   : > { %v976_v48 = vmul.bf16 %v6259_v41, %v929_v18  ;;  %v975_v3 = vmul.bf16 %v965_v12, %v928_v35 }
 0x13a   : > { %v914_v29 = vsel %vm909_vm3, %v5184_v45, %v5189_v9  ;;  %v915_v32 = vsel %vm909_vm3, %v5185_v10, %v5190_v44  ;;  %v923_v47 = vsel %vm909_vm3, %v5190_v44, %v5185_v10  ;;  %v922_v37 = vsel %vm909_vm3, %v5189_v9, %v5184_v45 }
 0x13b   : > { %v5198_v5 = vpop.permute.xlu1 %5197  ;;  %v5193_v6 = vpop.permute.xlu0 %5192  ;;  %v931_v38 = vpack.c.bf16 %v915_v32, %v914_v29  ;;  %v930_v1 = vpack.c.bf16 %v923_v47, %v922_v37 }
 0x13c   : > { %v5200_v19 = vunpack.i.h.bf16 %v5198_v5  ;;  %v5199_v20 = vunpack.i.l.bf16 %v5198_v5  ;;  %v5195_v21 = vunpack.i.h.bf16 %v5193_v6  ;;  %v5194_v22 = vunpack.i.l.bf16 %v5193_v6 }
 0x13d   : > { %v978_v56 = vmul.bf16 %v6259_v41, %v931_v38  ;;  %v977_v62 = vmul.bf16 %v965_v12, %v930_v1  ;;  %v6333_v5 = vrot.slane %v1201_v30, %v6114_v63 }
 0x13e   : > { %v916_v39 = vsel %vm909_vm3, %v5194_v22, %v5199_v20  ;;  %v917_v40 = vsel %vm909_vm3, %v5195_v21, %v5200_v19  ;;  %v925_v31 = vsel %vm909_vm3, %v5200_v19, %v5195_v21  ;;  %v924_v55 = vsel %vm909_vm3, %v5199_v20, %v5194_v22 }
 0x13f   : > { %4517 = vmatmul.mubr.msk.bf16.gmra.mrb[12].mxu0 %vm686_vm2, %v5724_v60  ;;  %v5208_v33 = vpop.permute.xlu1 %5207  ;;  %v5203_v34 = vpop.permute.xlu0 %5202  ;;  %v933_v59 = vpack.c.bf16 %v917_v40, %v916_v39  ;;  %v932_v60 = vpack.c.bf16 %v925_v31, %v924_v55 }
 0x140   : > { %836 = vmatprep.mubr.bf16.mxu0 %v5817_v2  ;;  %v5210_v42 = vunpack.i.h.bf16 %v5208_v33  ;;  %v5209_v52 = vunpack.i.l.bf16 %v5208_v33  ;;  %v5205_v53 = vunpack.i.h.bf16 %v5203_v34  ;;  %v5204_v54 = vunpack.i.l.bf16 %v5203_v34 }
 0x141   : > { %v980_v4 = vmul.bf16 %v6259_v41, %v933_v59  ;;  %v979_v6 = vmul.bf16 %v965_v12, %v932_v60  ;;  %v1185_v41 = vrot.slane %v6279_v0, %v6100_v58  ;;  %v5728_v12 = vld [vmem:[%s7524_s3 + $0x18] sm:$0xff]  }
 0x142   : > { %v1144_v27 = vsel %vm1143_vm4, %v5204_v54, %v5209_v52  ;;  %v1145_v28 = vsel %vm1143_vm4, %v5205_v53, %v5210_v42  ;;  %v1153_v18 = vsel %vm1143_vm4, %v5210_v42, %v5205_v53  ;;  %v1152_v19 = vsel %vm1143_vm4, %v5209_v52, %v5204_v54 }
 0x143   : > { %v1161_v17 = vpack.c.bf16 %v1145_v28, %v1144_v27  ;;  %v5218_v44 = vpop.permute.xlu1 %5217  ;;  %v5213_v9 = vpop.permute.xlu0 %5212  ;;  %v1194_v20 = vpack.i.b16 %v1185_v41, %v1185_v41  ;;  %v1160_v11 = vpack.c.bf16 %v1153_v18, %v1152_v19  ;;  %v4579_v41 = vld.sshfl [vmem:[%s7526_s5 + $0xa] sm:$0x11 pattern:$0x75316420] }
 0x144   : > { %v5220_v13 = vunpack.i.h.bf16 %v5218_v44  ;;  %v5219_v14 = vunpack.i.l.bf16 %v5218_v44  ;;  %v5215_v15 = vunpack.i.h.bf16 %v5213_v9  ;;  %v5214_v16 = vunpack.i.l.bf16 %v5213_v9  ;;  %v5731_v9 = vld [vmem:[%s7524_s3 + $0x50] sm:$0xff]   ;;  %v5734_v19 = vld [vmem:[%s7524_s3 + $0x68] sm:$0xff]  }
 0x145   : > { %v1208_v7 = vmul.bf16 %v6333_v5, %v1161_v17  ;;  %v1199_v47 = vrot.slane %v1194_v20, %v6114_v63 }
 0x146   : > { %v1146_v29 = vsel %vm1143_vm4, %v5214_v16, %v5219_v14  ;;  %v1147_v32 = vsel %vm1143_vm4, %v5215_v15, %v5220_v13  ;;  %v1155_v35 = vsel %vm1143_vm4, %v5220_v13, %v5215_v15 }
 0x147   : > { %4522 = vmatmul.mubr.msk.bf16.vlgmr.msra.gmra.mrb[0].mxu0 %vm686_vm2, %v5725_v23  ;;  %v5228_v10 = vpop.permute.xlu1 %5227  ;;  %v5223_v45 = vpop.permute.xlu0 %5222  ;;  %v1163_v37 = vpack.c.bf16 %v1147_v32, %v1146_v29  ;;  %v1207_v1 = vmul.bf16 %v1199_v47, %v1160_v11  ;;  %v1557_v32 = vrot.slane %v4579_v41, %v6100_v58 }
 0x148   : > { %1023 = vmatpush1.bf16.msra.mxu0 %v973_v36  ;;  %846 = vmatprep.mubr.bf16.mxu0 %v5817_v2  ;;  %v5230_v21 = vunpack.i.h.bf16 %v5228_v10  ;;  %v5229_v22 = vunpack.i.l.bf16 %v5228_v10  ;;  %v5225_v0 = vunpack.i.h.bf16 %v5223_v45  ;;  %v5224_v23 = vunpack.i.l.bf16 %v5223_v45 }
 0x149   : > { %1024 = vmatprep.subr.bf16.mxu0 %v976_v48  ;;  %v1154_v36 = vsel %vm1143_vm4, %v5219_v14, %v5214_v16  ;;  %v5729_v48 = vld [vmem:[%s7524_s3 + $0x40] sm:$0xff]   ;;  %v1210_v31 = vmul.bf16 %v6333_v5, %v1163_v37  ;;  %v1550_v10 = vcombine.high %v4579_v41, %v4579_v41 }
 0x14a   : > { %v1148_v38 = vsel %vm1143_vm4, %v5224_v23, %v5229_v22  ;;  %v1149_v39 = vsel %vm1143_vm4, %v5225_v0, %v5230_v21  ;;  %v1162_v54 = vpack.c.bf16 %v1155_v35, %v1154_v36  ;;  %v1156_v30 = vsel %vm1143_vm4, %v5229_v22, %v5224_v23  ;;  %v5736_v35 = vld [vmem:[%s7524_s3 + $0x78] sm:$0xff]  }
 0x14b   : > { %v5238_v33 = vpop.permute.xlu1 %5237  ;;  %v5233_v34 = vpop.permute.xlu0 %5232  ;;  %v1165_v55 = vpack.c.bf16 %v1149_v39, %v1148_v38  ;;  %v1564_v13 = vrot.slane %v1550_v10, %v6100_v58 }
 0x14c   : > { %1025 = vmatpush1.bf16.msra.mxu0 %v975_v3  ;;  %v5240_v40 = vunpack.i.h.bf16 %v5238_v33  ;;  %v5239_v42 = vunpack.i.l.bf16 %v5238_v33  ;;  %v5235_v52 = vunpack.i.h.bf16 %v5233_v34  ;;  %v5234_v53 = vunpack.i.l.bf16 %v5233_v34 }
 0x14d   : > { %1026 = vmatprep.subr.bf16.mxu0 %v978_v56  ;;  %v1157_v3 = vsel %vm1143_vm4, %v5230_v21, %v5225_v0  ;;  %v1209_v27 = vmul.bf16 %v1199_v47, %v1162_v54  ;;  %v1573_v20 = vpack.i.b16 %v1564_v13, %v1564_v13 }
 0x14e   : > { %v1151_v56 = vsel %vm1143_vm4, %v5235_v52, %v5240_v40  ;;  %v1164_v59 = vpack.c.bf16 %v1157_v3, %v1156_v30  ;;  %v1159_v28 = vsel %vm1143_vm4, %v5240_v40, %v5235_v52  ;;  %v1158_v60 = vsel %vm1143_vm4, %v5239_v42, %v5234_v53 }
 0x14f   : > { %4523 = vmatmul.mubr.msk.bf16.gmra.mrb[4].mxu0 %vm686_vm2, %v5726_v57  ;;  %v1150_v57 = vsel %vm1143_vm4, %v5234_v53, %v5239_v42  ;;  %v5248_v45 = vpop.permute.xlu1 %5247 }
 0x150   : > { %1027 = vmatpush1.bf16.msra.mxu0 %v977_v62  ;;  %856 = vmatprep.mubr.bf16.mxu0 %v5817_v2  ;;  %v1212_v62 = vmul.bf16 %v6333_v5, %v1165_v55  ;;  %v1167_v17 = vpack.c.bf16 %v1151_v56, %v1150_v57  ;;  %v5250_v14 = vunpack.i.h.bf16 %v5248_v45  ;;  %v5249_v15 = vunpack.i.l.bf16 %v5248_v45 }
 0x151   : > { %1028 = vmatprep.subr.bf16.mxu0 %v980_v4  ;;  %v5730_v4 = vld [vmem:[%s7524_s3 + $0x48] sm:$0xff]  }
 0x153   : > { %v5258_v0 = vpop.permute.xlu1 %5257 }
 0x154   : > { %1029 = vmatpush1.bf16.msra.mxu0 %v979_v6  ;;  %v1166_v6 = vpack.c.bf16 %v1159_v28, %v1158_v60  ;;  %v5259_v33 = vunpack.i.l.bf16 %v5258_v0  ;;  %v5737_v60 = vld [vmem:[%s7524_s3 + $0x80] sm:$0xff]  }
 0x155   : > { %1256 = vmatprep.subr.bf16.mxu0 %v1208_v7  ;;  %v1211_v7 = vmul.bf16 %v1199_v47, %v1164_v59 }
 0x156   : > { %v1213_v44 = vmul.bf16 %v1199_v47, %v1166_v6  ;;  %v1566_v47 = vpack.i.b16 %v1557_v32, %v1557_v32 }
 0x157   : > { %4524 = vmatmul.mubr.msk.bf16.gmra.mrb[8].mxu0 %vm686_vm2, %v5727_v8  ;;  %v1214_v8 = vmul.bf16 %v6333_v5, %v1167_v17  ;;  %v5732_v5 = vld [vmem:[%s7524_s3 + $0x58] sm:$0xff]  }
 0x158   : > { %866 = vmatprep.mubr.bf16.mxu0 %v5817_v2 }
 0x15f   : > { %4525 = vmatmul.mubr.msk.bf16.gmra.mrb[12].mxu0 %vm686_vm2, %v5728_v12  ;;  %v5243_v12 = vpop.permute.xlu0 %5242 }
 0x160   : > { %1054 = vmatprep.mubr.bf16.mxu0 %v5817_v2  ;;  %v5245_v16 = vunpack.i.h.bf16 %v5243_v12  ;;  %v5244_v18 = vunpack.i.l.bf16 %v5243_v12 }
 0x162   : > { %v1525_v21 = vsel %vm1515_vm5, %v5250_v14, %v5245_v16  ;;  %v1524_v22 = vsel %vm1515_vm5, %v5249_v15, %v5244_v18  ;;  %v1517_v36 = vsel %vm1515_vm5, %v5245_v16, %v5250_v14 }
 0x163   : > { %v5253_v23 = vpop.permute.xlu0 %5252 }
 0x164   : > { %v5255_v34 = vunpack.i.h.bf16 %v5253_v23  ;;  %v5254_v11 = vunpack.i.l.bf16 %v5253_v23 }
 0x166   : > { %v1526_v38 = vsel %vm1515_vm5, %v5259_v33, %v5254_v11  ;;  %v1518_v55 = vsel %vm1515_vm5, %v5254_v11, %v5259_v33 }
 0x167   : > { %4540 = vmatmul.mubr.msk.bf16.vlgmr.msra.gmra.mrb[0].mxu0 %vm686_vm2, %v5729_v48  ;;  %v1516_v48 = vsel %vm1515_vm5, %v5244_v18, %v5249_v15 }
 0x168   : > { %1257 = vmatpush1.bf16.msra.mxu0 %v1207_v1  ;;  %1064 = vmatprep.mubr.bf16.mxu0 %v5817_v2  ;;  %v1571_v1 = vrot.slane %v1566_v47, %v6114_v63  ;;  %v1532_v30 = vpack.c.bf16 %v1517_v36, %v1516_v48  ;;  %v5739_v47 = vld [vmem:[%s7524_s3 + $0x90] sm:$0xff]  }
 0x169   : > { %1258 = vmatprep.subr.bf16.mxu0 %v1210_v31 }
 0x16c   : > { %1259 = vmatpush1.bf16.msra.mxu0 %v1209_v27 }
 0x16d   : > { %1260 = vmatprep.subr.bf16.mxu0 %v1212_v62 }
 0x16f   : > { %4541 = vmatmul.mubr.msk.bf16.gmra.mrb[4].mxu0 %vm686_vm2, %v5730_v4 }
 0x170   : > { %1261 = vmatpush1.bf16.msra.mxu0 %v1211_v7  ;;  %1074 = vmatprep.mubr.bf16.mxu0 %v5817_v2 }
 0x171   : > { %1262 = vmatprep.subr.bf16.mxu0 %v1214_v8 }
 0x174   : > { %1263 = vmatpush1.bf16.msra.mxu0 %v1213_v44 }
 0x175   : > { %1394 = vmatprep.subr.bf16.mxu0 %v5985_v24  ;;  %v5733_v24 = vld [vmem:[%s7524_s3 + $0x60] sm:$0xff]  }
 0x177   : > { %4542 = vmatmul.mubr.msk.bf16.gmra.mrb[8].mxu0 %vm686_vm2, %v5731_v9  ;;  %v1579_v9 = vmul.bf16 %v1571_v1, %v1532_v30 }
 0x178   : > { %1084 = vmatprep.mubr.bf16.mxu0 %v5817_v2 }
 0x17f   : > { %4543 = vmatmul.mubr.msk.bf16.gmra.mrb[12].mxu0 %vm686_vm2, %v5732_v5 }
 0x180   : > { %1288 = vmatprep.mubr.bf16.mxu0 %v5817_v2 }
 0x187   : > { %4558 = vmatmul.mubr.msk.bf16.vlgmr.msra.gmra.mrb[0].mxu0 %vm686_vm2, %v5733_v24 }
 0x188   : > { %1395 = vmatpush1.bf16.msra.mxu0 %v5987_v25  ;;  %1298 = vmatprep.mubr.bf16.mxu0 %v5817_v2  ;;  %v1533_v25 = vpack.c.bf16 %v1525_v21, %v1524_v22 }
 0x189   : > { %1396 = vmatprep.subr.bf16.mxu0 %v5989_v26  ;;  %v6425_v26 = vrot.slane %v1573_v20, %v6114_v63 }
 0x18b   : > { %v1580_v29 = vmul.bf16 %v6425_v26, %v1533_v25  ;;  %v5738_v25 = vld [vmem:[%s7524_s3 + $0x88] sm:$0xff]  }
 0x18c   : > { %1397 = vmatpush1.bf16.msra.mxu0 %v5999_v43  ;;  %v5735_v43 = vld [vmem:[%s7524_s3 + $0x70] sm:$0xff]  }
 0x18d   : > { %1398 = vmatprep.subr.bf16.mxu0 %v6009_v46  ;;  %v5268_v46 = vpop.permute.xlu1 %5267 }
 0x18e   : > { %v5270_v42 = vunpack.i.h.bf16 %v5268_v46  ;;  %v5269_v52 = vunpack.i.l.bf16 %v5268_v46 }
 0x18f   : > { %4559 = vmatmul.mubr.msk.bf16.gmra.mrb[4].mxu0 %vm686_vm2, %v5734_v19 }
 0x190   : > { %1399 = vmatpush1.bf16.msra.mxu0 %v6011_v49  ;;  %1308 = vmatprep.mubr.bf16.mxu0 %v5817_v2  ;;  %v5263_v49 = vpop.permute.xlu0 %5262 }
 0x191   : > { %1400 = vmatprep.subr.bf16.mxu0 %v6013_v50  ;;  %v5260_v50 = vunpack.i.h.bf16 %v5258_v0  ;;  %v5278_v39 = vpop.permute.xlu1 %5277  ;;  %v5265_v53 = vunpack.i.h.bf16 %v5263_v49  ;;  %v5264_v54 = vunpack.i.l.bf16 %v5263_v49 }
 0x192   : > { %v5280_v57 = vunpack.i.h.bf16 %v5278_v39  ;;  %v5279_v59 = vunpack.i.l.bf16 %v5278_v39 }
 0x193   : > { %v1527_v37 = vsel %vm1515_vm5, %v5260_v50, %v5255_v34  ;;  %v1519_v31 = vsel %vm1515_vm5, %v5255_v34, %v5260_v50  ;;  %v1529_v62 = vsel %vm1515_vm5, %v5270_v42, %v5265_v53  ;;  %v1528_v4 = vsel %vm1515_vm5, %v5269_v52, %v5264_v54 }
 0x194   : > { %1401 = vmatpush1.bf16.msra.mxu0 %v6015_v51  ;;  %v6444_v51 = vld.sshfl [vmem:[%s7526_s5 + $0xc] sm:$0x11 pattern:$0x75316420]  ;;  %v5273_v40 = vpop.permute.xlu0 %5272  ;;  %v1535_v56 = vpack.c.bf16 %v1527_v37, %v1526_v38  ;;  %v1534_v8 = vpack.c.bf16 %v1519_v31, %v1518_v55  ;;  %v1521_v44 = vsel %vm1515_vm5, %v5265_v53, %v5270_v42  ;;  %v1520_v41 = vsel %vm1515_vm5, %v5264_v54, %v5269_v52  ;;  %v5740_v42 = vld [vmem:[%s7524_s3 + $0x98] sm:$0xff]  }
 0x195   : > { %1628 = vmatprep.subr.bf16.mxu0 %v1580_v29  ;;  %v1784_v3 = vcombine.high %v6444_v51, %v6444_v51  ;;  %v5275_v27 = vunpack.i.h.bf16 %v5273_v40  ;;  %v5274_v28 = vunpack.i.l.bf16 %v5273_v40  ;;  %v6470_v17 = vpop.permute.xlu1 %5287  ;;  %v1537_v45 = vpack.c.bf16 %v1529_v62, %v1528_v4  ;;  %v6519_v53 = vld.sshfl [vmem:[%s7526_s5 + $0xe] sm:$0x11 pattern:$0x75316420] }
 0x196   : > { %v1582_v5 = vmul.bf16 %v6425_v26, %v1535_v56  ;;  %v5290_v12 = vunpack.i.h.bf16 %v6470_v17  ;;  %v5289_v13 = vunpack.i.l.bf16 %v6470_v17  ;;  %v1536_v16 = vpack.c.bf16 %v1521_v44, %v1520_v41 }
 0x197   : > { %4560 = vmatmul.mubr.msk.bf16.gmra.mrb[8].mxu0 %vm686_vm2, %v5735_v43  ;;  %v1798_v7 = vrot.slane %v1784_v3, %v6100_v58  ;;  %v1531_v24 = vsel %vm1515_vm5, %v5280_v57, %v5275_v27  ;;  %v1530_v10 = vsel %vm1515_vm5, %v5279_v59, %v5274_v28  ;;  %v1581_v18 = vmul.bf16 %v1571_v1, %v1534_v8 }
 0x198   : > { %1318 = vmatprep.mubr.bf16.mxu0 %v5817_v2  ;;  %v5283_v6 = vpop.permute.xlu0 %5282  ;;  %v1523_v20 = vsel %vm1515_vm5, %v5275_v27, %v5280_v57  ;;  %v1522_v21 = vsel %vm1515_vm5, %v5274_v28, %v5279_v59  ;;  %v1584_v22 = vmul.bf16 %v6425_v26, %v1537_v45  ;;  %v1539_v0 = vpack.c.bf16 %v1531_v24, %v1530_v10 }
 0x199   : > { %v5285_v14 = vunpack.i.h.bf16 %v5283_v6  ;;  %v5284_v15 = vunpack.i.l.bf16 %v5283_v6  ;;  %v1807_v19 = vpack.i.b16 %v1798_v7, %v1798_v7  ;;  %v1538_v43 = vpack.c.bf16 %v1523_v20, %v1522_v21  ;;  %v5298_v34 = vpop.permute.xlu1 %5297 }
 0x19a   : > { %v1583_v46 = vmul.bf16 %v1571_v1, %v1536_v16  ;;  %v1586_v49 = vmul.bf16 %v6425_v26, %v1539_v0  ;;  %v1791_v48 = vrot.slane %v6444_v51, %v6100_v58  ;;  %v5300_v37 = vunpack.i.h.bf16 %v5298_v34 }
 0x19b   : > { %v1759_v23 = vsel %vm1749_vm6, %v5290_v12, %v5285_v14  ;;  %v1758_v29 = vsel %vm1749_vm6, %v5289_v13, %v5284_v15  ;;  %v6502_v50 = vrot.slane %v1807_v19, %v6114_v63  ;;  %v1585_v33 = vmul.bf16 %v1571_v1, %v1538_v43 }
 0x19c   : > { %v1767_v32 = vpack.c.bf16 %v1759_v23, %v1758_v29  ;;  %v5293_v11 = vpop.permute.xlu0 %5292  ;;  %v5299_v38 = vunpack.i.l.bf16 %v5298_v34  ;;  %v1800_v52 = vpack.i.b16 %v1791_v48, %v1791_v48  ;;  %v1751_v54 = vsel %vm1749_vm6, %v5285_v14, %v5290_v12 }
 0x19d   : > { %v5308_v26 = vpop.permute.xlu1 %5307  ;;  %v5295_v39 = vunpack.i.h.bf16 %v5293_v11  ;;  %v5294_v40 = vunpack.i.l.bf16 %v5293_v11  ;;  %v1750_v51 = vsel %vm1749_vm6, %v5284_v15, %v5289_v13  ;;  %v2018_v28 = vcombine.high %v6519_v53, %v6519_v53 }
 0x19e   : > { %v5310_v55 = vunpack.i.h.bf16 %v5308_v26  ;;  %v5309_v56 = vunpack.i.l.bf16 %v5308_v26  ;;  %v1805_v27 = vrot.slane %v1800_v52, %v6114_v63  ;;  %v5743_v52 = vld [vmem:[%s7524_s3 + $0xb0] sm:$0xff]  }
 0x19f   : > { %4561 = vmatmul.mubr.msk.bf16.gmra.mrb[12].mxu0 %vm686_vm2, %v5736_v35  ;;  %v1814_v35 = vmul.bf16 %v6502_v50, %v1767_v32  ;;  %v1761_v1 = vsel %vm1749_vm6, %v5300_v37, %v5295_v39  ;;  %v1760_v3 = vsel %vm1749_vm6, %v5299_v38, %v5294_v40  ;;  %v1753_v62 = vsel %vm1749_vm6, %v5295_v39, %v5300_v37 }
 0x1a0   : > { %1426 = vmatprep.mubr.bf16.mxu0 %v5817_v2  ;;  %v5303_v36 = vpop.permute.xlu0 %5302  ;;  %v1752_v4 = vsel %vm1749_vm6, %v5294_v40, %v5299_v38  ;;  %v1769_v17 = vpack.c.bf16 %v1761_v1, %v1760_v3  ;;  %v2032_v45 = vrot.slane %v2018_v28, %v6100_v58 }
 0x1a1   : > { %v5318_v30 = vpop.permute.xlu1 %5317  ;;  %v5305_v57 = vunpack.i.h.bf16 %v5303_v36  ;;  %v5304_v59 = vunpack.i.l.bf16 %v5303_v36  ;;  %v1768_v12 = vpack.c.bf16 %v1753_v62, %v1752_v4 }
 0x1a2   : > { %v5320_v6 = vunpack.i.h.bf16 %v5318_v30  ;;  %v5319_v7 = vunpack.i.l.bf16 %v5318_v30  ;;  %v1816_v15 = vmul.bf16 %v6502_v50, %v1769_v17  ;;  %v2041_v43 = vpack.i.b16 %v2032_v45, %v2032_v45 }
 0x1a3   : > { %v1762_v41 = vsel %vm1749_vm6, %v5309_v56, %v5304_v59  ;;  %v1755_v13 = vsel %vm1749_vm6, %v5305_v57, %v5310_v55  ;;  %v1754_v16 = vsel %vm1749_vm6, %v5304_v59, %v5309_v56  ;;  %v1815_v29 = vmul.bf16 %v1805_v27, %v1768_v12 }
 0x1a4   : > { %v5313_v31 = vpop.permute.xlu0 %5312  ;;  %v1770_v23 = vpack.c.bf16 %v1755_v13, %v1754_v16  ;;  %v6577_v37 = vrot.slane %v2041_v43, %v6114_v63 }
 0x1a5   : > { %v5315_v8 = vunpack.i.h.bf16 %v5313_v31  ;;  %v5314_v44 = vunpack.i.l.bf16 %v5313_v31  ;;  %v6545_v24 = vpop.permute.xlu1 %5327 }
 0x1a6   : > { %v5330_v21 = vunpack.i.h.bf16 %v6545_v24  ;;  %v1817_v26 = vmul.bf16 %v1805_v27, %v1770_v23 }
 0x1a7   : > { %4574 = vmatmul.mubr.msk.bf16.vlgmr.msra.gmra.mrb[0].mxu0 %vm686_vm2, %v5737_v60  ;;  %v1766_v60 = vpack.c.bf16 %v1751_v54, %v1750_v51  ;;  %v1764_v19 = vsel %vm1749_vm6, %v5319_v7, %v5314_v44  ;;  %v2025_v51 = vrot.slane %v6519_v53, %v6100_v58 }
 0x1a8   : > { %1629 = vmatpush1.bf16.msra.mxu0 %v1579_v9  ;;  %1436 = vmatprep.mubr.bf16.mxu0 %v5817_v2  ;;  %v5741_v9 = vld [vmem:[%s7524_s3 + $0xa0] sm:$0xff]   ;;  %v5323_v10 = vpop.permute.xlu0 %5322 }
 0x1a9   : > { %1630 = vmatprep.subr.bf16.mxu0 %v1582_v5  ;;  %v1763_v5 = vsel %vm1749_vm6, %v5310_v55, %v5305_v57  ;;  %v1813_v14 = vmul.bf16 %v1805_v27, %v1766_v60  ;;  %v5324_v0 = vunpack.i.l.bf16 %v5323_v10  ;;  %v5338_v39 = vpop.permute.xlu1 %5337  ;;  %v5744_v55 = vld [vmem:[%s7524_s3 + $0xb8] sm:$0xff]   ;;  %v2034_v56 = vpack.i.b16 %v2025_v51, %v2025_v51  ;;  %v6594_v57 = vld.sshfl [vmem:[%s7526_s5 + $0x10] sm:$0x11 pattern:$0x75316420] }
 0x1aa   : > { %v1771_v20 = vpack.c.bf16 %v1763_v5, %v1762_v41  ;;  %v5340_v1 = vunpack.i.h.bf16 %v5338_v39  ;;  %v5339_v3 = vunpack.i.l.bf16 %v5338_v39 }
 0x1ac   : > { %1631 = vmatpush1.bf16.msra.mxu0 %v1581_v18  ;;  %v1765_v18 = vsel %vm1749_vm6, %v5320_v6, %v5315_v8  ;;  %v1818_v32 = vmul.bf16 %v6502_v50, %v1771_v20  ;;  %v5333_v40 = vpop.permute.xlu0 %5332 }
 0x1ad   : > { %1632 = vmatprep.subr.bf16.mxu0 %v1584_v22  ;;  %v5329_v22 = vunpack.i.l.bf16 %v6545_v24  ;;  %v1773_v34 = vpack.c.bf16 %v1765_v18, %v1764_v19  ;;  %v5335_v30 = vunpack.i.h.bf16 %v5333_v40  ;;  %v5334_v31 = vunpack.i.l.bf16 %v5333_v40 }
 0x1af   : > { %4575 = vmatmul.mubr.msk.bf16.gmra.mrb[4].mxu0 %vm686_vm2, %v5738_v25  ;;  %v5325_v25 = vunpack.i.h.bf16 %v5323_v10  ;;  %v1820_v36 = vmul.bf16 %v6502_v50, %v1773_v34  ;;  %v5348_v50 = vpop.permute.xlu1 %5347  ;;  %v1984_v53 = vsel %vm1983_vm7, %v5324_v0, %v5329_v22  ;;  %v1994_v28 = vsel %vm1983_vm7, %v5339_v3, %v5334_v31 }
 0x1b0   : > { %1633 = vmatpush1.bf16.msra.mxu0 %v1583_v46  ;;  %1446 = vmatprep.mubr.bf16.mxu0 %v5817_v2  ;;  %v1757_v46 = vsel %vm1749_vm6, %v5315_v8, %v5320_v6  ;;  %v5343_v54 = vpop.permute.xlu0 %5342  ;;  %v5350_v4 = vunpack.i.h.bf16 %v5348_v50  ;;  %v5349_v17 = vunpack.i.l.bf16 %v5348_v50  ;;  %v2039_v8 = vrot.slane %v2034_v56, %v6114_v63 }
 0x1b1   : > { %1634 = vmatprep.subr.bf16.mxu0 %v1586_v49  ;;  %v1756_v49 = vsel %vm1749_vm6, %v5314_v44, %v5319_v7  ;;  %v1993_v11 = vsel %vm1983_vm7, %v5330_v21, %v5325_v25  ;;  %v1985_v59 = vsel %vm1983_vm7, %v5325_v25, %v5330_v21  ;;  %v5345_v6 = vunpack.i.h.bf16 %v5343_v54 }
 0x1b2   : > { %v5344_v7 = vunpack.i.l.bf16 %v5343_v54  ;;  %v2252_v44 = vcombine.high %v6594_v57, %v6594_v57  ;;  %v1987_v5 = vsel %vm1983_vm7, %v5335_v30, %v5340_v1  ;;  %v1986_v41 = vsel %vm1983_vm7, %v5334_v31, %v5339_v3  ;;  %v5747_v31 = vld [vmem:[%s7524_s3 + $0xd0] sm:$0xff]  }
 0x1b3   : > { %v5358_v60 = vpop.permute.xlu1 %5357  ;;  %v2002_v21 = vpack.c.bf16 %v1987_v5, %v1986_v41 }
 0x1b4   : > { %1635 = vmatpush1.bf16.msra.mxu0 %v1585_v33  ;;  %v5742_v33 = vld [vmem:[%s7524_s3 + $0xa8] sm:$0xff]   ;;  %v5353_v62 = vpop.permute.xlu0 %5352  ;;  %v5360_v10 = vunpack.i.h.bf16 %v5358_v60  ;;  %v5359_v45 = vunpack.i.l.bf16 %v5358_v60  ;;  %v1996_v16 = vsel %vm1983_vm7, %v5349_v17, %v5344_v7  ;;  %v2266_v20 = vrot.slane %v2252_v44, %v6100_v58 }
 0x1b5   : > { %1862 = vmatprep.subr.bf16.mxu0 %v1814_v35  ;;  %v1992_v35 = vsel %vm1983_vm7, %v5329_v22, %v5324_v0  ;;  %v5355_v12 = vunpack.i.h.bf16 %v5353_v62  ;;  %v5354_v13 = vunpack.i.l.bf16 %v5353_v62  ;;  %v1989_v22 = vsel %vm1983_vm7, %v5345_v6, %v5350_v4 }
 0x1b6   : > { %v2001_v48 = vpack.c.bf16 %v1993_v11, %v1992_v35  ;;  %v1988_v23 = vsel %vm1983_vm7, %v5344_v7, %v5349_v17  ;;  %v2049_v35 = vmul.bf16 %v2039_v8, %v2002_v21 }
 0x1b7   : > { %4576 = vmatmul.mubr.msk.bf16.gmra.mrb[8].mxu0 %vm686_vm2, %v5739_v47  ;;  %v1772_v47 = vpack.c.bf16 %v1757_v46, %v1756_v49  ;;  %v5368_v18 = vpop.permute.xlu1 %5367  ;;  %v1998_v43 = vsel %vm1983_vm7, %v5359_v45, %v5354_v13  ;;  %v2004_v11 = vpack.c.bf16 %v1989_v22, %v1988_v23 }
 0x1b8   : > { %1456 = vmatprep.mubr.bf16.mxu0 %v5817_v2  ;;  %v5363_v19 = vpop.permute.xlu0 %5362  ;;  %v5370_v49 = vunpack.i.h.bf16 %v5368_v18 }
 0x1b9   : > { %v1819_v38 = vmul.bf16 %v1805_v27, %v1772_v47  ;;  %v1995_v27 = vsel %vm1983_vm7, %v5340_v1, %v5335_v30  ;;  %v5364_v34 = vunpack.i.l.bf16 %v5363_v19  ;;  %v2275_v47 = vpack.i.b16 %v2266_v20, %v2266_v20 }
 0x1ba   : > { %v2003_v24 = vpack.c.bf16 %v1995_v27, %v1994_v28  ;;  %v2051_v50 = vmul.bf16 %v2039_v8, %v2004_v11  ;;  %v5748_v27 = vld [vmem:[%s7524_s3 + $0xd8] sm:$0xff]  }
 0x1bb   : > { %v6648_v1 = vrot.slane %v2275_v47, %v6114_v63 }
 0x1bc   : > { %v2050_v0 = vmul.bf16 %v6577_v37, %v2003_v24  ;;  %v5373_v56 = vpop.permute.xlu0 %5372 }
 0x1bd   : > { %v5375_v62 = vunpack.i.h.bf16 %v5373_v56 }
 0x1bf   : > { %4577 = vmatmul.mubr.msk.bf16.gmra.mrb[12].mxu0 %vm686_vm2, %v5740_v42  ;;  %v2048_v42 = vmul.bf16 %v6577_v37, %v2001_v48 }
 0x1c0   : > { %1660 = vmatprep.mubr.bf16.mxu0 %v5817_v2 }
 0x1c7   : > { %4592 = vmatmul.mubr.msk.bf16.vlgmr.msra.gmra.mrb[0].mxu0 %vm686_vm2, %v5741_v9  ;;  %v2000_v9 = vpack.c.bf16 %v1985_v59, %v1984_v53  ;;  %v5383_v53 = vpop.permute.xlu0 %5382 }
 0x1c8   : > { %1863 = vmatpush1.bf16.msra.mxu0 %v1813_v14  ;;  %1670 = vmatprep.mubr.bf16.mxu0 %v5817_v2  ;;  %v5745_v14 = vld [vmem:[%s7524_s3 + $0xc0] sm:$0xff]  }
 0x1c9   : > { %1864 = vmatprep.subr.bf16.mxu0 %v1816_v15  ;;  %v1997_v15 = vsel %vm1983_vm7, %v5350_v4, %v5345_v6  ;;  %v2047_v25 = vmul.bf16 %v2039_v8, %v2000_v9  ;;  %v5374_v4 = vunpack.i.l.bf16 %v5373_v56  ;;  %v5384_v9 = vunpack.i.l.bf16 %v5383_v53 }
 0x1ca   : > { %v2005_v46 = vpack.c.bf16 %v1997_v15, %v1996_v16 }
 0x1cc   : > { %1865 = vmatpush1.bf16.msra.mxu0 %v1815_v29  ;;  %v1999_v29 = vsel %vm1983_vm7, %v5360_v10, %v5355_v12  ;;  %v2052_v48 = vmul.bf16 %v6577_v37, %v2005_v46 }
 0x1cd   : > { %1866 = vmatprep.subr.bf16.mxu0 %v1818_v32  ;;  %v5369_v32 = vunpack.i.l.bf16 %v5368_v18  ;;  %v2007_v39 = vpack.c.bf16 %v1999_v29, %v1998_v43  ;;  %v5749_v18 = vld [vmem:[%s7524_s3 + $0xe0] sm:$0xff]  }
 0x1cf   : > { %4593 = vmatmul.mubr.msk.bf16.gmra.mrb[4].mxu0 %vm686_vm2, %v5742_v33  ;;  %v5365_v33 = vunpack.i.h.bf16 %v5363_v19  ;;  %v2054_v54 = vmul.bf16 %v6577_v37, %v2007_v39  ;;  %v2259_v37 = vrot.slane %v6594_v57, %v6100_v58  ;;  %v2218_v6 = vsel %vm2217_vm8, %v5364_v34, %v5369_v32 }
 0x1d0   : > { %1867 = vmatpush1.bf16.msra.mxu0 %v1817_v26  ;;  %1680 = vmatprep.mubr.bf16.mxu0 %v5817_v2  ;;  %v1991_v26 = vsel %vm1983_vm7, %v5355_v12, %v5360_v10  ;;  %v5385_v57 = vunpack.i.h.bf16 %v5383_v53  ;;  %v5393_v10 = vpop.permute.xlu0 %5392 }
 0x1d1   : > { %1868 = vmatprep.subr.bf16.mxu0 %v1820_v36  ;;  %v1990_v36 = vsel %vm1983_vm7, %v5354_v13, %v5359_v45  ;;  %v2227_v40 = vsel %vm2217_vm8, %v5370_v49, %v5365_v33  ;;  %v2219_v17 = vsel %vm2217_vm8, %v5365_v33, %v5370_v49  ;;  %v2268_v7 = vpack.i.b16 %v2259_v37, %v2259_v37 }
 0x1d2   : > { %v2234_v45 = vpack.c.bf16 %v2219_v17, %v2218_v6  ;;  %v5395_v22 = vunpack.i.h.bf16 %v5393_v10 }
 0x1d3   : > { %v2273_v13 = vrot.slane %v2268_v7, %v6114_v63 }
 0x1d4   : > { %1869 = vmatpush1.bf16.msra.mxu0 %v1819_v38  ;;  %v5746_v38 = vld [vmem:[%s7524_s3 + $0xc8] sm:$0xff]  }
 0x1d5   : > { %2096 = vmatprep.subr.bf16.mxu0 %v2048_v42  ;;  %v2226_v42 = vsel %vm2217_vm8, %v5369_v32, %v5364_v34  ;;  %v2281_v23 = vmul.bf16 %v2273_v13, %v2234_v45 }
 0x1d6   : > { %v2235_v51 = vpack.c.bf16 %v2227_v40, %v2226_v42 }
 0x1d7   : > { %4594 = vmatmul.mubr.msk.bf16.gmra.mrb[8].mxu0 %vm686_vm2, %v5743_v52  ;;  %v2006_v52 = vpack.c.bf16 %v1991_v26, %v1990_v36  ;;  %v5750_v36 = vld [vmem:[%s7524_s3 + $0xe8] sm:$0xff]  }
 0x1d8   : > { %1690 = vmatprep.mubr.bf16.mxu0 %v5817_v2  ;;  %v2282_v30 = vmul.bf16 %v6648_v1, %v2235_v51  ;;  %v5754_v51 = vld [vmem:[%s7524_s3 + $0x108] sm:$0xff]  }
 0x1d9   : > { %v2053_v3 = vmul.bf16 %v2039_v8, %v2006_v52  ;;  %v5751_v52 = vld [vmem:[%s7524_s3 + $0xf0] sm:$0xff]  }
 0x1df   : > { %4595 = vmatmul.mubr.msk.bf16.gmra.mrb[12].mxu0 %vm686_vm2, %v5744_v55  ;;  %v5378_v55 = vpop.permute.xlu1 %5377 }
 0x1e0   : > { %1894 = vmatprep.mubr.bf16.mxu0 %v5817_v2  ;;  %v5380_v28 = vunpack.i.h.bf16 %v5378_v55  ;;  %v5379_v60 = vunpack.i.l.bf16 %v5378_v55 }
 0x1e2   : > { %v2229_v5 = vsel %vm2217_vm8, %v5380_v28, %v5375_v62  ;;  %v2228_v41 = vsel %vm2217_vm8, %v5379_v60, %v5374_v4  ;;  %v2221_v12 = vsel %vm2217_vm8, %v5375_v62, %v5380_v28 }
 0x1e3   : > { %v5388_v59 = vpop.permute.xlu1 %5387  ;;  %v2237_v19 = vpack.c.bf16 %v2229_v5, %v2228_v41 }
 0x1e4   : > { %v5390_v8 = vunpack.i.h.bf16 %v5388_v59  ;;  %v5389_v44 = vunpack.i.l.bf16 %v5388_v59 }
 0x1e5   : > { %v2284_v46 = vmul.bf16 %v6648_v1, %v2237_v19 }
 0x1e6   : > { %v2231_v15 = vsel %vm2217_vm8, %v5390_v8, %v5385_v57  ;;  %v2230_v16 = vsel %vm2217_vm8, %v5389_v44, %v5384_v9  ;;  %v2223_v29 = vsel %vm2217_vm8, %v5385_v57, %v5390_v8  ;;  %v2222_v43 = vsel %vm2217_vm8, %v5384_v9, %v5389_v44 }
 0x1e7   : > { %4610 = vmatmul.mubr.msk.bf16.vlgmr.msra.gmra.mrb[0].mxu0 %vm686_vm2, %v5745_v14  ;;  %v5398_v24 = vpop.permute.xlu1 %5397  ;;  %v2220_v14 = vsel %vm2217_vm8, %v5374_v4, %v5379_v60  ;;  %v2239_v49 = vpack.c.bf16 %v2231_v15, %v2230_v16  ;;  %v2238_v34 = vpack.c.bf16 %v2223_v29, %v2222_v43 }
 0x1e8   : > { %2097 = vmatpush1.bf16.msra.mxu0 %v2047_v25  ;;  %1904 = vmatprep.mubr.bf16.mxu0 %v5817_v2  ;;  %v5400_v20 = vunpack.i.h.bf16 %v5398_v24  ;;  %v5399_v21 = vunpack.i.l.bf16 %v5398_v24  ;;  %v5394_v25 = vunpack.i.l.bf16 %v5393_v10 }
 0x1e9   : > { %2098 = vmatprep.subr.bf16.mxu0 %v2050_v0  ;;  %v2236_v0 = vpack.c.bf16 %v2221_v12, %v2220_v14  ;;  %v2286_v26 = vmul.bf16 %v6648_v1, %v2239_v49  ;;  %v2285_v39 = vmul.bf16 %v2273_v13, %v2238_v34 }
 0x1ea   : > { %v2233_v32 = vsel %vm2217_vm8, %v5400_v20, %v5395_v22  ;;  %v2232_v33 = vsel %vm2217_vm8, %v5399_v21, %v5394_v25  ;;  %v2224_v47 = vsel %vm2217_vm8, %v5394_v25, %v5399_v21 }
 0x1eb   : > { %v2283_v11 = vmul.bf16 %v2273_v13, %v2236_v0 }
 0x1ec   : > { %2099 = vmatpush1.bf16.msra.mxu0 %v2049_v35  ;;  %v2225_v35 = vsel %vm2217_vm8, %v5395_v22, %v5400_v20 }
 0x1ed   : > { %2100 = vmatprep.subr.bf16.mxu0 %v2052_v48  ;;  %v2241_v48 = vpack.c.bf16 %v2233_v32, %v2232_v33 }
 0x1ef   : > { %4611 = vmatmul.mubr.msk.bf16.gmra.mrb[4].mxu0 %vm686_vm2, %v5746_v38  ;;  %v2240_v38 = vpack.c.bf16 %v2225_v35, %v2224_v47  ;;  %v2288_v40 = vmul.bf16 %v6648_v1, %v2241_v48  ;;  %v5755_v1 = vld [vmem:[%s7524_s3 + $0x110] sm:$0xff]  }
 0x1f0   : > { %2101 = vmatpush1.bf16.msra.mxu0 %v2051_v50  ;;  %1914 = vmatprep.mubr.bf16.mxu0 %v5817_v2  ;;  %v5752_v50 = vld [vmem:[%s7524_s3 + $0xf8] sm:$0xff]  }
 0x1f1   : > { %2102 = vmatprep.subr.bf16.mxu0 %v2054_v54  ;;  %v2287_v42 = vmul.bf16 %v2273_v13, %v2240_v38  ;;  %v5753_v54 = vld [vmem:[%s7524_s3 + $0x100] sm:$0xff]  }
 0x1f4   : > { %2103 = vmatpush1.bf16.msra.mxu0 %v2053_v3  ;;  %v5756_v3 = vld [vmem:[%s7524_s3 + $0x118] sm:$0xff]  }
 0x1f5   : > { %2330 = vmatprep.subr.bf16.mxu0 %v2282_v30 }
 0x1f7   : > { %4612 = vmatmul.mubr.msk.bf16.gmra.mrb[8].mxu0 %vm686_vm2, %v5747_v31 }
 0x1f8   : > { %1924 = vmatprep.mubr.bf16.mxu0 %v5817_v2 }
 0x1ff   : > { %4613 = vmatmul.mubr.msk.bf16.gmra.mrb[12].mxu0 %vm686_vm2, %v5748_v27 }
 0x200   : > { %2128 = vmatprep.mubr.bf16.mxu0 %v5817_v2 }
 0x207   : > { %4628 = vmatmul.mubr.msk.bf16.vlgmr.msra.gmra.mrb[0].mxu0 %vm686_vm2, %v5749_v18 }
 0x208   : > { %2331 = vmatpush1.bf16.msra.mxu0 %v2281_v23  ;;  %2138 = vmatprep.mubr.bf16.mxu0 %v5817_v2 }
 0x209   : > { %2332 = vmatprep.subr.bf16.mxu0 %v2284_v46 }
 0x20c   : > { %2333 = vmatpush1.bf16.msra.mxu0 %v2283_v11 }
 0x20d   : > { %2334 = vmatprep.subr.bf16.mxu0 %v2286_v26 }
 0x20f   : > { %4629 = vmatmul.mubr.msk.bf16.gmra.mrb[4].mxu0 %vm686_vm2, %v5750_v36  ;;  %v4652_v36 = vld.sshfl [vmem:[%s7527_s6 + $0x2] sm:$0x11 pattern:$0x75316420] }
 0x210   : > { %2335 = vmatpush1.bf16.msra.mxu0 %v2285_v39  ;;  %2148 = vmatprep.mubr.bf16.mxu0 %v5817_v2  ;;  %v2611_v48 = vcombine.high %v4652_v36, %v4652_v36  ;;  %v2618_v39 = vrot.slane %v4652_v36, %v6100_v58 }
 0x211   : > { %2336 = vmatprep.subr.bf16.mxu0 %v2288_v40 }
 0x212   : > { %v2625_v38 = vrot.slane %v2611_v48, %v6100_v58 }
 0x214   : > { %2337 = vmatpush1.bf16.msra.mxu0 %v2287_v42  ;;  %v2634_v40 = vpack.i.b16 %v2625_v38, %v2625_v38  ;;  %v2627_v42 = vpack.i.b16 %v2618_v39, %v2618_v39 }
 0x217   : > { %4630 = vmatmul.mubr.msk.bf16.gmra.mrb[8].mxu0 %vm686_vm2, %v5751_v52 }
 0x218   : > { %2158 = vmatprep.mubr.bf16.mxu0 %v5817_v2 }
 0x21f   : > { %4631 = vmatmul.mubr.msk.bf16.gmra.mrb[12].mxu0 %vm686_vm2, %v5752_v50 }
 0x220   : > { %2362 = vmatprep.mubr.bf16.mxu0 %v5817_v2 }
 0x227   : > { %4646 = vmatmul.mubr.msk.bf16.vlgmr.msra.gmra.mrb[0].mxu0 %vm686_vm2, %v5753_v54 }
 0x228   : > { %2372 = vmatprep.mubr.bf16.mxu0 %v5817_v2 }
 0x22f   : > { %4647 = vmatmul.mubr.msk.bf16.gmra.mrb[4].mxu0 %vm686_vm2, %v5754_v51 }
 0x230   : > { %2382 = vmatprep.mubr.bf16.mxu0 %v5817_v2 }
 0x237   : > { %4648 = vmatmul.mubr.msk.bf16.gmra.mrb[8].mxu0 %vm686_vm2, %v5755_v1 }
 0x238   : > { %2392 = vmatprep.mubr.bf16.mxu0 %v5817_v2 }
 0x23f   : > { %4649 = vmatmul.mubr.msk.bf16.gmra.mrb[12].mxu0 %vm686_vm2, %v5756_v3 }
 0x2fa   : > { %v2364_v30 = vpop.f32.mrb[0].mxu0 }
 0x2fb   : > { %v2366_v31 = vpop.f32.mrb[1].mxu0  ;;  %v2419_v56 = vmax.f32 %v2364_v30, 0.0  ;;  %v6881_v30 = vrot.slane %v2634_v40, %v6114_v63 }
 0x2fc   : > { %v2368_v55 = vpop.f32.mrb[2].mxu0  ;;  %v2420_v53 = vmax.f32 %v2366_v31, 0.0  ;;  %v6884_v31 = vrot.slane %v2627_v42, %v6114_v63 }
 0x2fd   : > { %v2421_v37 = vmax.f32 %v2368_v55, 0.0  ;;  %v2370_v59 = vpop.f32.mrb[3].mxu0 }
 0x2fe   : > { %v2422_v27 = vmax.f32 %v2370_v59, 0.0 }
 0x2ff   : > { %v6735_v28 = vpack.i.bf16 %v2421_v37, %v2419_v56  ;;  %v6745_v7 = vpack.c.bf16 %v2421_v37, %v2419_v56 }
 0x300   : > { %v6737_v60 = vpack.i.bf16 %v2422_v27, %v2420_v53  ;;  %v6743_v17 = vpack.c.bf16 %v2422_v27, %v2420_v53 }
 0x301   : > { %5402 = vrot.lane.b32.xlu0 %v6735_v28, %s5818_s18 }
 0x302   : > { %5407 = vrot.lane.b32.xlu1 %v6737_v60, %s5818_s18  ;;  %v2374_v62 = vpop.f32.mrb[4].mxu0 }
 0x303   : > { %v2376_v4 = vpop.f32.mrb[5].mxu0  ;;  %v2423_v8 = vmax.f32 %v2374_v62, 0.0 }
 0x304   : > { %v2378_v6 = vpop.f32.mrb[6].mxu0  ;;  %v2424_v9 = vmax.f32 %v2376_v4, 0.0 }
 0x305   : > { %v2425_v44 = vmax.f32 %v2378_v6, 0.0  ;;  %v2380_v57 = vpop.f32.mrb[7].mxu0 }
 0x306   : > { %v2426_v5 = vmax.f32 %v2380_v57, 0.0 }
 0x307   : > { %v6747_v41 = vpack.i.bf16 %v2425_v44, %v2423_v8  ;;  %v6757_v13 = vpack.c.bf16 %v2425_v44, %v2423_v8 }
 0x308   : > { %v6749_v24 = vpack.i.bf16 %v2426_v5, %v2424_v9  ;;  %v6755_v12 = vpack.c.bf16 %v2426_v5, %v2424_v9 }
 0x309   : > { %5412 = vrot.lane.b32.xlu0 %v6747_v41, %s5818_s18 }
 0x30a   : > { %5417 = vrot.lane.b32.xlu1 %v6749_v24, %s5818_s18  ;;  %v2384_v10 = vpop.f32.mrb[8].mxu0 }
 0x30b   : > { %v2386_v45 = vpop.f32.mrb[9].mxu0  ;;  %v2427_v15 = vmax.f32 %v2384_v10, 0.0 }
 0x30c   : > { %v2388_v14 = vpop.f32.mrb[10].mxu0  ;;  %v2428_v19 = vmax.f32 %v2386_v45, 0.0 }
 0x30d   : > { %v2429_v16 = vmax.f32 %v2388_v14, 0.0  ;;  %v2390_v18 = vpop.f32.mrb[11].mxu0 }
 0x30e   : > { %v2430_v20 = vmax.f32 %v2390_v18, 0.0 }
 0x30f   : > { %v6759_v21 = vpack.i.bf16 %v2429_v16, %v2427_v15  ;;  %v6769_v29 = vpack.c.bf16 %v2429_v16, %v2427_v15 }
 0x310   : > { %v6761_v22 = vpack.i.bf16 %v2430_v20, %v2428_v19  ;;  %v6767_v23 = vpack.c.bf16 %v2430_v20, %v2428_v19  ;;  %v4650_v20 = vld.sshfl [vmem:[%s7527_s6] sm:$0x11 pattern:$0x75316420] }
 0x311   : > { %5422 = vrot.lane.b32.xlu0 %v6759_v21, %s5818_s18  ;;  %v2507_v39 = vrot.slane %v4650_v20, %v6100_v58 }
 0x312   : > { %5427 = vrot.lane.b32.xlu1 %v6761_v22, %s5818_s18  ;;  %v2394_v25 = vpop.f32.mrb[12].mxu0 }
 0x313   : > { %v2396_v0 = vpop.f32.mrb[13].mxu0  ;;  %v2431_v46 = vmax.f32 %v2394_v25, 0.0 }
 0x314   : > { %v2398_v43 = vpop.f32.mrb[14].mxu0  ;;  %v2432_v33 = vmax.f32 %v2396_v0, 0.0 }
 0x315   : > { %v2433_v49 = vmax.f32 %v2398_v43, 0.0  ;;  %v2400_v32 = vpop.f32.mrb[15].mxu0 }
 0x316   : > { %v2434_v34 = vmax.f32 %v2400_v32, 0.0 }
 0x317   : > { %v6771_v11 = vpack.i.bf16 %v2433_v49, %v2431_v46  ;;  %v6781_v26 = vpack.c.bf16 %v2433_v49, %v2431_v46 }
 0x318   : > { %v6773_v35 = vpack.i.bf16 %v2434_v34, %v2432_v33  ;;  %v6779_v47 = vpack.c.bf16 %v2434_v34, %v2432_v33 }
 0x319   : > { %5432 = vrot.lane.b32.xlu0 %v6771_v11, %s5818_s18 }
 0x31a   : > { %5437 = vrot.lane.b32.xlu1 %v6773_v35, %s5818_s18 }
 0x31d   : > { %5442 = vrot.lane.b32.xlu0 %v6735_v28, %s5819_s19 }
 0x31e   : > { %5447 = vrot.lane.b32.xlu1 %v6737_v60, %s5819_s19 }
 0x321   : > { %5452 = vrot.lane.b32.xlu0 %v6747_v41, %s5819_s19 }
 0x322   : > { %5457 = vrot.lane.b32.xlu1 %v6749_v24, %s5819_s19 }
 0x325   : > { %5462 = vrot.lane.b32.xlu0 %v6759_v21, %s5819_s19 }
 0x326   : > { %5467 = vrot.lane.b32.xlu1 %v6761_v22, %s5819_s19 }
 0x329   : > { %5472 = vrot.lane.b32.xlu0 %v6771_v11, %s5819_s19 }
 0x32a   : > { %5477 = vrot.lane.b32.xlu1 %v6773_v35, %s5819_s19 }
 0x32d   : > { %5482 = vrot.lane.b32.xlu0 %v6735_v28, %s5820_s20 }
 0x32e   : > { %5487 = vrot.lane.b32.xlu1 %v6737_v60, %s5820_s20 }
 0x331   : > { %5492 = vrot.lane.b32.xlu0 %v6747_v41, %s5820_s20 }
 0x332   : > { %5497 = vrot.lane.b32.xlu1 %v6749_v24, %s5820_s20 }
 0x335   : > { %5502 = vrot.lane.b32.xlu0 %v6759_v21, %s5820_s20 }
 0x336   : > { %5507 = vrot.lane.b32.xlu1 %v6761_v22, %s5820_s20 }
 0x339   : > { %5512 = vrot.lane.b32.xlu0 %v6771_v11, %s5820_s20 }
 0x33a   : > { %5517 = vrot.lane.b32.xlu1 %v6773_v35, %s5820_s20 }
 0x33d   : > { %5522 = vrot.lane.b32.xlu0 %v6735_v28, %s5821_s21 }
 0x33e   : > { %5527 = vrot.lane.b32.xlu1 %v6737_v60, %s5821_s21 }
 0x341   : > { %5532 = vrot.lane.b32.xlu0 %v6747_v41, %s5821_s21 }
 0x342   : > { %5537 = vrot.lane.b32.xlu1 %v6749_v24, %s5821_s21 }
 0x345   : > { %5542 = vrot.lane.b32.xlu0 %v6759_v21, %s5821_s21 }
 0x346   : > { %5547 = vrot.lane.b32.xlu1 %v6761_v22, %s5821_s21 }
 0x349   : > { %5552 = vrot.lane.b32.xlu0 %v6771_v11, %s5821_s21 }
 0x34a   : > { %5557 = vrot.lane.b32.xlu1 %v6773_v35, %s5821_s21 }
 0x34d   : > { %5562 = vrot.lane.b32.xlu0 %v6735_v28, %s5822_s22 }
 0x34e   : > { %5567 = vrot.lane.b32.xlu1 %v6737_v60, %s5822_s22 }
 0x351   : > { %5572 = vrot.lane.b32.xlu0 %v6747_v41, %s5822_s22 }
 0x352   : > { %5577 = vrot.lane.b32.xlu1 %v6749_v24, %s5822_s22 }
 0x355   : > { %5582 = vrot.lane.b32.xlu0 %v6759_v21, %s5822_s22 }
 0x356   : > { %5587 = vrot.lane.b32.xlu1 %v6761_v22, %s5822_s22 }
 0x359   : > { %5592 = vrot.lane.b32.xlu0 %v6771_v11, %s5822_s22 }
 0x35a   : > { %5597 = vrot.lane.b32.xlu1 %v6773_v35, %s5822_s22 }
 0x35d   : > { %5602 = vrot.lane.b32.xlu0 %v6735_v28, %s5823_s23 }
 0x35e   : > { %5607 = vrot.lane.b32.xlu1 %v6737_v60, %s5823_s23 }
 0x361   : > { %5612 = vrot.lane.b32.xlu0 %v6747_v41, %s5823_s23 }
 0x362   : > { %5617 = vrot.lane.b32.xlu1 %v6749_v24, %s5823_s23 }
 0x365   : > { %5622 = vrot.lane.b32.xlu0 %v6759_v21, %s5823_s23 }
 0x366   : > { %5627 = vrot.lane.b32.xlu1 %v6761_v22, %s5823_s23 }
 0x369   : > { %5632 = vrot.lane.b32.xlu0 %v6771_v11, %s5823_s23 }
 0x36a   : > { %5637 = vrot.lane.b32.xlu1 %v6773_v35, %s5823_s23 }
 0x36d   : > { %5642 = vrot.lane.b32.xlu0 %v6735_v28, %s5825_s28 }
 0x36e   : > { %5647 = vrot.lane.b32.xlu1 %v6737_v60, %s5825_s28 }
 0x371   : > { %5652 = vrot.lane.b32.xlu0 %v6747_v41, %s5825_s28 }
 0x372   : > { %5657 = vrot.lane.b32.xlu1 %v6749_v24, %s5825_s28 }
 0x373   : > { %v5403_v52 = vpop.permute.xlu0 %5402 }
 0x374   : > { %v5405_v50 = vunpack.i.h.bf16 %v5403_v52  ;;  %v5404_v54 = vunpack.i.l.bf16 %v5403_v52  ;;  %v5408_v51 = vpop.permute.xlu1 %5407 }
 0x375   : > { %v5410_v1 = vunpack.i.h.bf16 %v5408_v51  ;;  %v5409_v3 = vunpack.i.l.bf16 %v5408_v51  ;;  %5662 = vrot.lane.b32.xlu0 %v6759_v21, %s5825_s28 }
 0x376   : > { %5667 = vrot.lane.b32.xlu1 %v6761_v22, %s5825_s28 }
 0x377   : > { %v2577_v55 = vsel %vm585_vm0, %v5404_v54, %v5409_v3  ;;  %v2578_v56 = vsel %vm585_vm0, %v5405_v50, %v5410_v1  ;;  %v2585_v37 = vsel %vm585_vm0, %v5409_v3, %v5404_v54  ;;  %v2586_v59 = vsel %vm585_vm0, %v5410_v1, %v5405_v50 }
 0x378   : > { %v2594_v53 = vpack.c.bf16 %v2578_v56, %v2577_v55  ;;  %v2593_v27 = vpack.c.bf16 %v2586_v59, %v2585_v37  ;;  %v2516_v1 = vpack.i.b16 %v2507_v39, %v2507_v39 }
 0x379   : > { %5672 = vrot.lane.b32.xlu0 %v6771_v11, %s5825_s28 }
 0x37a   : > { %5677 = vrot.lane.b32.xlu1 %v6773_v35, %s5825_s28  ;;  %v2641_v62 = vmul.bf16 %v6881_v30, %v2594_v53  ;;  %v2640_v4 = vmul.bf16 %v6884_v31, %v2593_v27 }
 0x37b   : > { %v5413_v6 = vpop.permute.xlu0 %5412 }
 0x37c   : > { %v5415_v8 = vunpack.i.h.bf16 %v5413_v6  ;;  %v5414_v44 = vunpack.i.l.bf16 %v5413_v6  ;;  %2689 = vmatprep.subr.bf16.mxu1 %v2641_v62  ;;  %v5418_v57 = vpop.permute.xlu1 %5417 }
 0x37d   : > { %v5420_v9 = vunpack.i.h.bf16 %v5418_v57  ;;  %v5419_v5 = vunpack.i.l.bf16 %v5418_v57  ;;  %2690 = vmatpush1.bf16.msra.mxu1 %v2640_v4  ;;  %5682 = vrot.lane.b32.xlu0 %v6735_v28, %s5826_s29 }
 0x37e   : > { %5687 = vrot.lane.b32.xlu1 %v6737_v60, %s5826_s29 }
 0x37f   : > { %v2580_v10 = vsel %vm585_vm0, %v5415_v8, %v5420_v9  ;;  %v2588_v45 = vsel %vm585_vm0, %v5420_v9, %v5415_v8  ;;  %v2579_v14 = vsel %vm585_vm0, %v5414_v44, %v5419_v5  ;;  %v2587_v15 = vsel %vm585_vm0, %v5419_v5, %v5414_v44 }
 0x380   : > { %v2596_v16 = vpack.c.bf16 %v2580_v10, %v2579_v14  ;;  %v2595_v18 = vpack.c.bf16 %v2588_v45, %v2587_v15  ;;  %v6955_v5 = vrot.slane %v2516_v1, %v6114_v63 }
 0x381   : > { %5692 = vrot.lane.b32.xlu0 %v6747_v41, %s5826_s29  ;;  %v2500_v41 = vcombine.high %v4650_v20, %v4650_v20 }
 0x382   : > { %5697 = vrot.lane.b32.xlu1 %v6749_v24, %s5826_s29  ;;  %v2643_v28 = vmul.bf16 %v6881_v30, %v2596_v16  ;;  %v2642_v60 = vmul.bf16 %v6884_v31, %v2595_v18 }
 0x383   : > { %v5423_v19 = vpop.permute.xlu0 %5422  ;;  %v2514_v38 = vrot.slane %v2500_v41, %v6100_v58 }
 0x384   : > { %v5425_v25 = vunpack.i.h.bf16 %v5423_v19  ;;  %v5424_v0 = vunpack.i.l.bf16 %v5423_v19  ;;  %2691 = vmatprep.subr.bf16.mxu1 %v2643_v28  ;;  %v5428_v43 = vpop.permute.xlu1 %5427  ;;  %v5757_v19 = vld [vmem:[%s7525_s4 + $0x20] sm:$0xff]  }
 0x385   : > { %v5430_v46 = vunpack.i.h.bf16 %v5428_v43  ;;  %v5429_v49 = vunpack.i.l.bf16 %v5428_v43  ;;  %2692 = vmatpush1.bf16.msra.mxu1 %v2642_v60  ;;  %5702 = vrot.lane.b32.xlu0 %v6759_v21, %s5826_s29 }
 0x386   : > { %5707 = vrot.lane.b32.xlu1 %v6761_v22, %s5826_s29 }
 0x387   : > { %v2582_v24 = vsel %vm585_vm0, %v5425_v25, %v5430_v46  ;;  %v2590_v32 = vsel %vm585_vm0, %v5430_v46, %v5425_v25  ;;  %v2581_v33 = vsel %vm585_vm0, %v5424_v0, %v5429_v49  ;;  %v2589_v34 = vsel %vm585_vm0, %v5429_v49, %v5424_v0 }
 0x388   : > { %v2598_v36 = vpack.c.bf16 %v2582_v24, %v2581_v33  ;;  %v2597_v48 = vpack.c.bf16 %v2590_v32, %v2589_v34 }
 0x389   : > { %5712 = vrot.lane.b32.xlu0 %v6771_v11, %s5826_s29  ;;  %v2523_v11 = vpack.i.b16 %v2514_v38, %v2514_v38 }
 0x38a   : > { %5717 = vrot.lane.b32.xlu1 %v6773_v35, %s5826_s29  ;;  %v2645_v21 = vmul.bf16 %v6881_v30, %v2598_v36  ;;  %v2644_v22 = vmul.bf16 %v6884_v31, %v2597_v48 }
 0x38b   : > { %v5433_v40 = vpop.permute.xlu0 %5432  ;;  %v6952_v9 = vrot.slane %v2523_v11, %v6114_v63 }
 0x38c   : > { %v5435_v42 = vunpack.i.h.bf16 %v5433_v40  ;;  %v5434_v52 = vunpack.i.l.bf16 %v5433_v40  ;;  %2693 = vmatprep.subr.bf16.mxu1 %v2645_v21  ;;  %v5438_v50 = vpop.permute.xlu1 %5437 }
 0x38d   : > { %v5440_v54 = vunpack.i.h.bf16 %v5438_v50  ;;  %v5439_v51 = vunpack.i.l.bf16 %v5438_v50  ;;  %2694 = vmatpush1.bf16.msra.mxu1 %v2644_v22 }
 0x38f   : > { %v2584_v35 = vsel %vm585_vm0, %v5435_v42, %v5440_v54  ;;  %v2592_v3 = vsel %vm585_vm0, %v5440_v54, %v5435_v42  ;;  %v2583_v55 = vsel %vm585_vm0, %v5434_v52, %v5439_v51  ;;  %v2591_v56 = vsel %vm585_vm0, %v5439_v51, %v5434_v52  ;;  %v5443_v37 = vpop.permute.xlu0 %5442 }
 0x390   : > { %v5445_v59 = vunpack.i.h.bf16 %v5443_v37  ;;  %v5444_v53 = vunpack.i.l.bf16 %v5443_v37  ;;  %v5448_v27 = vpop.permute.xlu1 %5447  ;;  %v2600_v62 = vpack.c.bf16 %v2584_v35, %v2583_v55  ;;  %v2599_v4 = vpack.c.bf16 %v2592_v3, %v2591_v56 }
 0x391   : > { %v5450_v6 = vunpack.i.h.bf16 %v5448_v27  ;;  %v5449_v8 = vunpack.i.l.bf16 %v5448_v27 }
 0x392   : > { %v2647_v44 = vmul.bf16 %v6881_v30, %v2600_v62  ;;  %v2646_v57 = vmul.bf16 %v6884_v31, %v2599_v4  ;;  %v6968_v31 = vld.sshfl [vmem:[%s7527_s6 + $0x4] sm:$0x11 pattern:$0x75316420] }
 0x393   : > { %v2468_v10 = vsel %vm474_vm1, %v5445_v59, %v5450_v6  ;;  %v2476_v45 = vsel %vm474_vm1, %v5450_v6, %v5445_v59  ;;  %v2467_v14 = vsel %vm474_vm1, %v5444_v53, %v5449_v8  ;;  %v2475_v30 = vsel %vm474_vm1, %v5449_v8, %v5444_v53  ;;  %v5453_v15 = vpop.permute.xlu0 %5452  ;;  %v5758_v59 = vld [vmem:[%s7525_s4 + $0x28] sm:$0xff]  }
 0x394   : > { %v2483_v16 = vpack.c.bf16 %v2476_v45, %v2475_v30  ;;  %v5455_v18 = vunpack.i.h.bf16 %v5453_v15  ;;  %v5454_v28 = vunpack.i.l.bf16 %v5453_v15  ;;  %v5458_v60 = vpop.permute.xlu1 %5457  ;;  %2695 = vmatprep.subr.bf16.mxu1 %v2647_v44  ;;  %v2484_v20 = vpack.c.bf16 %v2468_v10, %v2467_v14 }
 0x395   : > { %v5460_v25 = vunpack.i.h.bf16 %v5458_v60  ;;  %v5459_v0 = vunpack.i.l.bf16 %v5458_v60  ;;  %2696 = vmatpush1.bf16.msra.mxu1 %v2646_v57  ;;  %v2933_v49 = vcombine.high %v6968_v31, %v6968_v31 }
 0x396   : > { %v2530_v43 = vmul.bf16 %v6952_v9, %v2484_v20  ;;  %v2529_v46 = vmul.bf16 %v6955_v5, %v2483_v16 }
 0x397   : > { %v2470_v41 = vsel %vm474_vm1, %v5455_v18, %v5460_v25  ;;  %v2478_v24 = vsel %vm474_vm1, %v5460_v25, %v5455_v18  ;;  %v2469_v32 = vsel %vm474_vm1, %v5454_v28, %v5459_v0  ;;  %v2477_v33 = vsel %vm474_vm1, %v5459_v0, %v5454_v28  ;;  %v5463_v34 = vpop.permute.xlu0 %5462 }
 0x398   : > { %v2485_v36 = vpack.c.bf16 %v2478_v24, %v2477_v33  ;;  %v5465_v48 = vunpack.i.h.bf16 %v5463_v34  ;;  %v5464_v21 = vunpack.i.l.bf16 %v5463_v34  ;;  %v5468_v22 = vpop.permute.xlu1 %5467  ;;  %4665 = vmatmul.mubr.msk.bf16.vlgmr.msra.gmra.mrb[0].mxu1 %vm686_vm2, %v5757_v19  ;;  %2794 = vmatprep.subr.bf16.mxu1 %v2530_v43  ;;  %v2486_v38 = vpack.c.bf16 %v2470_v41, %v2469_v32  ;;  %v5759_v24 = vld [vmem:[%s7525_s4 + $0x30] sm:$0xff]  }
 0x399   : > { %v5470_v39 = vunpack.i.h.bf16 %v5468_v22  ;;  %v5469_v40 = vunpack.i.l.bf16 %v5468_v22  ;;  %2795 = vmatpush1.bf16.msra.mxu1 %v2529_v46  ;;  %2731 = vmatprep.mubr.bf16.mxu1 %v5817_v2  ;;  %v2947_v50 = vrot.slane %v2933_v49, %v6100_v58  ;;  %v2940_v34 = vrot.slane %v6968_v31, %v6100_v58 }
 0x39a   : > { %v2532_v42 = vmul.bf16 %v6952_v9, %v2486_v38  ;;  %v2531_v52 = vmul.bf16 %v6955_v5, %v2485_v36  ;;  %v5760_v38 = vld [vmem:[%s7525_s4 + $0x38] sm:$0xff]  }
 0x39b   : > { %v2472_v54 = vsel %vm474_vm1, %v5465_v48, %v5470_v39  ;;  %v2480_v51 = vsel %vm474_vm1, %v5470_v39, %v5465_v48  ;;  %v2471_v11 = vsel %vm474_vm1, %v5464_v21, %v5469_v40  ;;  %v2479_v1 = vsel %vm474_vm1, %v5469_v40, %v5464_v21  ;;  %v5473_v35 = vpop.permute.xlu0 %5472  ;;  %v7036_v40 = vld.sshfl [vmem:[%s7527_s6 + $0x6] sm:$0x11 pattern:$0x75316420] }
 0x39c   : > { %v2487_v3 = vpack.c.bf16 %v2480_v51, %v2479_v1  ;;  %v5475_v55 = vunpack.i.h.bf16 %v5473_v35  ;;  %v5474_v56 = vunpack.i.l.bf16 %v5473_v35  ;;  %v5478_v37 = vpop.permute.xlu1 %5477  ;;  %2796 = vmatprep.subr.bf16.mxu1 %v2532_v42  ;;  %v2488_v53 = vpack.c.bf16 %v2472_v54, %v2471_v11 }
 0x39d   : > { %v5480_v27 = vunpack.i.h.bf16 %v5478_v37  ;;  %v5479_v62 = vunpack.i.l.bf16 %v5478_v37  ;;  %2797 = vmatpush1.bf16.msra.mxu1 %v2531_v52  ;;  %v2956_v8 = vpack.i.b16 %v2947_v50, %v2947_v50  ;;  %v2949_v39 = vpack.i.b16 %v2940_v34, %v2940_v34 }
 0x39e   : > { %v2534_v4 = vmul.bf16 %v6952_v9, %v2488_v53  ;;  %v2533_v6 = vmul.bf16 %v6955_v5, %v2487_v3 }
 0x39f   : > { %v2474_v44 = vsel %vm474_vm1, %v5475_v55, %v5480_v27  ;;  %v2482_v57 = vsel %vm474_vm1, %v5480_v27, %v5475_v55  ;;  %v2473_v10 = vsel %vm474_vm1, %v5474_v56, %v5479_v62  ;;  %v2481_v45 = vsel %vm474_vm1, %v5479_v62, %v5474_v56  ;;  %v5483_v14 = vpop.permute.xlu0 %5482 }
 0x3a0   : > { %v2489_v30 = vpack.c.bf16 %v2482_v57, %v2481_v45  ;;  %v5485_v15 = vunpack.i.h.bf16 %v5483_v14  ;;  %v5484_v16 = vunpack.i.l.bf16 %v5483_v14  ;;  %v5488_v18 = vpop.permute.xlu1 %5487  ;;  %4666 = vmatmul.mubr.msk.bf16.gmra.mrb[4].mxu1 %vm686_vm2, %v5758_v59  ;;  %2798 = vmatprep.subr.bf16.mxu1 %v2534_v4  ;;  %v2490_v28 = vpack.c.bf16 %v2474_v44, %v2473_v10  ;;  %v5761_v44 = vld [vmem:[%s7525_s4] sm:$0xff]  }
 0x3a1   : > { %v5490_v60 = vunpack.i.h.bf16 %v5488_v18  ;;  %v5489_v19 = vunpack.i.l.bf16 %v5488_v18  ;;  %2799 = vmatpush1.bf16.msra.mxu1 %v2533_v6  ;;  %2741 = vmatprep.mubr.bf16.mxu1 %v5817_v2  ;;  %v7016_v0 = vrot.slane %v2956_v8, %v6114_v63  ;;  %v2954_v55 = vrot.slane %v2949_v39, %v6114_v63 }
 0x3a2   : > { %v2536_v20 = vmul.bf16 %v6952_v9, %v2490_v28  ;;  %v2535_v25 = vmul.bf16 %v6955_v5, %v2489_v30  ;;  %v3166_v56 = vcombine.high %v7036_v40, %v7036_v40 }
 0x3a3   : > { %v2900_v43 = vsel %vm909_vm3, %v5485_v15, %v5490_v60  ;;  %v2899_v46 = vsel %vm909_vm3, %v5484_v16, %v5489_v19  ;;  %v5493_v49 = vpop.permute.xlu0 %5492  ;;  %v2908_v42 = vsel %vm909_vm3, %v5490_v60, %v5485_v15  ;;  %v2907_v31 = vsel %vm909_vm3, %v5489_v19, %v5484_v16 }
 0x3a4   : > { %v5498_v41 = vpop.permute.xlu1 %5497  ;;  %2800 = vmatprep.subr.bf16.mxu1 %v2536_v20  ;;  %v2916_v32 = vpack.c.bf16 %v2900_v43, %v2899_v46  ;;  %v5495_v36 = vunpack.i.h.bf16 %v5493_v49  ;;  %v5494_v48 = vunpack.i.l.bf16 %v5493_v49  ;;  %v2915_v37 = vpack.c.bf16 %v2908_v42, %v2907_v31 }
 0x3a5   : > { %2801 = vmatpush1.bf16.msra.mxu1 %v2535_v25  ;;  %v5500_v21 = vunpack.i.h.bf16 %v5498_v41  ;;  %v5499_v22 = vunpack.i.l.bf16 %v5498_v41  ;;  %v3180_v30 = vrot.slane %v3166_v56, %v6100_v58 }
 0x3a6   : > { %v2963_v9 = vmul.bf16 %v7016_v0, %v2916_v32  ;;  %v2962_v18 = vmul.bf16 %v2954_v55, %v2915_v37 }
 0x3a7   : > { %v5503_v5 = vpop.permute.xlu0 %5502  ;;  %v2902_v52 = vsel %vm909_vm3, %v5495_v36, %v5500_v21  ;;  %v2901_v50 = vsel %vm909_vm3, %v5494_v48, %v5499_v22  ;;  %v2910_v59 = vsel %vm909_vm3, %v5500_v21, %v5495_v36  ;;  %v2909_v53 = vsel %vm909_vm3, %v5499_v22, %v5494_v48  ;;  %v5762_v36 = vld [vmem:[%s7525_s4 + $0x8] sm:$0xff]  }
 0x3a8   : > { %4667 = vmatmul.mubr.msk.bf16.gmra.mrb[8].mxu1 %vm686_vm2, %v5759_v24  ;;  %3011 = vmatprep.subr.bf16.mxu1 %v2963_v9  ;;  %v5508_v33 = vpop.permute.xlu1 %5507  ;;  %v5505_v11 = vunpack.i.h.bf16 %v5503_v5  ;;  %v5504_v1 = vunpack.i.l.bf16 %v5503_v5  ;;  %v2918_v27 = vpack.c.bf16 %v2902_v52, %v2901_v50  ;;  %v2917_v15 = vpack.c.bf16 %v2910_v59, %v2909_v53 }
 0x3a9   : > { %2751 = vmatprep.mubr.bf16.mxu1 %v5817_v2  ;;  %v5510_v35 = vunpack.i.h.bf16 %v5508_v33  ;;  %v5509_v3 = vunpack.i.l.bf16 %v5508_v33  ;;  %v3189_v9 = vpack.i.b16 %v3180_v30, %v3180_v30 }
 0x3aa   : > { %v2965_v28 = vmul.bf16 %v7016_v0, %v2918_v27  ;;  %v2964_v32 = vmul.bf16 %v2954_v55, %v2917_v15 }
 0x3ab   : > { %v5513_v54 = vpop.permute.xlu0 %5512  ;;  %v2904_v57 = vsel %vm909_vm3, %v5505_v11, %v5510_v35  ;;  %v2903_v10 = vsel %vm909_vm3, %v5504_v1, %v5509_v3  ;;  %v2912_v16 = vsel %vm909_vm3, %v5510_v35, %v5505_v11  ;;  %v2911_v60 = vsel %vm909_vm3, %v5509_v3, %v5504_v1 }
 0x3ac   : > { %v5518_v51 = vpop.permute.xlu1 %5517  ;;  %v5515_v62 = vunpack.i.h.bf16 %v5513_v54  ;;  %v5514_v4 = vunpack.i.l.bf16 %v5513_v54  ;;  %v2920_v25 = vpack.c.bf16 %v2904_v57, %v2903_v10  ;;  %v2919_v24 = vpack.c.bf16 %v2912_v16, %v2911_v60 }
 0x3ad   : > { %v5520_v6 = vunpack.i.h.bf16 %v5518_v51  ;;  %v5519_v8 = vunpack.i.l.bf16 %v5518_v51  ;;  %v7089_v52 = vrot.slane %v3189_v9, %v6114_v63  ;;  %v5763_v51 = vld [vmem:[%s7525_s4 + $0x10] sm:$0xff]  }
 0x3ae   : > { %v2967_v34 = vmul.bf16 %v7016_v0, %v2920_v25  ;;  %v2966_v39 = vmul.bf16 %v2954_v55, %v2919_v24 }
 0x3af   : > { %v5523_v45 = vpop.permute.xlu0 %5522  ;;  %v2906_v19 = vsel %vm909_vm3, %v5515_v62, %v5520_v6  ;;  %v2905_v20 = vsel %vm909_vm3, %v5514_v4, %v5519_v8  ;;  %v2914_v5 = vsel %vm909_vm3, %v5520_v6, %v5515_v62  ;;  %v2913_v33 = vsel %vm909_vm3, %v5519_v8, %v5514_v4 }
 0x3b0   : > { %4668 = vmatmul.mubr.msk.bf16.gmra.mrb[12].mxu1 %vm686_vm2, %v5760_v38  ;;  %v5528_v14 = vpop.permute.xlu1 %5527  ;;  %v5525_v43 = vunpack.i.h.bf16 %v5523_v45  ;;  %v5524_v46 = vunpack.i.l.bf16 %v5523_v45  ;;  %v2922_v48 = vpack.c.bf16 %v2906_v19, %v2905_v20  ;;  %v2921_v38 = vpack.c.bf16 %v2914_v5, %v2913_v33  ;;  %v5765_v19 = vld [vmem:[%s7525_s4 + $0x40] sm:$0xff]  }
 0x3b1   : > { %2826 = vmatprep.mubr.bf16.mxu1 %v5817_v2  ;;  %v5530_v49 = vunpack.i.h.bf16 %v5528_v14  ;;  %v5529_v41 = vunpack.i.l.bf16 %v5528_v14 }
 0x3b2   : > { %v2969_v42 = vmul.bf16 %v7016_v0, %v2922_v48  ;;  %v2968_v50 = vmul.bf16 %v2954_v55, %v2921_v38  ;;  %v3173_v0 = vrot.slane %v7036_v40, %v6100_v58  ;;  %v5764_v55 = vld [vmem:[%s7525_s4 + $0x18] sm:$0xff]  }
 0x3b3   : > { %v3133_v21 = vsel %vm1143_vm4, %v5525_v43, %v5530_v49  ;;  %v3132_v22 = vsel %vm1143_vm4, %v5524_v46, %v5529_v41  ;;  %v5533_v11 = vpop.permute.xlu0 %5532  ;;  %v3141_v27 = vsel %vm1143_vm4, %v5530_v49, %v5525_v43  ;;  %v3140_v62 = vsel %vm1143_vm4, %v5529_v41, %v5524_v46 }
 0x3b4   : > { %v3149_v31 = vpack.c.bf16 %v3133_v21, %v3132_v22  ;;  %v5538_v1 = vpop.permute.xlu1 %5537  ;;  %v5535_v56 = vunpack.i.h.bf16 %v5533_v11  ;;  %v5534_v37 = vunpack.i.l.bf16 %v5533_v11  ;;  %v3182_v4 = vpack.i.b16 %v3173_v0, %v3173_v0  ;;  %v4730_v0 = vld.sshfl [vmem:[%s7527_s6 + $0xa] sm:$0x11 pattern:$0x75316420] }
 0x3b5   : > { %v5540_v59 = vunpack.i.h.bf16 %v5538_v1  ;;  %v5539_v53 = vunpack.i.l.bf16 %v5538_v1  ;;  %v3148_v30 = vpack.c.bf16 %v3141_v27, %v3140_v62  ;;  %v5767_v1 = vld [vmem:[%s7525_s4 + $0x50] sm:$0xff]   ;;  %v5770_v62 = vld [vmem:[%s7525_s4 + $0x68] sm:$0xff]  }
 0x3b6   : > { %v3196_v54 = vmul.bf16 %v7089_v52, %v3149_v31  ;;  %v3187_v16 = vrot.slane %v3182_v4, %v6114_v63 }
 0x3b7   : > { %v5543_v35 = vpop.permute.xlu0 %5542  ;;  %v3135_v57 = vsel %vm1143_vm4, %v5535_v56, %v5540_v59  ;;  %v3134_v10 = vsel %vm1143_vm4, %v5534_v37, %v5539_v53  ;;  %v3143_v15 = vsel %vm1143_vm4, %v5540_v59, %v5535_v56 }
 0x3b8   : > { %4673 = vmatmul.mubr.msk.bf16.vlgmr.msra.gmra.mrb[0].mxu1 %vm686_vm2, %v5761_v44  ;;  %v5548_v3 = vpop.permute.xlu1 %5547  ;;  %v5545_v6 = vunpack.i.h.bf16 %v5543_v35  ;;  %v5544_v8 = vunpack.i.l.bf16 %v5543_v35  ;;  %v3151_v20 = vpack.c.bf16 %v3135_v57, %v3134_v10  ;;  %v3195_v24 = vmul.bf16 %v3187_v16, %v3148_v30 }
 0x3b9   : > { %3012 = vmatpush1.bf16.msra.mxu1 %v2962_v18  ;;  %2836 = vmatprep.mubr.bf16.mxu1 %v5817_v2  ;;  %v5550_v40 = vunpack.i.h.bf16 %v5548_v3  ;;  %v5549_v44 = vunpack.i.l.bf16 %v5548_v3  ;;  %v3142_v18 = vsel %vm1143_vm4, %v5539_v53, %v5534_v37  ;;  %v3537_v35 = vcombine.high %v4730_v0, %v4730_v0 }
 0x3ba   : > { %3013 = vmatprep.subr.bf16.mxu1 %v2965_v28  ;;  %v3150_v41 = vpack.c.bf16 %v3143_v15, %v3142_v18  ;;  %v3198_v5 = vmul.bf16 %v7089_v52, %v3151_v20  ;;  %v3544_v10 = vrot.slane %v4730_v0, %v6100_v58  ;;  %v5772_v15 = vld [vmem:[%s7525_s4 + $0x78] sm:$0xff]  }
 0x3bb   : > { %v5553_v45 = vpop.permute.xlu0 %5552  ;;  %v3137_v28 = vsel %vm1143_vm4, %v5545_v6, %v5550_v40  ;;  %v3136_v60 = vsel %vm1143_vm4, %v5544_v8, %v5549_v44  ;;  %v3144_v9 = vsel %vm1143_vm4, %v5549_v44, %v5544_v8  ;;  %v3551_v56 = vrot.slane %v3537_v35, %v6100_v58 }
 0x3bc   : > { %v5558_v14 = vpop.permute.xlu1 %5557  ;;  %v5555_v25 = vunpack.i.h.bf16 %v5553_v45  ;;  %v5554_v43 = vunpack.i.l.bf16 %v5553_v45  ;;  %v3153_v33 = vpack.c.bf16 %v3137_v28, %v3136_v60  ;;  %v3197_v21 = vmul.bf16 %v3187_v16, %v3150_v41 }
 0x3bd   : > { %3014 = vmatpush1.bf16.msra.mxu1 %v2964_v32  ;;  %v5560_v46 = vunpack.i.h.bf16 %v5558_v14  ;;  %v5559_v49 = vunpack.i.l.bf16 %v5558_v14  ;;  %v3145_v32 = vsel %vm1143_vm4, %v5550_v40, %v5545_v6  ;;  %v3560_v4 = vpack.i.b16 %v3551_v56, %v3551_v56 }
 0x3be   : > { %3015 = vmatprep.subr.bf16.mxu1 %v2967_v34  ;;  %v3152_v48 = vpack.c.bf16 %v3145_v32, %v3144_v9 }
 0x3bf   : > { %v3139_v34 = vsel %vm1143_vm4, %v5555_v25, %v5560_v46  ;;  %v3147_v22 = vsel %vm1143_vm4, %v5560_v46, %v5555_v25  ;;  %v3146_v38 = vsel %vm1143_vm4, %v5559_v49, %v5554_v43  ;;  %v5563_v3 = vpop.permute.xlu0 %5562 }
 0x3c0   : > { %4674 = vmatmul.mubr.msk.bf16.gmra.mrb[4].mxu1 %vm686_vm2, %v5762_v36  ;;  %v3138_v36 = vsel %vm1143_vm4, %v5554_v43, %v5559_v49  ;;  %v5565_v37 = vunpack.i.h.bf16 %v5563_v3  ;;  %v5564_v59 = vunpack.i.l.bf16 %v5563_v3 }
 0x3c1   : > { %3016 = vmatpush1.bf16.msra.mxu1 %v2966_v39  ;;  %2846 = vmatprep.mubr.bf16.mxu1 %v5817_v2  ;;  %v3200_v39 = vmul.bf16 %v7089_v52, %v3153_v33  ;;  %v3155_v31 = vpack.c.bf16 %v3139_v34, %v3138_v36 }
 0x3c2   : > { %3017 = vmatprep.subr.bf16.mxu1 %v2969_v42  ;;  %v5766_v42 = vld [vmem:[%s7525_s4 + $0x48] sm:$0xff]  }
 0x3c3   : > { %v5573_v40 = vpop.permute.xlu0 %5572 }
 0x3c4   : > { %v5574_v45 = vunpack.i.l.bf16 %v5573_v40 }
 0x3c5   : > { %3018 = vmatpush1.bf16.msra.mxu1 %v2968_v50  ;;  %v3154_v50 = vpack.c.bf16 %v3147_v22, %v3146_v38  ;;  %v5773_v38 = vld [vmem:[%s7525_s4 + $0x80] sm:$0xff]  }
 0x3c6   : > { %3244 = vmatprep.subr.bf16.mxu1 %v3196_v54  ;;  %v3199_v54 = vmul.bf16 %v3187_v16, %v3152_v48 }
 0x3c7   : > { %v3201_v11 = vmul.bf16 %v3187_v16, %v3154_v50  ;;  %v3553_v16 = vpack.i.b16 %v3544_v10, %v3544_v10 }
 0x3c8   : > { %4675 = vmatmul.mubr.msk.bf16.gmra.mrb[8].mxu1 %vm686_vm2, %v5763_v51  ;;  %v3202_v51 = vmul.bf16 %v7089_v52, %v3155_v31  ;;  %v5768_v52 = vld [vmem:[%s7525_s4 + $0x58] sm:$0xff]  }
 0x3c9   : > { %2856 = vmatprep.mubr.bf16.mxu1 %v5817_v2 }
 0x3d0   : > { %4676 = vmatmul.mubr.msk.bf16.gmra.mrb[12].mxu1 %vm686_vm2, %v5764_v55  ;;  %v5568_v55 = vpop.permute.xlu1 %5567 }
 0x3d1   : > { %3043 = vmatprep.mubr.bf16.mxu1 %v5817_v2  ;;  %v5570_v53 = vunpack.i.h.bf16 %v5568_v55  ;;  %v5569_v27 = vunpack.i.l.bf16 %v5568_v55 }
 0x3d3   : > { %v3512_v6 = vsel %vm1515_vm5, %v5570_v53, %v5565_v37  ;;  %v3511_v8 = vsel %vm1515_vm5, %v5569_v27, %v5564_v59  ;;  %v3504_v18 = vsel %vm1515_vm5, %v5565_v37, %v5570_v53  ;;  %v3503_v28 = vsel %vm1515_vm5, %v5564_v59, %v5569_v27 }
 0x3d4   : > { %v5578_v44 = vpop.permute.xlu1 %5577  ;;  %v3519_v9 = vpack.c.bf16 %v3504_v18, %v3503_v28 }
 0x3d5   : > { %v5580_v14 = vunpack.i.h.bf16 %v5578_v44  ;;  %v5579_v30 = vunpack.i.l.bf16 %v5578_v44 }
 0x3d7   : > { %v3505_v33 = vsel %vm1515_vm5, %v5574_v45, %v5579_v30 }
 0x3d8   : > { %4691 = vmatmul.mubr.msk.bf16.vlgmr.msra.gmra.mrb[0].mxu1 %vm686_vm2, %v5765_v19  ;;  %v3513_v19 = vsel %vm1515_vm5, %v5579_v30, %v5574_v45 }
 0x3d9   : > { %3245 = vmatpush1.bf16.msra.mxu1 %v3195_v24  ;;  %3053 = vmatprep.mubr.bf16.mxu1 %v5817_v2  ;;  %v3558_v24 = vrot.slane %v3553_v16, %v6114_v63  ;;  %v5775_v16 = vld [vmem:[%s7525_s4 + $0x90] sm:$0xff]  }
 0x3da   : > { %3246 = vmatprep.subr.bf16.mxu1 %v3198_v5 }
 0x3dd   : > { %3247 = vmatpush1.bf16.msra.mxu1 %v3197_v21 }
 0x3de   : > { %3248 = vmatprep.subr.bf16.mxu1 %v3200_v39 }
 0x3e0   : > { %4692 = vmatmul.mubr.msk.bf16.gmra.mrb[4].mxu1 %vm686_vm2, %v5766_v42 }
 0x3e1   : > { %3249 = vmatpush1.bf16.msra.mxu1 %v3199_v54  ;;  %3063 = vmatprep.mubr.bf16.mxu1 %v5817_v2 }
 0x3e2   : > { %3250 = vmatprep.subr.bf16.mxu1 %v3202_v51 }
 0x3e5   : > { %3251 = vmatpush1.bf16.msra.mxu1 %v3201_v11 }
 0x3e6   : > { %3382 = vmatprep.subr.bf16.mxu1 %v6743_v17  ;;  %v5769_v17 = vld [vmem:[%s7525_s4 + $0x60] sm:$0xff]  }
 0x3e8   : > { %4693 = vmatmul.mubr.msk.bf16.gmra.mrb[8].mxu1 %vm686_vm2, %v5767_v1  ;;  %v3566_v1 = vmul.bf16 %v3558_v24, %v3519_v9 }
 0x3e9   : > { %3073 = vmatprep.mubr.bf16.mxu1 %v5817_v2 }
 0x3f0   : > { %4694 = vmatmul.mubr.msk.bf16.gmra.mrb[12].mxu1 %vm686_vm2, %v5768_v52 }
 0x3f1   : > { %3276 = vmatprep.mubr.bf16.mxu1 %v5817_v2 }
 0x3f8   : > { %4709 = vmatmul.mubr.msk.bf16.vlgmr.msra.gmra.mrb[0].mxu1 %vm686_vm2, %v5769_v17 }
 0x3f9   : > { %3383 = vmatpush1.bf16.msra.mxu1 %v6745_v7  ;;  %3286 = vmatprep.mubr.bf16.mxu1 %v5817_v2  ;;  %v3520_v7 = vpack.c.bf16 %v3512_v6, %v3511_v8 }
 0x3fa   : > { %3384 = vmatprep.subr.bf16.mxu1 %v6755_v12  ;;  %v7180_v12 = vrot.slane %v3560_v4, %v6114_v63 }
 0x3fc   : > { %v3567_v57 = vmul.bf16 %v7180_v12, %v3520_v7  ;;  %v5774_v7 = vld [vmem:[%s7525_s4 + $0x88] sm:$0xff]  }
 0x3fd   : > { %3385 = vmatpush1.bf16.msra.mxu1 %v6757_v13  ;;  %v5771_v13 = vld [vmem:[%s7525_s4 + $0x70] sm:$0xff]  }
 0x3fe   : > { %3386 = vmatprep.subr.bf16.mxu1 %v6767_v23  ;;  %v5583_v23 = vpop.permute.xlu0 %5582 }
 0x3ff   : > { %v5585_v43 = vunpack.i.h.bf16 %v5583_v23  ;;  %v5584_v46 = vunpack.i.l.bf16 %v5583_v23 }
 0x400   : > { %4710 = vmatmul.mubr.msk.bf16.gmra.mrb[4].mxu1 %vm686_vm2, %v5770_v62 }
 0x401   : > { %3387 = vmatpush1.bf16.msra.mxu1 %v6769_v29  ;;  %3296 = vmatprep.mubr.bf16.mxu1 %v5817_v2  ;;  %v5588_v29 = vpop.permute.xlu1 %5587 }
 0x402   : > { %3388 = vmatprep.subr.bf16.mxu1 %v6779_v47  ;;  %v5575_v47 = vunpack.i.h.bf16 %v5573_v40  ;;  %v5593_v20 = vpop.permute.xlu0 %5592  ;;  %v5590_v49 = vunpack.i.h.bf16 %v5588_v29  ;;  %v5589_v41 = vunpack.i.l.bf16 %v5588_v29 }
 0x403   : > { %v5595_v36 = vunpack.i.h.bf16 %v5593_v20  ;;  %v5594_v48 = vunpack.i.l.bf16 %v5593_v20 }
 0x404   : > { %v3514_v60 = vsel %vm1515_vm5, %v5580_v14, %v5575_v47  ;;  %v3506_v5 = vsel %vm1515_vm5, %v5575_v47, %v5580_v14  ;;  %v3516_v39 = vsel %vm1515_vm5, %v5590_v49, %v5585_v43  ;;  %v3515_v42 = vsel %vm1515_vm5, %v5589_v41, %v5584_v46 }
 0x405   : > { %3389 = vmatpush1.bf16.msra.mxu1 %v6781_v26  ;;  %v7199_v26 = vld.sshfl [vmem:[%s7527_s6 + $0xc] sm:$0x11 pattern:$0x75316420]  ;;  %v5598_v25 = vpop.permute.xlu1 %5597  ;;  %v3522_v34 = vpack.c.bf16 %v3514_v60, %v3513_v19  ;;  %v3521_v51 = vpack.c.bf16 %v3506_v5, %v3505_v33  ;;  %v3508_v11 = vsel %vm1515_vm5, %v5585_v43, %v5590_v49  ;;  %v3507_v0 = vsel %vm1515_vm5, %v5584_v46, %v5589_v41  ;;  %v5776_v43 = vld [vmem:[%s7525_s4 + $0x98] sm:$0xff]  }
 0x406   : > { %3615 = vmatprep.subr.bf16.mxu1 %v3567_v57  ;;  %v3770_v32 = vcombine.high %v7199_v26, %v7199_v26  ;;  %v5600_v21 = vunpack.i.h.bf16 %v5598_v25  ;;  %v5599_v22 = vunpack.i.l.bf16 %v5598_v25  ;;  %v5603_v31 = vpop.permute.xlu0 %5602  ;;  %v3524_v3 = vpack.c.bf16 %v3516_v39, %v3515_v42  ;;  %v7269_v49 = vld.sshfl [vmem:[%s7527_s6 + $0xe] sm:$0x11 pattern:$0x75316420] }
 0x407   : > { %v3569_v52 = vmul.bf16 %v7180_v12, %v3522_v34  ;;  %v5605_v55 = vunpack.i.h.bf16 %v5603_v31  ;;  %v5604_v56 = vunpack.i.l.bf16 %v5603_v31  ;;  %v3523_v53 = vpack.c.bf16 %v3508_v11, %v3507_v0 }
 0x408   : > { %4711 = vmatmul.mubr.msk.bf16.gmra.mrb[8].mxu1 %vm686_vm2, %v5771_v13  ;;  %v3784_v54 = vrot.slane %v3770_v32, %v6100_v58  ;;  %v3518_v17 = vsel %vm1515_vm5, %v5600_v21, %v5595_v36  ;;  %v3517_v35 = vsel %vm1515_vm5, %v5599_v22, %v5594_v48  ;;  %v3568_v27 = vmul.bf16 %v3558_v24, %v3521_v51 }
 0x409   : > { %3306 = vmatprep.mubr.bf16.mxu1 %v5817_v2  ;;  %v5608_v50 = vpop.permute.xlu1 %5607  ;;  %v3510_v4 = vsel %vm1515_vm5, %v5595_v36, %v5600_v21  ;;  %v3509_v6 = vsel %vm1515_vm5, %v5594_v48, %v5599_v22  ;;  %v3571_v8 = vmul.bf16 %v7180_v12, %v3524_v3  ;;  %v3526_v40 = vpack.c.bf16 %v3518_v17, %v3517_v35 }
 0x40a   : > { %v5610_v37 = vunpack.i.h.bf16 %v5608_v50  ;;  %v5609_v59 = vunpack.i.l.bf16 %v5608_v50  ;;  %v3793_v62 = vpack.i.b16 %v3784_v54, %v3784_v54  ;;  %v3525_v13 = vpack.c.bf16 %v3510_v4, %v3509_v6  ;;  %v5613_v14 = vpop.permute.xlu0 %5612 }
 0x40b   : > { %v3570_v23 = vmul.bf16 %v3558_v24, %v3523_v53  ;;  %v3573_v29 = vmul.bf16 %v7180_v12, %v3526_v40  ;;  %v3777_v28 = vrot.slane %v7199_v26, %v6100_v58  ;;  %v5615_v60 = vunpack.i.h.bf16 %v5613_v14 }
 0x40c   : > { %v3745_v44 = vsel %vm1749_vm6, %v5610_v37, %v5605_v55  ;;  %v3744_v57 = vsel %vm1749_vm6, %v5609_v59, %v5604_v56  ;;  %v7252_v47 = vrot.slane %v3793_v62, %v6114_v63  ;;  %v3572_v45 = vmul.bf16 %v3558_v24, %v3525_v13 }
 0x40d   : > { %v3753_v10 = vpack.c.bf16 %v3745_v44, %v3744_v57  ;;  %v5618_v30 = vpop.permute.xlu1 %5617  ;;  %v5614_v19 = vunpack.i.l.bf16 %v5613_v14  ;;  %v3786_v46 = vpack.i.b16 %v3777_v28, %v3777_v28  ;;  %v3737_v41 = vsel %vm1749_vm6, %v5605_v55, %v5610_v37 }
 0x40e   : > { %v5623_v12 = vpop.permute.xlu0 %5622  ;;  %v5620_v20 = vunpack.i.h.bf16 %v5618_v30  ;;  %v5619_v25 = vunpack.i.l.bf16 %v5618_v30  ;;  %v3736_v26 = vsel %vm1749_vm6, %v5604_v56, %v5609_v59  ;;  %v4003_v22 = vcombine.high %v7269_v49, %v7269_v49 }
 0x40f   : > { %v5625_v33 = vunpack.i.h.bf16 %v5623_v12  ;;  %v5624_v34 = vunpack.i.l.bf16 %v5623_v12  ;;  %v3791_v21 = vrot.slane %v3786_v46, %v6114_v63  ;;  %v5779_v46 = vld [vmem:[%s7525_s4 + $0xb0] sm:$0xff]  }
 0x410   : > { %4712 = vmatmul.mubr.msk.bf16.gmra.mrb[12].mxu1 %vm686_vm2, %v5772_v15  ;;  %v3800_v15 = vmul.bf16 %v7252_v47, %v3753_v10  ;;  %v3747_v24 = vsel %vm1749_vm6, %v5620_v20, %v5615_v60  ;;  %v3746_v32 = vsel %vm1749_vm6, %v5619_v25, %v5614_v19  ;;  %v3739_v39 = vsel %vm1749_vm6, %v5615_v60, %v5620_v20 }
 0x411   : > { %3414 = vmatprep.mubr.bf16.mxu1 %v5817_v2  ;;  %v5628_v18 = vpop.permute.xlu1 %5627  ;;  %v3738_v42 = vsel %vm1749_vm6, %v5614_v19, %v5619_v25  ;;  %v3755_v31 = vpack.c.bf16 %v3747_v24, %v3746_v32  ;;  %v4017_v3 = vrot.slane %v4003_v22, %v6100_v58 }
 0x412   : > { %v5633_v9 = vpop.permute.xlu0 %5632  ;;  %v5630_v36 = vunpack.i.h.bf16 %v5628_v18  ;;  %v5629_v48 = vunpack.i.l.bf16 %v5628_v18  ;;  %v3754_v55 = vpack.c.bf16 %v3739_v39, %v3738_v42 }
 0x413   : > { %v5635_v50 = vunpack.i.h.bf16 %v5633_v9  ;;  %v5634_v54 = vunpack.i.l.bf16 %v5633_v9  ;;  %v3802_v59 = vmul.bf16 %v7252_v47, %v3755_v31  ;;  %v4026_v13 = vpack.i.b16 %v4017_v3, %v4017_v3 }
 0x414   : > { %v3748_v0 = vsel %vm1749_vm6, %v5629_v48, %v5624_v34  ;;  %v3741_v56 = vsel %vm1749_vm6, %v5625_v33, %v5630_v36  ;;  %v3740_v53 = vsel %vm1749_vm6, %v5624_v34, %v5629_v48  ;;  %v3801_v57 = vmul.bf16 %v3791_v21, %v3754_v55 }
 0x415   : > { %v5638_v5 = vpop.permute.xlu1 %5637  ;;  %v3756_v44 = vpack.c.bf16 %v3741_v56, %v3740_v53  ;;  %v7322_v60 = vrot.slane %v4026_v13, %v6114_v63 }
 0x416   : > { %v5640_v51 = vunpack.i.h.bf16 %v5638_v5  ;;  %v5639_v11 = vunpack.i.l.bf16 %v5638_v5  ;;  %v5643_v17 = vpop.permute.xlu0 %5642 }
 0x417   : > { %v5645_v6 = vunpack.i.h.bf16 %v5643_v17  ;;  %v3803_v12 = vmul.bf16 %v3791_v21, %v3756_v44 }
 0x418   : > { %4725 = vmatmul.mubr.msk.bf16.vlgmr.msra.gmra.mrb[0].mxu1 %vm686_vm2, %v5773_v38  ;;  %v3752_v38 = vpack.c.bf16 %v3737_v41, %v3736_v26  ;;  %v3750_v62 = vsel %vm1749_vm6, %v5639_v11, %v5634_v54  ;;  %v4010_v26 = vrot.slane %v7269_v49, %v6100_v58 }
 0x419   : > { %3616 = vmatpush1.bf16.msra.mxu1 %v3566_v1  ;;  %3424 = vmatprep.mubr.bf16.mxu1 %v5817_v2  ;;  %v5777_v1 = vld [vmem:[%s7525_s4 + $0xa0] sm:$0xff]   ;;  %v5648_v35 = vpop.permute.xlu1 %5647 }
 0x41a   : > { %3617 = vmatprep.subr.bf16.mxu1 %v3569_v52  ;;  %v3749_v52 = vsel %vm1749_vm6, %v5630_v36, %v5625_v33  ;;  %v3799_v37 = vmul.bf16 %v3791_v21, %v3752_v38  ;;  %v5649_v40 = vunpack.i.l.bf16 %v5648_v35  ;;  %v5653_v20 = vpop.permute.xlu0 %5652  ;;  %v5780_v33 = vld [vmem:[%s7525_s4 + $0xb8] sm:$0xff]   ;;  %v4019_v34 = vpack.i.b16 %v4010_v26, %v4010_v26  ;;  %v7339_v36 = vld.sshfl [vmem:[%s7527_s6 + $0x10] sm:$0x11 pattern:$0x75316420] }
 0x41b   : > { %v3757_v4 = vpack.c.bf16 %v3749_v52, %v3748_v0  ;;  %v5655_v24 = vunpack.i.h.bf16 %v5653_v20  ;;  %v5654_v32 = vunpack.i.l.bf16 %v5653_v20 }
 0x41d   : > { %3618 = vmatpush1.bf16.msra.mxu1 %v3568_v27  ;;  %v3751_v27 = vsel %vm1749_vm6, %v5640_v51, %v5635_v50  ;;  %v3804_v10 = vmul.bf16 %v7252_v47, %v3757_v4  ;;  %v5658_v25 = vpop.permute.xlu1 %5657 }
 0x41e   : > { %3619 = vmatprep.subr.bf16.mxu1 %v3571_v8  ;;  %v5644_v8 = vunpack.i.l.bf16 %v5643_v17  ;;  %v3759_v14 = vpack.c.bf16 %v3751_v27, %v3750_v62  ;;  %v5660_v9 = vunpack.i.h.bf16 %v5658_v25  ;;  %v5659_v5 = vunpack.i.l.bf16 %v5658_v25 }
 0x420   : > { %4726 = vmatmul.mubr.msk.bf16.gmra.mrb[4].mxu1 %vm686_vm2, %v5774_v7  ;;  %v5650_v7 = vunpack.i.h.bf16 %v5648_v35  ;;  %v3806_v18 = vmul.bf16 %v7252_v47, %v3759_v14  ;;  %v5663_v47 = vpop.permute.xlu0 %5662  ;;  %v3969_v49 = vsel %vm1983_vm7, %v5644_v8, %v5649_v40  ;;  %v3979_v22 = vsel %vm1983_vm7, %v5659_v5, %v5654_v32 }
 0x421   : > { %3620 = vmatpush1.bf16.msra.mxu1 %v3570_v23  ;;  %3434 = vmatprep.mubr.bf16.mxu1 %v5817_v2  ;;  %v3743_v23 = vsel %vm1749_vm6, %v5635_v50, %v5640_v51  ;;  %v5668_v41 = vpop.permute.xlu1 %5667  ;;  %v5665_v42 = vunpack.i.h.bf16 %v5663_v47  ;;  %v5664_v31 = vunpack.i.l.bf16 %v5663_v47  ;;  %v4024_v51 = vrot.slane %v4019_v34, %v6114_v63 }
 0x422   : > { %3621 = vmatprep.subr.bf16.mxu1 %v3573_v29  ;;  %v3742_v29 = vsel %vm1749_vm6, %v5634_v54, %v5639_v11  ;;  %v3978_v30 = vsel %vm1983_vm7, %v5650_v7, %v5645_v6  ;;  %v3970_v48 = vsel %vm1983_vm7, %v5645_v6, %v5650_v7  ;;  %v5670_v50 = vunpack.i.h.bf16 %v5668_v41 }
 0x423   : > { %v5669_v54 = vunpack.i.l.bf16 %v5668_v41  ;;  %v4236_v11 = vcombine.high %v7339_v36, %v7339_v36  ;;  %v3972_v52 = vsel %vm1983_vm7, %v5655_v24, %v5660_v9  ;;  %v3971_v0 = vsel %vm1983_vm7, %v5654_v32, %v5659_v5  ;;  %v5783_v5 = vld [vmem:[%s7525_s4 + $0xd0] sm:$0xff]  }
 0x424   : > { %v5673_v38 = vpop.permute.xlu0 %5672  ;;  %v3987_v6 = vpack.c.bf16 %v3972_v52, %v3971_v0 }
 0x425   : > { %3622 = vmatpush1.bf16.msra.mxu1 %v3572_v45  ;;  %v5778_v45 = vld [vmem:[%s7525_s4 + $0xa8] sm:$0xff]   ;;  %v5678_v39 = vpop.permute.xlu1 %5677  ;;  %v5675_v35 = vunpack.i.h.bf16 %v5673_v38  ;;  %v5674_v3 = vunpack.i.l.bf16 %v5673_v38  ;;  %v3981_v53 = vsel %vm1983_vm7, %v5669_v54, %v5664_v31  ;;  %v4250_v4 = vrot.slane %v4236_v11, %v6100_v58 }
 0x426   : > { %3848 = vmatprep.subr.bf16.mxu1 %v3800_v15  ;;  %v3977_v15 = vsel %vm1983_vm7, %v5649_v40, %v5644_v8  ;;  %v5680_v55 = vunpack.i.h.bf16 %v5678_v39  ;;  %v5679_v56 = vunpack.i.l.bf16 %v5678_v39  ;;  %v3974_v8 = vsel %vm1983_vm7, %v5665_v42, %v5670_v50 }
 0x427   : > { %v3986_v28 = vpack.c.bf16 %v3978_v30, %v3977_v15  ;;  %v3973_v44 = vsel %vm1983_vm7, %v5664_v31, %v5669_v54  ;;  %v4034_v15 = vmul.bf16 %v4024_v51, %v3987_v6 }
 0x428   : > { %4727 = vmatmul.mubr.msk.bf16.gmra.mrb[8].mxu1 %vm686_vm2, %v5775_v16  ;;  %v3758_v16 = vpack.c.bf16 %v3743_v23, %v3742_v29  ;;  %v5683_v27 = vpop.permute.xlu0 %5682  ;;  %v3983_v13 = vsel %vm1983_vm7, %v5679_v56, %v5674_v3  ;;  %v3989_v30 = vpack.c.bf16 %v3974_v8, %v3973_v44 }
 0x429   : > { %3444 = vmatprep.mubr.bf16.mxu1 %v5817_v2  ;;  %v5688_v62 = vpop.permute.xlu1 %5687  ;;  %v5685_v29 = vunpack.i.h.bf16 %v5683_v27 }
 0x42a   : > { %v3805_v19 = vmul.bf16 %v3791_v21, %v3758_v16  ;;  %v3980_v21 = vsel %vm1983_vm7, %v5660_v9, %v5655_v24  ;;  %v5689_v14 = vunpack.i.l.bf16 %v5688_v62  ;;  %v4259_v16 = vpack.i.b16 %v4250_v4, %v4250_v4 }
 0x42b   : > { %v3988_v17 = vpack.c.bf16 %v3980_v21, %v3979_v22  ;;  %v4036_v47 = vmul.bf16 %v4024_v51, %v3989_v30  ;;  %v5784_v21 = vld [vmem:[%s7525_s4 + $0xd8] sm:$0xff]  }
 0x42c   : > { %v7392_v24 = vrot.slane %v4259_v16, %v6114_v63  ;;  %v5786_v16 = vld [vmem:[%s7525_s4 + $0xe8] sm:$0xff]  }
 0x42d   : > { %v4035_v40 = vmul.bf16 %v7322_v60, %v3988_v17  ;;  %v5698_v34 = vpop.permute.xlu1 %5697 }
 0x42e   : > { %v5700_v39 = vunpack.i.h.bf16 %v5698_v34 }
 0x430   : > { %4728 = vmatmul.mubr.msk.bf16.gmra.mrb[12].mxu1 %vm686_vm2, %v5776_v43  ;;  %v4033_v43 = vmul.bf16 %v7322_v60, %v3986_v28 }
 0x431   : > { %3647 = vmatprep.mubr.bf16.mxu1 %v5817_v2 }
 0x438   : > { %4743 = vmatmul.mubr.msk.bf16.vlgmr.msra.gmra.mrb[0].mxu1 %vm686_vm2, %v5777_v1  ;;  %v3985_v1 = vpack.c.bf16 %v3970_v48, %v3969_v49  ;;  %v5708_v49 = vpop.permute.xlu1 %5707 }
 0x439   : > { %3849 = vmatpush1.bf16.msra.mxu1 %v3799_v37  ;;  %3657 = vmatprep.mubr.bf16.mxu1 %v5817_v2  ;;  %v5781_v37 = vld [vmem:[%s7525_s4 + $0xc0] sm:$0xff]  }
 0x43a   : > { %3850 = vmatprep.subr.bf16.mxu1 %v3802_v59  ;;  %v3982_v59 = vsel %vm1983_vm7, %v5670_v50, %v5665_v42  ;;  %v4032_v7 = vmul.bf16 %v4024_v51, %v3985_v1  ;;  %v5699_v42 = vunpack.i.l.bf16 %v5698_v34  ;;  %v5795_v34 = vld [vmem:[%s5939_s17 + $0x10] sm:$0xff] }
 0x43b   : > { %v3990_v23 = vpack.c.bf16 %v3982_v59, %v3981_v53  ;;  %v5785_v53 = vld [vmem:[%s7525_s4 + $0xe0] sm:$0xff]  }
 0x43c   : > { %v5718_v17 = vpop.permute.xlu1 %5717 }
 0x43d   : > { %3851 = vmatpush1.bf16.msra.mxu1 %v3801_v57  ;;  %v3984_v57 = vsel %vm1983_vm7, %v5680_v55, %v5675_v35  ;;  %v4037_v28 = vmul.bf16 %v7322_v60, %v3990_v23  ;;  %v5720_v6 = vunpack.i.h.bf16 %v5718_v17  ;;  %v5719_v8 = vunpack.i.l.bf16 %v5718_v17 }
 0x43e   : > { %3852 = vmatprep.subr.bf16.mxu1 %v3804_v10  ;;  %v5684_v10 = vunpack.i.l.bf16 %v5683_v27  ;;  %v3992_v20 = vpack.c.bf16 %v3984_v57, %v3983_v13 }
 0x440   : > { %4744 = vmatmul.mubr.msk.bf16.gmra.mrb[4].mxu1 %vm686_vm2, %v5778_v45  ;;  %v5690_v45 = vunpack.i.h.bf16 %v5688_v62  ;;  %v4039_v41 = vmul.bf16 %v7322_v60, %v3992_v20  ;;  %v4243_v60 = vrot.slane %v7339_v36, %v6100_v58  ;;  %v4202_v50 = vsel %vm2217_vm8, %v5684_v10, %v5689_v14  ;;  %v5787_v20 = vld [vmem:[%s7525_s4 + $0xf0] sm:$0xff]  }
 0x441   : > { %3853 = vmatpush1.bf16.msra.mxu1 %v3803_v12  ;;  %3667 = vmatprep.mubr.bf16.mxu1 %v5817_v2  ;;  %v3976_v12 = vsel %vm1983_vm7, %v5675_v35, %v5680_v55  ;;  %v5710_v58 = vunpack.i.h.bf16 %v5708_v49  ;;  %v5709_v36 = vunpack.i.l.bf16 %v5708_v49  ;;  %v5796_v49 = vld [vmem:[%s5939_s17 + $0x18] sm:$0xff] }
 0x442   : > { %3854 = vmatprep.subr.bf16.mxu1 %v3806_v18  ;;  %v3975_v18 = vsel %vm1983_vm7, %v5674_v3, %v5679_v56  ;;  %v4211_v25 = vsel %vm2217_vm8, %v5690_v45, %v5685_v29  ;;  %v4203_v31 = vsel %vm2217_vm8, %v5685_v29, %v5690_v45  ;;  %v4252_v54 = vpack.i.b16 %v4243_v60, %v4243_v60 }
 0x443   : > { %v4218_v35 = vpack.c.bf16 %v4203_v31, %v4202_v50  ;;  %v5798_v31 = vld [vmem:[%s5939_s17 + $0x28] sm:$0xff] }
 0x444   : > { %v4257_v55 = vrot.slane %v4252_v54, %v6114_v63 }
 0x445   : > { %3855 = vmatpush1.bf16.msra.mxu1 %v3805_v19  ;;  %v5782_v19 = vld [vmem:[%s7525_s4 + $0xc8] sm:$0xff]  }
 0x446   : > { %4081 = vmatprep.subr.bf16.mxu1 %v4033_v43  ;;  %v4210_v43 = vsel %vm2217_vm8, %v5689_v14, %v5684_v10  ;;  %v4265_v63 = vmul.bf16 %v4257_v55, %v4218_v35 }
 0x447   : > { %v4219_v26 = vpack.c.bf16 %v4211_v25, %v4210_v43  ;;  %v5788_v25 = vld [vmem:[%s7525_s4 + $0xf8] sm:$0xff]   ;;  %v5789_v43 = vld [vmem:[%s7525_s4 + $0x100] sm:$0xff]  }
 0x448   : > { %4745 = vmatmul.mubr.msk.bf16.gmra.mrb[8].mxu1 %vm686_vm2, %v5779_v46  ;;  %v3991_v46 = vpack.c.bf16 %v3976_v12, %v3975_v18 }
 0x449   : > { %3677 = vmatprep.mubr.bf16.mxu1 %v5817_v2  ;;  %v4266_v9 = vmul.bf16 %v7392_v24, %v4219_v26 }
 0x44a   : > { %v4038_v32 = vmul.bf16 %v4024_v51, %v3991_v46  ;;  %v5790_v46 = vld [vmem:[%s7525_s4 + $0x108] sm:$0xff]  }
 0x450   : > { %4746 = vmatmul.mubr.msk.bf16.gmra.mrb[12].mxu1 %vm686_vm2, %v5780_v33  ;;  %v5693_v33 = vpop.permute.xlu0 %5692 }
 0x451   : > { %3880 = vmatprep.mubr.bf16.mxu1 %v5817_v2  ;;  %v5695_v22 = vunpack.i.h.bf16 %v5693_v33  ;;  %v5694_v38 = vunpack.i.l.bf16 %v5693_v33 }
 0x453   : > { %v4213_v1 = vsel %vm2217_vm8, %v5700_v39, %v5695_v22  ;;  %v4212_v52 = vsel %vm2217_vm8, %v5699_v42, %v5694_v38  ;;  %v4205_v3 = vsel %vm2217_vm8, %v5695_v22, %v5700_v39  ;;  %v4204_v56 = vsel %vm2217_vm8, %v5694_v38, %v5699_v42  ;;  %v5797_v38 = vld [vmem:[%s5939_s17 + $0x20] sm:$0xff] }
 0x454   : > { %v5703_v48 = vpop.permute.xlu0 %5702  ;;  %v4221_v27 = vpack.c.bf16 %v4213_v1, %v4212_v52 }
 0x455   : > { %v5705_v51 = vunpack.i.h.bf16 %v5703_v48  ;;  %v5704_v11 = vunpack.i.l.bf16 %v5703_v48 }
 0x456   : > { %v4268_v57 = vmul.bf16 %v7392_v24, %v4221_v27  ;;  %v5804_v27 = vld [vmem:[%s5939_s17 + $0x58] sm:$0xff] }
 0x457   : > { %v4214_v59 = vsel %vm2217_vm8, %v5709_v36, %v5704_v11  ;;  %v4206_v44 = vsel %vm2217_vm8, %v5704_v11, %v5709_v36  ;;  %v5800_v36 = vld [vmem:[%s5939_s17 + $0x38] sm:$0xff] }
 0x458   : > { %4761 = vmatmul.mubr.msk.bf16.vlgmr.msra.gmra.mrb[0].mxu1 %vm686_vm2, %v5781_v37  ;;  %v5713_v0 = vpop.permute.xlu0 %5712  ;;  %v4215_v37 = vsel %vm2217_vm8, %v5710_v58, %v5705_v51 }
 0x459   : > { %4082 = vmatpush1.bf16.msra.mxu1 %v4032_v7  ;;  %3890 = vmatprep.mubr.bf16.mxu1 %v5817_v2  ;;  %v5715_v62 = vunpack.i.h.bf16 %v5713_v0  ;;  %v5714_v4 = vunpack.i.l.bf16 %v5713_v0  ;;  %v4220_v7 = vpack.c.bf16 %v4205_v3, %v4204_v56  ;;  %v4223_v13 = vpack.c.bf16 %v4215_v37, %v4214_v59  ;;  %v5801_v0 = vld [vmem:[%s5939_s17 + $0x40] sm:$0xff]  ;;  %v5802_v3 = vld [vmem:[%s5939_s17 + $0x48] sm:$0xff]  ;;  %v5803_v37 = vld [vmem:[%s5939_s17 + $0x50] sm:$0xff] }
 0x45a   : > { %4083 = vmatprep.subr.bf16.mxu1 %v4035_v40  ;;  %v4207_v40 = vsel %vm2217_vm8, %v5705_v51, %v5710_v58  ;;  %v5799_v51 = vld [vmem:[%s5939_s17 + $0x30] sm:$0xff] }
 0x45b   : > { %v4217_v23 = vsel %vm2217_vm8, %v5720_v6, %v5715_v62  ;;  %v4216_v29 = vsel %vm2217_vm8, %v5719_v8, %v5714_v4  ;;  %v4222_v10 = vpack.c.bf16 %v4207_v40, %v4206_v44  ;;  %v4267_v45 = vmul.bf16 %v4257_v55, %v4220_v7 }
 0x45c   : > { %v4209_v14 = vsel %vm2217_vm8, %v5715_v62, %v5720_v6  ;;  %v4208_v30 = vsel %vm2217_vm8, %v5714_v4, %v5719_v8  ;;  %v4225_v12 = vpack.c.bf16 %v4217_v23, %v4216_v29  ;;  %v5805_v6 = vld [vmem:[%s5939_s17 + $0x60] sm:$0xff]  ;;  %v5808_v29 = vld [vmem:[%s5939_s17 + $0x78] sm:$0xff] }
 0x45d   : > { %4084 = vmatpush1.bf16.msra.mxu1 %v4034_v15  ;;  %v4270_v15 = vmul.bf16 %v7392_v24, %v4223_v13  ;;  %v4224_v18 = vpack.c.bf16 %v4209_v14, %v4208_v30 }
 0x45e   : > { %4085 = vmatprep.subr.bf16.mxu1 %v4037_v28  ;;  %v4269_v28 = vmul.bf16 %v4257_v55, %v4222_v10 }
 0x45f   : > { %v4271_v61 = vmul.bf16 %v4257_v55, %v4224_v18 }
 0x460   : > { %4762 = vmatmul.mubr.msk.bf16.gmra.mrb[4].mxu1 %vm686_vm2, %v5782_v19  ;;  %v4272_v19 = vmul.bf16 %v7392_v24, %v4225_v12  ;;  %v5793_v24 = vld [vmem:[%s5939_s17] sm:$0xff] }
 0x461   : > { %4086 = vmatpush1.bf16.msra.mxu1 %v4036_v47  ;;  %3900 = vmatprep.mubr.bf16.mxu1 %v5817_v2  ;;  %v5791_v47 = vld [vmem:[%s7525_s4 + $0x110] sm:$0xff]  }
 0x462   : > { %4087 = vmatprep.subr.bf16.mxu1 %v4039_v41  ;;  %v5792_v41 = vld [vmem:[%s7525_s4 + $0x118] sm:$0xff]  }
 0x465   : > { %4088 = vmatpush1.bf16.msra.mxu1 %v4038_v32 }
 0x466   : > { %4314 = vmatprep.subr.bf16.mxu1 %v4266_v9  ;;  %v5794_v9 = vld [vmem:[%s5939_s17 + $0x8] sm:$0xff] }
 0x468   : > { %4763 = vmatmul.mubr.msk.bf16.gmra.mrb[8].mxu1 %vm686_vm2, %v5783_v5 }
 0x469   : > { %3910 = vmatprep.mubr.bf16.mxu1 %v5817_v2 }
 0x470   : > { %4764 = vmatmul.mubr.msk.bf16.gmra.mrb[12].mxu1 %vm686_vm2, %v5784_v21 }
 0x471   : > { %4113 = vmatprep.mubr.bf16.mxu1 %v5817_v2 }
 0x478   : > { %4779 = vmatmul.mubr.msk.bf16.vlgmr.msra.gmra.mrb[0].mxu1 %vm686_vm2, %v5785_v53 }
 0x479   : > { %4315 = vmatpush1.bf16.msra.mxu1 %v4265_v63  ;;  %4123 = vmatprep.mubr.bf16.mxu1 %v5817_v2  ;;  %v5806_v63 = vld [vmem:[%s5939_s17 + $0x68] sm:$0xff] }
 0x47a   : > { %4316 = vmatprep.subr.bf16.mxu1 %v4268_v57  ;;  %v5807_v57 = vld [vmem:[%s5939_s17 + $0x70] sm:$0xff] }
 0x47d   : > { %4317 = vmatpush1.bf16.msra.mxu1 %v4267_v45 }
 0x47e   : > { %4318 = vmatprep.subr.bf16.mxu1 %v4270_v15 }
 0x480   : > { %4780 = vmatmul.mubr.msk.bf16.gmra.mrb[4].mxu1 %vm686_vm2, %v5786_v16 }
 0x481   : > { %4319 = vmatpush1.bf16.msra.mxu1 %v4269_v28  ;;  %4133 = vmatprep.mubr.bf16.mxu1 %v5817_v2 }
 0x482   : > { %4320 = vmatprep.subr.bf16.mxu1 %v4272_v19 }
 0x485   : > { %4321 = vmatpush1.bf16.msra.mxu1 %v4271_v61 }
 0x488   : > { %4781 = vmatmul.mubr.msk.bf16.gmra.mrb[8].mxu1 %vm686_vm2, %v5787_v20 }
 0x489   : > { %4143 = vmatprep.mubr.bf16.mxu1 %v5817_v2 }
 0x490   : > { %4782 = vmatmul.mubr.msk.bf16.gmra.mrb[12].mxu1 %vm686_vm2, %v5788_v25 }
 0x491   : > { %4346 = vmatprep.mubr.bf16.mxu1 %v5817_v2 }
 0x498   : > { %4797 = vmatmul.mubr.msk.bf16.vlgmr.msra.gmra.mrb[0].mxu1 %vm686_vm2, %v5789_v43 }
 0x499   : > { %4356 = vmatprep.mubr.bf16.mxu1 %v5817_v2 }
 0x4a0   : > { %4798 = vmatmul.mubr.msk.bf16.gmra.mrb[4].mxu1 %vm686_vm2, %v5790_v46 }
 0x4a1   : > { %4366 = vmatprep.mubr.bf16.mxu1 %v5817_v2 }
 0x4a8   : > { %4799 = vmatmul.mubr.msk.bf16.gmra.mrb[8].mxu1 %vm686_vm2, %v5791_v47 }
 0x4a9   : > { %4376 = vmatprep.mubr.bf16.mxu1 %v5817_v2 }
 0x4b0   : > { %4800 = vmatmul.mubr.msk.bf16.gmra.mrb[12].mxu1 %vm686_vm2, %v5792_v41 }
 0x56b   : > { %v4348_v26 = vpop.f32.mrb[0].mxu1 }
 0x56c   : > { %v4403_v2 = vadd.f32 %v5793_v24, %v4348_v26  ;;  %v4350_v32 = vpop.f32.mrb[1].mxu1 }
 0x56d   : > { %v4404_v5 = vadd.f32 %v5794_v9, %v4350_v32  ;;  %v4352_v33 = vpop.f32.mrb[2].mxu1 }
 0x56e   : > { %4419 = vst [vmem:[%s7484_s11] sm:$0xff] %v4403_v2  ;;  %v4405_v60 = vadd.f32 %v5795_v34, %v4352_v33  ;;  %v4354_v48 = vpop.f32.mrb[3].mxu1 }
 0x56f   : > { %4420 = vst [vmem:[%s7484_s11 + $0x8] sm:$0xff] %v4404_v5  ;;  %v4406_v21 = vadd.f32 %v5796_v49, %v4354_v48 }
 0x570   : > { %4421 = vst [vmem:[%s7484_s11 + $0x10] sm:$0xff] %v4405_v60 }
 0x571   : > { %4422 = vst [vmem:[%s7484_s11 + $0x18] sm:$0xff] %v4406_v21 }
 0x573   : > { %v4358_v22 = vpop.f32.mrb[4].mxu1 }
 0x574   : > { %v4407_v39 = vadd.f32 %v5797_v38, %v4358_v22  ;;  %v4360_v42 = vpop.f32.mrb[5].mxu1 }
 0x575   : > { %v4408_v50 = vadd.f32 %v5798_v31, %v4360_v42  ;;  %v4362_v54 = vpop.f32.mrb[6].mxu1 }
 0x576   : > { %4423 = vst [vmem:[%s7484_s11 + $0x20] sm:$0xff] %v4407_v39  ;;  %v4409_v11 = vadd.f32 %v5799_v51, %v4362_v54  ;;  %v4364_v58 = vpop.f32.mrb[7].mxu1 }
 0x577   : > { %4424 = vst [vmem:[%s7484_s11 + $0x28] sm:$0xff] %v4408_v50  ;;  %v4410_v1 = vadd.f32 %v5800_v36, %v4364_v58 }
 0x578   : > { %4425 = vst [vmem:[%s7484_s11 + $0x30] sm:$0xff] %v4409_v11 }
 0x579   : > { %4426 = vst [vmem:[%s7484_s11 + $0x38] sm:$0xff] %v4410_v1 }
 0x57b   : > { %v4368_v52 = vpop.f32.mrb[8].mxu1 }
 0x57c   : > { %v4411_v17 = vadd.f32 %v5801_v0, %v4368_v52  ;;  %v4370_v35 = vpop.f32.mrb[9].mxu1 }
 0x57d   : > { %v4412_v55 = vadd.f32 %v5802_v3, %v4370_v35  ;;  %v4372_v56 = vpop.f32.mrb[10].mxu1 }
 0x57e   : > { %4427 = vst [vmem:[%s7484_s11 + $0x40] sm:$0xff] %v4411_v17  ;;  %v4413_v59 = vadd.f32 %v5803_v37, %v4372_v56  ;;  %v4374_v53 = vpop.f32.mrb[11].mxu1 }
 0x57f   : > { %4428 = vst [vmem:[%s7484_s11 + $0x48] sm:$0xff] %v4412_v55  ;;  %v4414_v62 = vadd.f32 %v5804_v27, %v4374_v53 }
 0x580   : > { %4429 = vst [vmem:[%s7484_s11 + $0x50] sm:$0xff] %v4413_v59 }
 0x581   : > { %4430 = vst [vmem:[%s7484_s11 + $0x58] sm:$0xff] %v4414_v62 }
 0x583   : > { %v4378_v4 = vpop.f32.mrb[12].mxu1 }
 0x584   : > { %v4415_v8 = vadd.f32 %v5805_v6, %v4378_v4  ;;  %v4380_v7 = vpop.f32.mrb[13].mxu1 }
 0x585   : > { %v4416_v40 = vadd.f32 %v5806_v63, %v4380_v7  ;;  %v4382_v44 = vpop.f32.mrb[14].mxu1 }
 0x586   : > { %4431 = vst [vmem:[%s7484_s11 + $0x60] sm:$0xff] %v4415_v8  ;;  %v4417_v13 = vadd.f32 %v5807_v57, %v4382_v44  ;;  %v4384_v23 = vpop.f32.mrb[15].mxu1 }
 0x587   : > { %4432 = vst [vmem:[%s7484_s11 + $0x68] sm:$0xff] %v4416_v40  ;;  %v4418_v10 = vadd.f32 %v5808_v29, %v4384_v23 }
 0x588   : > { %4433 = vst [vmem:[%s7484_s11 + $0x70] sm:$0xff] %v4417_v13 }
 0x589   : > { %4434 = vst [vmem:[%s7484_s11 + $0x78] sm:$0xff] %v4418_v10 }
 0x58a PF: > { %s17_s24 = sadd.s32 1, %s5815_s24  }
 0x58b   : > { %p14_p4 = scmp.ge.s32.totalorder %s17_s24, 4  }
 0x58d   :  { %16 = sbr.rel (!%p14_p4) target bundleno = 1 (0x1), region = 108 }

</bundles_post_ra>
